<compile_context>
chip_gen: v6e
topology: v6e:2x2x1
jax: 0.10.0
libtpu: 0.0.40
codegen_flags: <defaults>
</compile_context>

<pallas_src>
import math

import jax
import jax.numpy as jnp
from jax import lax
from jax.experimental import pallas as pl
from jax.experimental.pallas import tpu as pltpu

# Agent_DQL default hyper-parameters
D_MODEL = 90
NHEAD = 3
HEAD_DIM = D_MODEL // NHEAD      # 30
NHID = 128
NLAYERS = 3
LN_EPS = 1e-5                    # torch.nn.LayerNorm default eps

# ---- bias / LayerNorm slab layout (one packed f32 array, static row offsets) ----
_LH = NLAYERS * NHEAD            # 9
BIAS_W = 128                     # lane width of the slab (>= NHID, >= naction)
R_BQ = 0                         # (LH rows,  width HEAD_DIM)  — already * 1/sqrt(hd)
R_BK = R_BQ + _LH                # (LH rows,  width HEAD_DIM)
R_BVO = R_BK + _LH               # (LH rows,  width D_MODEL)   — bv_h @ Wo_h
R_BO = R_BVO + _LH               # (L rows,   width D_MODEL)   — out_proj bias
R_LN1G = R_BO + NLAYERS
R_LN1B = R_LN1G + NLAYERS
R_B1 = R_LN1B + NLAYERS          # width NHID
R_B2 = R_B1 + NLAYERS            # width D_MODEL
R_LN2G = R_B2 + NLAYERS
R_LN2B = R_LN2G + NLAYERS
R_BDEC = R_LN2B + NLAYERS        # 1 row, width naction
N_BIAS_ROWS = R_BDEC + 1         # 49


def _layer_norm(x, gamma, beta):
    mu = jnp.mean(x, axis=-1, keepdims=True)
    var = jnp.mean(jnp.square(x - mu), axis=-1, keepdims=True)
    return (x - mu) * lax.rsqrt(var + LN_EPS) * gamma + beta


def agent_dql_kernel(x_ref, wqk_ref, wvo_ref, w1_ref, w2_ref, wdec_ref,
                     bias_ref, y_ref):
    # x_ref: (S, D) f32, already scaled by sqrt(d_model) and pos-encoded (host prep).
    # wqk_ref: (2*L*H, D, hd) bf16  (Wq blocks with 1/sqrt(hd) folded, then Wk blocks)
    # wvo_ref: (L*H, D, D)   bf16  (Wv_h @ Wo_h folded on host)
    # w1_ref:  (L, D, NHID)  bf16;  w2_ref: (L, NHID, D) bf16;  wdec_ref: (D, A) bf16
    # bias_ref: (N_BIAS_ROWS, 128) f32 packed bias / LayerNorm slab.
    # TODO(synk): dropout layers are identity here (eval-mode / inference semantics).
    naction = y_ref.shape[-1]
    x = x_ref[...]                                    # f32 residual stream

    for l in range(NLAYERS):                          # static unroll: 3 post-norm layers
        x_bf = x.astype(jnp.bfloat16)                 # shared operand for q/k/v' dots

        # ---- multi-head self-attention (Wo pre-folded into Wv) ----
        acc = None
        for h in range(NHEAD):
            i = l * NHEAD + h
            qh = (jnp.dot(x_bf, wqk_ref[i], preferred_element_type=jnp.float32)
                  + bias_ref[R_BQ + i:R_BQ + i + 1, 0:HEAD_DIM])          # (S, hd)
            kh = (jnp.dot(x_bf, wqk_ref[_LH + i], preferred_element_type=jnp.float32)
                  + bias_ref[R_BK + i:R_BK + i + 1, 0:HEAD_DIM])          # (S, hd)
            vph = jnp.dot(x_bf, wvo_ref[i], preferred_element_type=jnp.float32)  # (S, D)

            # scores = qh @ kh^T  (1/sqrt(hd) already folded into Wq/bq)
            s = lax.dot_general(qh.astype(jnp.bfloat16), kh.astype(jnp.bfloat16),
                                (((1,), (1,)), ((), ())),
                                preferred_element_type=jnp.float32)        # (S, S)
            s = s - jnp.max(s, axis=-1, keepdims=True)
            p = jnp.exp(s)
            p = p * pl.reciprocal(jnp.sum(p, axis=-1, keepdims=True), approx=True)

            ctrb = (jnp.dot(p.astype(jnp.bfloat16), vph.astype(jnp.bfloat16),
                            preferred_element_type=jnp.float32)
                    + bias_ref[R_BVO + i:R_BVO + i + 1, 0:D_MODEL])        # (S, D)
            acc = ctrb if acc is None else acc + ctrb

        x = _layer_norm(x + acc + bias_ref[R_BO + l:R_BO + l + 1, 0:D_MODEL],
                        bias_ref[R_LN1G + l:R_LN1G + l + 1, 0:D_MODEL],
                        bias_ref[R_LN1B + l:R_LN1B + l + 1, 0:D_MODEL])

        # ---- feed forward (ReLU) ----
        x_bf = x.astype(jnp.bfloat16)
        h1 = (jnp.dot(x_bf, w1_ref[l], preferred_element_type=jnp.float32)
              + bias_ref[R_B1 + l:R_B1 + l + 1, 0:NHID])
        h1 = jnp.maximum(h1, 0.0)
        h2 = (jnp.dot(h1.astype(jnp.bfloat16), w2_ref[l], preferred_element_type=jnp.float32)
              + bias_ref[R_B2 + l:R_B2 + l + 1, 0:D_MODEL])
        x = _layer_norm(x + h2,
                        bias_ref[R_LN2G + l:R_LN2G + l + 1, 0:D_MODEL],
                        bias_ref[R_LN2B + l:R_LN2B + l + 1, 0:D_MODEL])

    # Decoder on the (S, D) slab of the last batch element (== torch's enc[:, -1, :]).
    y = (jnp.dot(x.astype(jnp.bfloat16), wdec_ref[...], preferred_element_type=jnp.float32)
         + bias_ref[R_BDEC:R_BDEC + 1, 0:naction])
    y_ref[...] = y.astype(y_ref.dtype)


def positional_encoding(seq_len, d_model):
    # Matches the reference PositionalEncoding (note: log(1000.0), as in the source).
    position = jnp.arange(seq_len, dtype=jnp.float32)[:, None]
    div_term = jnp.exp(jnp.arange(0, d_model, 2, dtype=jnp.float32)
                       * (-math.log(1000.0) / d_model))
    pe = jnp.zeros((seq_len, d_model), jnp.float32)
    pe = pe.at[:, 0::2].set(jnp.sin(position * div_term))
    pe = pe.at[:, 1::2].set(jnp.cos(position * div_term))
    return pe


def make_params(key, naction):
    # Deterministic synthetic parameters (shapes mirror the torch module).
    # Projection weights are already per-head, pre-transposed row blocks; converting
    # real torch weights: split in_proj_weight into Wq/Wk/Wv, split each into NHEAD
    # row blocks of HEAD_DIM rows, transpose each; out_proj.weight^T split by head.
    ks = jax.random.split(key, 9)

    def u(k, shape, scale=0.1):
        return jax.random.uniform(k, shape, jnp.float32, minval=-scale, maxval=scale)

    return dict(
        wq=u(ks[0], (_LH, D_MODEL, HEAD_DIM)),
        wk=u(ks[1], (_LH, D_MODEL, HEAD_DIM)),
        wv=u(ks[2], (_LH, D_MODEL, HEAD_DIM)),
        bq=jnp.zeros((_LH, HEAD_DIM), jnp.float32),
        bk=jnp.zeros((_LH, HEAD_DIM), jnp.float32),
        bv=jnp.zeros((_LH, HEAD_DIM), jnp.float32),
        wo=u(ks[3], (_LH, HEAD_DIM, D_MODEL)),       # out_proj.weight^T, split by head
        bo=jnp.zeros((NLAYERS, D_MODEL), jnp.float32),
        ln1_g=jnp.ones((NLAYERS, D_MODEL), jnp.float32),
        ln1_b=jnp.zeros((NLAYERS, D_MODEL), jnp.float32),
        w1=u(ks[4], (NLAYERS, D_MODEL, NHID)),        # linear1.weight^T
        b1=u(ks[5], (NLAYERS, NHID)),
        w2=u(ks[6], (NLAYERS, NHID, D_MODEL)),        # linear2.weight^T
        b2=u(ks[7], (NLAYERS, D_MODEL)),
        ln2_g=jnp.ones((NLAYERS, D_MODEL), jnp.float32),
        ln2_b=jnp.zeros((NLAYERS, D_MODEL), jnp.float32),
        wdec=u(ks[8], (D_MODEL, naction)),            # decoder.weight^T ~ U(-0.1, 0.1)
        bdec=jnp.zeros((naction,), jnp.float32),      # decoder.bias = 0
    )


def prepare_weights(params, max_seq_len=32):
    """One-time host-side folding / packing (hoisted out of the per-call path)."""
    naction = params["wdec"].shape[-1]
    assert naction <= BIAS_W and NHID <= BIAS_W

    inv_sqrt_hd = 1.0 / math.sqrt(HEAD_DIM)
    wq = params["wq"] * inv_sqrt_hd                   # fold attention scale into Q
    bq = params["bq"] * inv_sqrt_hd
    # Fold the output projection into V:  (x Wv_h + bv_h) Wo_h
    wvo = jnp.einsum("ndh,nhe->nde", params["wv"], params["wo"])   # (LH, D, D)
    bvo = jnp.einsum("nh,nhe->ne", params["bv"], params["wo"])     # (LH, D)
    wqk = jnp.concatenate([wq, params["wk"]], axis=0)              # (2*LH, D, hd)

    def block(a):
        a = a.astype(jnp.float32)
        if a.ndim == 1:
            a = a[None, :]
        return jnp.pad(a, ((0, 0), (0, BIAS_W - a.shape[-1])))

    bias = jnp.concatenate([
        block(bq), block(params["bk"]), block(bvo),
        block(params["bo"]), block(params["ln1_g"]), block(params["ln1_b"]),
        block(params["b1"]), block(params["b2"]),
        block(params["ln2_g"]), block(params["ln2_b"]),
        block(params["bdec"]),
    ], axis=0)
    assert bias.shape == (N_BIAS_ROWS, BIAS_W)

    return dict(
        pe=positional_encoding(max_seq_len, D_MODEL),  # precomputed PE table
        wqk=wqk.astype(jnp.bfloat16),
        wvo=wvo.astype(jnp.bfloat16),
        w1=params["w1"].astype(jnp.bfloat16),
        w2=params["w2"].astype(jnp.bfloat16),
        wdec=params["wdec"].astype(jnp.bfloat16),
        bias=bias,                                      # f32 bias / LayerNorm slab
    )


def _cost_estimate(S, naction, arrays):
    attn = NHEAD * (2 * 2 * S * D_MODEL * HEAD_DIM     # q, k projections
                    + 2 * S * S * HEAD_DIM             # scores
                    + 2 * S * D_MODEL * D_MODEL        # folded V*O projection
                    + 2 * S * S * D_MODEL)             # p @ v'
    ffn = 2 * 2 * S * D_MODEL * NHID
    flops = NLAYERS * (attn + ffn) + 2 * S * D_MODEL * naction
    transcendentals = NLAYERS * NHEAD * S * (S + 1) + NLAYERS * 2 * S
    bytes_accessed = sum(math.prod(a.shape) * jnp.dtype(a.dtype).itemsize
                         for a in arrays) + S * naction * 4
    return pl.CostEstimate(flops=flops, transcendentals=transcendentals,
                           bytes_accessed=bytes_accessed)


@jax.jit
def agent_dql_forward(x_sbd, prep):
    """Forward pass of Agent_DQL.

    x_sbd: (S, B, D) input (seq, batch, d_model), batch_first=False convention.
    Returns (S, naction): torch computes enc[:, -1, :] @ W_dec^T + b_dec, i.e.
    only the LAST batch element's encoder output matters; batch elements are
    independent through the encoder, so we slice on the host and run the kernel
    on a single (S, D) slab.
    """
    S, _, D = x_sbd.shape
    assert D == D_MODEL
    naction = prep["wdec"].shape[-1]

    # Per-call host prep (fused under jit): select last batch element,
    # scale by sqrt(d_model), add the precomputed positional encoding.
    x_in = (x_sbd[:, -1, :].astype(jnp.float32) * math.sqrt(D_MODEL)
            + prep["pe"][:S])

    inputs = (x_in, prep["wqk"], prep["wvo"], prep["w1"], prep["w2"],
              prep["wdec"], prep["bias"])

    # Single gridless program, everything resident in VMEM (<1 MiB working set).
    return pl.pallas_call(
        agent_dql_kernel,
        out_shape=jax.ShapeDtypeStruct((S, naction), jnp.float32),
        in_specs=[pl.BlockSpec(memory_space=pltpu.MemorySpace.VMEM)
                  for _ in inputs],
        out_specs=pl.BlockSpec(memory_space=pltpu.MemorySpace.VMEM),
        cost_estimate=_cost_estimate(S, naction, inputs),
    )(*inputs)


if __name__ == "__main__":
    key = jax.random.PRNGKey(0)
    kx, kp = jax.random.split(key)

    S, B, NACTION = 8, 2, 8          # small shapes; d_model is fixed at 90 by the module
    x = jax.random.normal(kx, (S, B, D_MODEL), dtype=jnp.float32)
    params = make_params(kp, NACTION)
    prep = prepare_weights(params, max_seq_len=32)   # one-time fold/pack, out of hot path

    y = agent_dql_forward(x, prep)
    jax.block_until_ready(y)

    assert y.shape == (S, NACTION), y.shape
    assert bool(jnp.all(jnp.isfinite(y)))
    print("KERNEL_OK")
</pallas_src>

<mosaic_0001>
module attributes {stable_mosaic.version = 11 : i64} {
  func.func @agent_dql_kernel(%arg0: memref<8x90xf32, #tpu.memory_space<vmem>>, %arg1: memref<18x90x30xbf16, #tpu.memory_space<vmem>>, %arg2: memref<9x90x90xbf16, #tpu.memory_space<vmem>>, %arg3: memref<3x90x128xbf16, #tpu.memory_space<vmem>>, %arg4: memref<3x128x90xbf16, #tpu.memory_space<vmem>>, %arg5: memref<90x8xbf16, #tpu.memory_space<vmem>>, %arg6: memref<49x128xf32, #tpu.memory_space<vmem>>, %arg7: memref<8x8xf32, #tpu.memory_space<vmem>>) attributes {dimension_semantics = [], scalar_prefetch = 0 : i64, scratch_operands = 0 : i64, tpu.core_type = #tpu.core_type<tc>} {
    %c0 = arith.constant 0 : index
    %c0_0 = arith.constant 0 : index
    %0 = vector.load %arg0[%c0, %c0_0] : memref<8x90xf32, #tpu.memory_space<vmem>>, vector<8x90xf32>
    %1 = arith.truncf %0 : vector<8x90xf32> to vector<8x90xbf16>
    %c0_1 = arith.constant 0 : index
    %c0_2 = arith.constant 0 : index
    %c0_3 = arith.constant 0 : index
    %2 = vector.load %arg1[%c0_1, %c0_2, %c0_3] : memref<18x90x30xbf16, #tpu.memory_space<vmem>>, vector<1x90x30xbf16>
    %3 = vector.shape_cast %2 : vector<1x90x30xbf16> to vector<90x30xbf16>
    %cst = arith.constant dense<0.000000e+00> : vector<8x30xf32>
    %4 = tpu.matmul %1, %3, %cst {dimension_numbers = #tpu.dot_dimension_numbers<[1], [0], [0], [1], [0, 0, 1, 1], [], []>} : vector<8x90xbf16>, vector<90x30xbf16>, vector<8x30xf32> -> vector<8x30xf32>
    %c0_4 = arith.constant 0 : index
    %c0_5 = arith.constant 0 : index
    %5 = vector.load %arg6[%c0_4, %c0_5] : memref<49x128xf32, #tpu.memory_space<vmem>>, vector<1x30xf32>
    %6 = vector.broadcast %5 : vector<1x30xf32> to vector<8x30xf32>
    %7 = arith.addf %4, %6 : vector<8x30xf32>
    %c9 = arith.constant 9 : index
    %c0_6 = arith.constant 0 : index
    %c0_7 = arith.constant 0 : index
    %8 = vector.load %arg1[%c9, %c0_6, %c0_7] : memref<18x90x30xbf16, #tpu.memory_space<vmem>>, vector<1x90x30xbf16>
    %9 = vector.shape_cast %8 : vector<1x90x30xbf16> to vector<90x30xbf16>
    %cst_8 = arith.constant dense<0.000000e+00> : vector<8x30xf32>
    %10 = tpu.matmul %1, %9, %cst_8 {dimension_numbers = #tpu.dot_dimension_numbers<[1], [0], [0], [1], [0, 0, 1, 1], [], []>} : vector<8x90xbf16>, vector<90x30xbf16>, vector<8x30xf32> -> vector<8x30xf32>
    %c9_9 = arith.constant 9 : index
    %c0_10 = arith.constant 0 : index
    %11 = vector.load %arg6[%c9_9, %c0_10] : memref<49x128xf32, #tpu.memory_space<vmem>>, vector<1x30xf32>
    %12 = vector.broadcast %11 : vector<1x30xf32> to vector<8x30xf32>
    %13 = arith.addf %10, %12 : vector<8x30xf32>
    %c0_11 = arith.constant 0 : index
    %c0_12 = arith.constant 0 : index
    %c0_13 = arith.constant 0 : index
    %14 = vector.load %arg2[%c0_11, %c0_12, %c0_13] : memref<9x90x90xbf16, #tpu.memory_space<vmem>>, vector<1x90x90xbf16>
    %15 = vector.shape_cast %14 : vector<1x90x90xbf16> to vector<90x90xbf16>
    %cst_14 = arith.constant dense<0.000000e+00> : vector<8x90xf32>
    %16 = tpu.matmul %1, %15, %cst_14 {dimension_numbers = #tpu.dot_dimension_numbers<[1], [0], [0], [1], [0, 0, 1, 1], [], []>} : vector<8x90xbf16>, vector<90x90xbf16>, vector<8x90xf32> -> vector<8x90xf32>
    %17 = arith.truncf %7 : vector<8x30xf32> to vector<8x30xbf16>
    %18 = arith.truncf %13 : vector<8x30xf32> to vector<8x30xbf16>
    %cst_15 = arith.constant dense<0.000000e+00> : vector<8x8xf32>
    %19 = tpu.matmul %17, %18, %cst_15 {dimension_numbers = #tpu.dot_dimension_numbers<[1], [1], [0], [0], [0, 0, 1, 0], [], []>} : vector<8x30xbf16>, vector<8x30xbf16>, vector<8x8xf32> -> vector<8x8xf32>
    %cst_16 = arith.constant dense<0xFF800000> : vector<8xf32>
    %20 = vector.multi_reduction <maximumf>, %19, %cst_16 [1] : vector<8x8xf32> to vector<8xf32>
    %21 = vector.shape_cast %20 : vector<8xf32> to vector<8x1xf32>
    %22 = vector.broadcast %21 : vector<8x1xf32> to vector<8x8xf32>
    %23 = arith.subf %19, %22 : vector<8x8xf32>
    %24 = math.exp %23 : vector<8x8xf32>
    %cst_17 = arith.constant dense<0.000000e+00> : vector<8xf32>
    %25 = vector.multi_reduction <add>, %24, %cst_17 [1] : vector<8x8xf32> to vector<8xf32>
    %26 = vector.shape_cast %25 : vector<8xf32> to vector<8x1xf32>
    %27 = tpu.reciprocal %26 {approx = true} : vector<8x1xf32> -> vector<8x1xf32>
    %28 = vector.broadcast %27 : vector<8x1xf32> to vector<8x8xf32>
    %29 = arith.mulf %24, %28 : vector<8x8xf32>
    %30 = arith.truncf %29 : vector<8x8xf32> to vector<8x8xbf16>
    %31 = arith.truncf %16 : vector<8x90xf32> to vector<8x90xbf16>
    %cst_18 = arith.constant dense<0.000000e+00> : vector<8x90xf32>
    %32 = tpu.matmul %30, %31, %cst_18 {dimension_numbers = #tpu.dot_dimension_numbers<[1], [0], [0], [1], [0, 0, 1, 1], [], []>} : vector<8x8xbf16>, vector<8x90xbf16>, vector<8x90xf32> -> vector<8x90xf32>
    %c18 = arith.constant 18 : index
    %c0_19 = arith.constant 0 : index
    %33 = vector.load %arg6[%c18, %c0_19] : memref<49x128xf32, #tpu.memory_space<vmem>>, vector<1x90xf32>
    %34 = vector.broadcast %33 : vector<1x90xf32> to vector<8x90xf32>
    %35 = arith.addf %32, %34 : vector<8x90xf32>
    %c1 = arith.constant 1 : index
    %c0_20 = arith.constant 0 : index
    %c0_21 = arith.constant 0 : index
    %36 = vector.load %arg1[%c1, %c0_20, %c0_21] : memref<18x90x30xbf16, #tpu.memory_space<vmem>>, vector<1x90x30xbf16>
    %37 = vector.shape_cast %36 : vector<1x90x30xbf16> to vector<90x30xbf16>
    %cst_22 = arith.constant dense<0.000000e+00> : vector<8x30xf32>
    %38 = tpu.matmul %1, %37, %cst_22 {dimension_numbers = #tpu.dot_dimension_numbers<[1], [0], [0], [1], [0, 0, 1, 1], [], []>} : vector<8x90xbf16>, vector<90x30xbf16>, vector<8x30xf32> -> vector<8x30xf32>
    %c1_23 = arith.constant 1 : index
    %c0_24 = arith.constant 0 : index
    %39 = vector.load %arg6[%c1_23, %c0_24] : memref<49x128xf32, #tpu.memory_space<vmem>>, vector<1x30xf32>
    %40 = vector.broadcast %39 : vector<1x30xf32> to vector<8x30xf32>
    %41 = arith.addf %38, %40 : vector<8x30xf32>
    %c10 = arith.constant 10 : index
    %c0_25 = arith.constant 0 : index
    %c0_26 = arith.constant 0 : index
    %42 = vector.load %arg1[%c10, %c0_25, %c0_26] : memref<18x90x30xbf16, #tpu.memory_space<vmem>>, vector<1x90x30xbf16>
    %43 = vector.shape_cast %42 : vector<1x90x30xbf16> to vector<90x30xbf16>
    %cst_27 = arith.constant dense<0.000000e+00> : vector<8x30xf32>
    %44 = tpu.matmul %1, %43, %cst_27 {dimension_numbers = #tpu.dot_dimension_numbers<[1], [0], [0], [1], [0, 0, 1, 1], [], []>} : vector<8x90xbf16>, vector<90x30xbf16>, vector<8x30xf32> -> vector<8x30xf32>
    %c10_28 = arith.constant 10 : index
    %c0_29 = arith.constant 0 : index
    %45 = vector.load %arg6[%c10_28, %c0_29] : memref<49x128xf32, #tpu.memory_space<vmem>>, vector<1x30xf32>
    %46 = vector.broadcast %45 : vector<1x30xf32> to vector<8x30xf32>
    %47 = arith.addf %44, %46 : vector<8x30xf32>
    %c1_30 = arith.constant 1 : index
    %c0_31 = arith.constant 0 : index
    %c0_32 = arith.constant 0 : index
    %48 = vector.load %arg2[%c1_30, %c0_31, %c0_32] : memref<9x90x90xbf16, #tpu.memory_space<vmem>>, vector<1x90x90xbf16>
    %49 = vector.shape_cast %48 : vector<1x90x90xbf16> to vector<90x90xbf16>
    %cst_33 = arith.constant dense<0.000000e+00> : vector<8x90xf32>
    %50 = tpu.matmul %1, %49, %cst_33 {dimension_numbers = #tpu.dot_dimension_numbers<[1], [0], [0], [1], [0, 0, 1, 1], [], []>} : vector<8x90xbf16>, vector<90x90xbf16>, vector<8x90xf32> -> vector<8x90xf32>
    %51 = arith.truncf %41 : vector<8x30xf32> to vector<8x30xbf16>
    %52 = arith.truncf %47 : vector<8x30xf32> to vector<8x30xbf16>
    %cst_34 = arith.constant dense<0.000000e+00> : vector<8x8xf32>
    %53 = tpu.matmul %51, %52, %cst_34 {dimension_numbers = #tpu.dot_dimension_numbers<[1], [1], [0], [0], [0, 0, 1, 0], [], []>} : vector<8x30xbf16>, vector<8x30xbf16>, vector<8x8xf32> -> vector<8x8xf32>
    %cst_35 = arith.constant dense<0xFF800000> : vector<8xf32>
    %54 = vector.multi_reduction <maximumf>, %53, %cst_35 [1] : vector<8x8xf32> to vector<8xf32>
    %55 = vector.shape_cast %54 : vector<8xf32> to vector<8x1xf32>
    %56 = vector.broadcast %55 : vector<8x1xf32> to vector<8x8xf32>
    %57 = arith.subf %53, %56 : vector<8x8xf32>
    %58 = math.exp %57 : vector<8x8xf32>
    %cst_36 = arith.constant dense<0.000000e+00> : vector<8xf32>
    %59 = vector.multi_reduction <add>, %58, %cst_36 [1] : vector<8x8xf32> to vector<8xf32>
    %60 = vector.shape_cast %59 : vector<8xf32> to vector<8x1xf32>
    %61 = tpu.reciprocal %60 {approx = true} : vector<8x1xf32> -> vector<8x1xf32>
    %62 = vector.broadcast %61 : vector<8x1xf32> to vector<8x8xf32>
    %63 = arith.mulf %58, %62 : vector<8x8xf32>
    %64 = arith.truncf %63 : vector<8x8xf32> to vector<8x8xbf16>
    %65 = arith.truncf %50 : vector<8x90xf32> to vector<8x90xbf16>
    %cst_37 = arith.constant dense<0.000000e+00> : vector<8x90xf32>
    %66 = tpu.matmul %64, %65, %cst_37 {dimension_numbers = #tpu.dot_dimension_numbers<[1], [0], [0], [1], [0, 0, 1, 1], [], []>} : vector<8x8xbf16>, vector<8x90xbf16>, vector<8x90xf32> -> vector<8x90xf32>
    %c19 = arith.constant 19 : index
    %c0_38 = arith.constant 0 : index
    %67 = vector.load %arg6[%c19, %c0_38] : memref<49x128xf32, #tpu.memory_space<vmem>>, vector<1x90xf32>
    %68 = vector.broadcast %67 : vector<1x90xf32> to vector<8x90xf32>
    %69 = arith.addf %66, %68 : vector<8x90xf32>
    %70 = arith.addf %35, %69 : vector<8x90xf32>
    %c2 = arith.constant 2 : index
    %c0_39 = arith.constant 0 : index
    %c0_40 = arith.constant 0 : index
    %71 = vector.load %arg1[%c2, %c0_39, %c0_40] : memref<18x90x30xbf16, #tpu.memory_space<vmem>>, vector<1x90x30xbf16>
    %72 = vector.shape_cast %71 : vector<1x90x30xbf16> to vector<90x30xbf16>
    %cst_41 = arith.constant dense<0.000000e+00> : vector<8x30xf32>
    %73 = tpu.matmul %1, %72, %cst_41 {dimension_numbers = #tpu.dot_dimension_numbers<[1], [0], [0], [1], [0, 0, 1, 1], [], []>} : vector<8x90xbf16>, vector<90x30xbf16>, vector<8x30xf32> -> vector<8x30xf32>
    %c2_42 = arith.constant 2 : index
    %c0_43 = arith.constant 0 : index
    %74 = vector.load %arg6[%c2_42, %c0_43] : memref<49x128xf32, #tpu.memory_space<vmem>>, vector<1x30xf32>
    %75 = vector.broadcast %74 : vector<1x30xf32> to vector<8x30xf32>
    %76 = arith.addf %73, %75 : vector<8x30xf32>
    %c11 = arith.constant 11 : index
    %c0_44 = arith.constant 0 : index
    %c0_45 = arith.constant 0 : index
    %77 = vector.load %arg1[%c11, %c0_44, %c0_45] : memref<18x90x30xbf16, #tpu.memory_space<vmem>>, vector<1x90x30xbf16>
    %78 = vector.shape_cast %77 : vector<1x90x30xbf16> to vector<90x30xbf16>
    %cst_46 = arith.constant dense<0.000000e+00> : vector<8x30xf32>
    %79 = tpu.matmul %1, %78, %cst_46 {dimension_numbers = #tpu.dot_dimension_numbers<[1], [0], [0], [1], [0, 0, 1, 1], [], []>} : vector<8x90xbf16>, vector<90x30xbf16>, vector<8x30xf32> -> vector<8x30xf32>
    %c11_47 = arith.constant 11 : index
    %c0_48 = arith.constant 0 : index
    %80 = vector.load %arg6[%c11_47, %c0_48] : memref<49x128xf32, #tpu.memory_space<vmem>>, vector<1x30xf32>
    %81 = vector.broadcast %80 : vector<1x30xf32> to vector<8x30xf32>
    %82 = arith.addf %79, %81 : vector<8x30xf32>
    %c2_49 = arith.constant 2 : index
    %c0_50 = arith.constant 0 : index
    %c0_51 = arith.constant 0 : index
    %83 = vector.load %arg2[%c2_49, %c0_50, %c0_51] : memref<9x90x90xbf16, #tpu.memory_space<vmem>>, vector<1x90x90xbf16>
    %84 = vector.shape_cast %83 : vector<1x90x90xbf16> to vector<90x90xbf16>
    %cst_52 = arith.constant dense<0.000000e+00> : vector<8x90xf32>
    %85 = tpu.matmul %1, %84, %cst_52 {dimension_numbers = #tpu.dot_dimension_numbers<[1], [0], [0], [1], [0, 0, 1, 1], [], []>} : vector<8x90xbf16>, vector<90x90xbf16>, vector<8x90xf32> -> vector<8x90xf32>
    %86 = arith.truncf %76 : vector<8x30xf32> to vector<8x30xbf16>
    %87 = arith.truncf %82 : vector<8x30xf32> to vector<8x30xbf16>
    %cst_53 = arith.constant dense<0.000000e+00> : vector<8x8xf32>
    %88 = tpu.matmul %86, %87, %cst_53 {dimension_numbers = #tpu.dot_dimension_numbers<[1], [1], [0], [0], [0, 0, 1, 0], [], []>} : vector<8x30xbf16>, vector<8x30xbf16>, vector<8x8xf32> -> vector<8x8xf32>
    %cst_54 = arith.constant dense<0xFF800000> : vector<8xf32>
    %89 = vector.multi_reduction <maximumf>, %88, %cst_54 [1] : vector<8x8xf32> to vector<8xf32>
    %90 = vector.shape_cast %89 : vector<8xf32> to vector<8x1xf32>
    %91 = vector.broadcast %90 : vector<8x1xf32> to vector<8x8xf32>
    %92 = arith.subf %88, %91 : vector<8x8xf32>
    %93 = math.exp %92 : vector<8x8xf32>
    %cst_55 = arith.constant dense<0.000000e+00> : vector<8xf32>
    %94 = vector.multi_reduction <add>, %93, %cst_55 [1] : vector<8x8xf32> to vector<8xf32>
    %95 = vector.shape_cast %94 : vector<8xf32> to vector<8x1xf32>
    %96 = tpu.reciprocal %95 {approx = true} : vector<8x1xf32> -> vector<8x1xf32>
    %97 = vector.broadcast %96 : vector<8x1xf32> to vector<8x8xf32>
    %98 = arith.mulf %93, %97 : vector<8x8xf32>
    %99 = arith.truncf %98 : vector<8x8xf32> to vector<8x8xbf16>
    %100 = arith.truncf %85 : vector<8x90xf32> to vector<8x90xbf16>
    %cst_56 = arith.constant dense<0.000000e+00> : vector<8x90xf32>
    %101 = tpu.matmul %99, %100, %cst_56 {dimension_numbers = #tpu.dot_dimension_numbers<[1], [0], [0], [1], [0, 0, 1, 1], [], []>} : vector<8x8xbf16>, vector<8x90xbf16>, vector<8x90xf32> -> vector<8x90xf32>
    %c20 = arith.constant 20 : index
    %c0_57 = arith.constant 0 : index
    %102 = vector.load %arg6[%c20, %c0_57] : memref<49x128xf32, #tpu.memory_space<vmem>>, vector<1x90xf32>
    %103 = vector.broadcast %102 : vector<1x90xf32> to vector<8x90xf32>
    %104 = arith.addf %101, %103 : vector<8x90xf32>
    %105 = arith.addf %70, %104 : vector<8x90xf32>
    %106 = arith.addf %0, %105 : vector<8x90xf32>
    %c27 = arith.constant 27 : index
    %c0_58 = arith.constant 0 : index
    %107 = vector.load %arg6[%c27, %c0_58] : memref<49x128xf32, #tpu.memory_space<vmem>>, vector<1x90xf32>
    %108 = vector.broadcast %107 : vector<1x90xf32> to vector<8x90xf32>
    %109 = arith.addf %106, %108 : vector<8x90xf32>
    %c30 = arith.constant 30 : index
    %c0_59 = arith.constant 0 : index
    %110 = vector.load %arg6[%c30, %c0_59] : memref<49x128xf32, #tpu.memory_space<vmem>>, vector<1x90xf32>
    %c33 = arith.constant 33 : index
    %c0_60 = arith.constant 0 : index
    %111 = vector.load %arg6[%c33, %c0_60] : memref<49x128xf32, #tpu.memory_space<vmem>>, vector<1x90xf32>
    %cst_61 = arith.constant dense<0.000000e+00> : vector<8xf32>
    %112 = vector.multi_reduction <add>, %109, %cst_61 [1] : vector<8x90xf32> to vector<8xf32>
    %113 = vector.shape_cast %112 : vector<8xf32> to vector<8x1xf32>
    %cst_62 = arith.constant 9.000000e+01 : f32
    %114 = vector.broadcast %cst_62 : f32 to vector<8x1xf32>
    %115 = arith.divf %113, %114 : vector<8x1xf32>
    %116 = vector.broadcast %115 : vector<8x1xf32> to vector<8x90xf32>
    %117 = arith.subf %109, %116 : vector<8x90xf32>
    %118 = arith.mulf %117, %117 : vector<8x90xf32>
    %cst_63 = arith.constant dense<0.000000e+00> : vector<8xf32>
    %119 = vector.multi_reduction <add>, %118, %cst_63 [1] : vector<8x90xf32> to vector<8xf32>
    %120 = vector.shape_cast %119 : vector<8xf32> to vector<8x1xf32>
    %cst_64 = arith.constant 9.000000e+01 : f32
    %121 = vector.broadcast %cst_64 : f32 to vector<8x1xf32>
    %122 = arith.divf %120, %121 : vector<8x1xf32>
    %123 = vector.broadcast %115 : vector<8x1xf32> to vector<8x90xf32>
    %124 = arith.subf %109, %123 : vector<8x90xf32>
    %cst_65 = arith.constant 9.99999974E-6 : f32
    %125 = vector.broadcast %cst_65 : f32 to vector<8x1xf32>
    %126 = arith.addf %122, %125 : vector<8x1xf32>
    %127 = math.rsqrt %126 : vector<8x1xf32>
    %128 = vector.broadcast %127 : vector<8x1xf32> to vector<8x90xf32>
    %129 = arith.mulf %124, %128 : vector<8x90xf32>
    %130 = vector.broadcast %110 : vector<1x90xf32> to vector<8x90xf32>
    %131 = arith.mulf %129, %130 : vector<8x90xf32>
    %132 = vector.broadcast %111 : vector<1x90xf32> to vector<8x90xf32>
    %133 = arith.addf %131, %132 : vector<8x90xf32>
    %134 = arith.truncf %133 : vector<8x90xf32> to vector<8x90xbf16>
    %c0_66 = arith.constant 0 : index
    %c0_67 = arith.constant 0 : index
    %c0_68 = arith.constant 0 : index
    %135 = vector.load %arg3[%c0_66, %c0_67, %c0_68] : memref<3x90x128xbf16, #tpu.memory_space<vmem>>, vector<1x90x128xbf16>
    %136 = vector.shape_cast %135 : vector<1x90x128xbf16> to vector<90x128xbf16>
    %cst_69 = arith.constant dense<0.000000e+00> : vector<8x128xf32>
    %137 = tpu.matmul %134, %136, %cst_69 {dimension_numbers = #tpu.dot_dimension_numbers<[1], [0], [0], [1], [0, 0, 1, 1], [], []>} : vector<8x90xbf16>, vector<90x128xbf16>, vector<8x128xf32> -> vector<8x128xf32>
    %c36 = arith.constant 36 : index
    %c0_70 = arith.constant 0 : index
    %138 = vector.load %arg6[%c36, %c0_70] : memref<49x128xf32, #tpu.memory_space<vmem>>, vector<1x128xf32>
    %139 = vector.broadcast %138 : vector<1x128xf32> to vector<8x128xf32>
    %140 = arith.addf %137, %139 : vector<8x128xf32>
    %cst_71 = arith.constant 0.000000e+00 : f32
    %141 = vector.broadcast %cst_71 : f32 to vector<8x128xf32>
    %142 = arith.maximumf %140, %141 : vector<8x128xf32>
    %143 = arith.truncf %142 : vector<8x128xf32> to vector<8x128xbf16>
    %c0_72 = arith.constant 0 : index
    %c0_73 = arith.constant 0 : index
    %c0_74 = arith.constant 0 : index
    %144 = vector.load %arg4[%c0_72, %c0_73, %c0_74] : memref<3x128x90xbf16, #tpu.memory_space<vmem>>, vector<1x128x90xbf16>
    %145 = vector.shape_cast %144 : vector<1x128x90xbf16> to vector<128x90xbf16>
    %cst_75 = arith.constant dense<0.000000e+00> : vector<8x90xf32>
    %146 = tpu.matmul %143, %145, %cst_75 {dimension_numbers = #tpu.dot_dimension_numbers<[1], [0], [0], [1], [0, 0, 1, 1], [], []>} : vector<8x128xbf16>, vector<128x90xbf16>, vector<8x90xf32> -> vector<8x90xf32>
    %c39 = arith.constant 39 : index
    %c0_76 = arith.constant 0 : index
    %147 = vector.load %arg6[%c39, %c0_76] : memref<49x128xf32, #tpu.memory_space<vmem>>, vector<1x90xf32>
    %148 = vector.broadcast %147 : vector<1x90xf32> to vector<8x90xf32>
    %149 = arith.addf %146, %148 : vector<8x90xf32>
    %150 = arith.addf %133, %149 : vector<8x90xf32>
    %c42 = arith.constant 42 : index
    %c0_77 = arith.constant 0 : index
    %151 = vector.load %arg6[%c42, %c0_77] : memref<49x128xf32, #tpu.memory_space<vmem>>, vector<1x90xf32>
    %c45 = arith.constant 45 : index
    %c0_78 = arith.constant 0 : index
    %152 = vector.load %arg6[%c45, %c0_78] : memref<49x128xf32, #tpu.memory_space<vmem>>, vector<1x90xf32>
    %cst_79 = arith.constant dense<0.000000e+00> : vector<8xf32>
    %153 = vector.multi_reduction <add>, %150, %cst_79 [1] : vector<8x90xf32> to vector<8xf32>
    %154 = vector.shape_cast %153 : vector<8xf32> to vector<8x1xf32>
    %cst_80 = arith.constant 9.000000e+01 : f32
    %155 = vector.broadcast %cst_80 : f32 to vector<8x1xf32>
    %156 = arith.divf %154, %155 : vector<8x1xf32>
    %157 = vector.broadcast %156 : vector<8x1xf32> to vector<8x90xf32>
    %158 = arith.subf %150, %157 : vector<8x90xf32>
    %159 = arith.mulf %158, %158 : vector<8x90xf32>
    %cst_81 = arith.constant dense<0.000000e+00> : vector<8xf32>
    %160 = vector.multi_reduction <add>, %159, %cst_81 [1] : vector<8x90xf32> to vector<8xf32>
    %161 = vector.shape_cast %160 : vector<8xf32> to vector<8x1xf32>
    %cst_82 = arith.constant 9.000000e+01 : f32
    %162 = vector.broadcast %cst_82 : f32 to vector<8x1xf32>
    %163 = arith.divf %161, %162 : vector<8x1xf32>
    %164 = vector.broadcast %156 : vector<8x1xf32> to vector<8x90xf32>
    %165 = arith.subf %150, %164 : vector<8x90xf32>
    %cst_83 = arith.constant 9.99999974E-6 : f32
    %166 = vector.broadcast %cst_83 : f32 to vector<8x1xf32>
    %167 = arith.addf %163, %166 : vector<8x1xf32>
    %168 = math.rsqrt %167 : vector<8x1xf32>
    %169 = vector.broadcast %168 : vector<8x1xf32> to vector<8x90xf32>
    %170 = arith.mulf %165, %169 : vector<8x90xf32>
    %171 = vector.broadcast %151 : vector<1x90xf32> to vector<8x90xf32>
    %172 = arith.mulf %170, %171 : vector<8x90xf32>
    %173 = vector.broadcast %152 : vector<1x90xf32> to vector<8x90xf32>
    %174 = arith.addf %172, %173 : vector<8x90xf32>
    %175 = arith.truncf %174 : vector<8x90xf32> to vector<8x90xbf16>
    %c3 = arith.constant 3 : index
    %c0_84 = arith.constant 0 : index
    %c0_85 = arith.constant 0 : index
    %176 = vector.load %arg1[%c3, %c0_84, %c0_85] : memref<18x90x30xbf16, #tpu.memory_space<vmem>>, vector<1x90x30xbf16>
    %177 = vector.shape_cast %176 : vector<1x90x30xbf16> to vector<90x30xbf16>
    %cst_86 = arith.constant dense<0.000000e+00> : vector<8x30xf32>
    %178 = tpu.matmul %175, %177, %cst_86 {dimension_numbers = #tpu.dot_dimension_numbers<[1], [0], [0], [1], [0, 0, 1, 1], [], []>} : vector<8x90xbf16>, vector<90x30xbf16>, vector<8x30xf32> -> vector<8x30xf32>
    %c3_87 = arith.constant 3 : index
    %c0_88 = arith.constant 0 : index
    %179 = vector.load %arg6[%c3_87, %c0_88] : memref<49x128xf32, #tpu.memory_space<vmem>>, vector<1x30xf32>
    %180 = vector.broadcast %179 : vector<1x30xf32> to vector<8x30xf32>
    %181 = arith.addf %178, %180 : vector<8x30xf32>
    %c12 = arith.constant 12 : index
    %c0_89 = arith.constant 0 : index
    %c0_90 = arith.constant 0 : index
    %182 = vector.load %arg1[%c12, %c0_89, %c0_90] : memref<18x90x30xbf16, #tpu.memory_space<vmem>>, vector<1x90x30xbf16>
    %183 = vector.shape_cast %182 : vector<1x90x30xbf16> to vector<90x30xbf16>
    %cst_91 = arith.constant dense<0.000000e+00> : vector<8x30xf32>
    %184 = tpu.matmul %175, %183, %cst_91 {dimension_numbers = #tpu.dot_dimension_numbers<[1], [0], [0], [1], [0, 0, 1, 1], [], []>} : vector<8x90xbf16>, vector<90x30xbf16>, vector<8x30xf32> -> vector<8x30xf32>
    %c12_92 = arith.constant 12 : index
    %c0_93 = arith.constant 0 : index
    %185 = vector.load %arg6[%c12_92, %c0_93] : memref<49x128xf32, #tpu.memory_space<vmem>>, vector<1x30xf32>
    %186 = vector.broadcast %185 : vector<1x30xf32> to vector<8x30xf32>
    %187 = arith.addf %184, %186 : vector<8x30xf32>
    %c3_94 = arith.constant 3 : index
    %c0_95 = arith.constant 0 : index
    %c0_96 = arith.constant 0 : index
    %188 = vector.load %arg2[%c3_94, %c0_95, %c0_96] : memref<9x90x90xbf16, #tpu.memory_space<vmem>>, vector<1x90x90xbf16>
    %189 = vector.shape_cast %188 : vector<1x90x90xbf16> to vector<90x90xbf16>
    %cst_97 = arith.constant dense<0.000000e+00> : vector<8x90xf32>
    %190 = tpu.matmul %175, %189, %cst_97 {dimension_numbers = #tpu.dot_dimension_numbers<[1], [0], [0], [1], [0, 0, 1, 1], [], []>} : vector<8x90xbf16>, vector<90x90xbf16>, vector<8x90xf32> -> vector<8x90xf32>
    %191 = arith.truncf %181 : vector<8x30xf32> to vector<8x30xbf16>
    %192 = arith.truncf %187 : vector<8x30xf32> to vector<8x30xbf16>
    %cst_98 = arith.constant dense<0.000000e+00> : vector<8x8xf32>
    %193 = tpu.matmul %191, %192, %cst_98 {dimension_numbers = #tpu.dot_dimension_numbers<[1], [1], [0], [0], [0, 0, 1, 0], [], []>} : vector<8x30xbf16>, vector<8x30xbf16>, vector<8x8xf32> -> vector<8x8xf32>
    %cst_99 = arith.constant dense<0xFF800000> : vector<8xf32>
    %194 = vector.multi_reduction <maximumf>, %193, %cst_99 [1] : vector<8x8xf32> to vector<8xf32>
    %195 = vector.shape_cast %194 : vector<8xf32> to vector<8x1xf32>
    %196 = vector.broadcast %195 : vector<8x1xf32> to vector<8x8xf32>
    %197 = arith.subf %193, %196 : vector<8x8xf32>
    %198 = math.exp %197 : vector<8x8xf32>
    %cst_100 = arith.constant dense<0.000000e+00> : vector<8xf32>
    %199 = vector.multi_reduction <add>, %198, %cst_100 [1] : vector<8x8xf32> to vector<8xf32>
    %200 = vector.shape_cast %199 : vector<8xf32> to vector<8x1xf32>
    %201 = tpu.reciprocal %200 {approx = true} : vector<8x1xf32> -> vector<8x1xf32>
    %202 = vector.broadcast %201 : vector<8x1xf32> to vector<8x8xf32>
    %203 = arith.mulf %198, %202 : vector<8x8xf32>
    %204 = arith.truncf %203 : vector<8x8xf32> to vector<8x8xbf16>
    %205 = arith.truncf %190 : vector<8x90xf32> to vector<8x90xbf16>
    %cst_101 = arith.constant dense<0.000000e+00> : vector<8x90xf32>
    %206 = tpu.matmul %204, %205, %cst_101 {dimension_numbers = #tpu.dot_dimension_numbers<[1], [0], [0], [1], [0, 0, 1, 1], [], []>} : vector<8x8xbf16>, vector<8x90xbf16>, vector<8x90xf32> -> vector<8x90xf32>
    %c21 = arith.constant 21 : index
    %c0_102 = arith.constant 0 : index
    %207 = vector.load %arg6[%c21, %c0_102] : memref<49x128xf32, #tpu.memory_space<vmem>>, vector<1x90xf32>
    %208 = vector.broadcast %207 : vector<1x90xf32> to vector<8x90xf32>
    %209 = arith.addf %206, %208 : vector<8x90xf32>
    %c4 = arith.constant 4 : index
    %c0_103 = arith.constant 0 : index
    %c0_104 = arith.constant 0 : index
    %210 = vector.load %arg1[%c4, %c0_103, %c0_104] : memref<18x90x30xbf16, #tpu.memory_space<vmem>>, vector<1x90x30xbf16>
    %211 = vector.shape_cast %210 : vector<1x90x30xbf16> to vector<90x30xbf16>
    %cst_105 = arith.constant dense<0.000000e+00> : vector<8x30xf32>
    %212 = tpu.matmul %175, %211, %cst_105 {dimension_numbers = #tpu.dot_dimension_numbers<[1], [0], [0], [1], [0, 0, 1, 1], [], []>} : vector<8x90xbf16>, vector<90x30xbf16>, vector<8x30xf32> -> vector<8x30xf32>
    %c4_106 = arith.constant 4 : index
    %c0_107 = arith.constant 0 : index
    %213 = vector.load %arg6[%c4_106, %c0_107] : memref<49x128xf32, #tpu.memory_space<vmem>>, vector<1x30xf32>
    %214 = vector.broadcast %213 : vector<1x30xf32> to vector<8x30xf32>
    %215 = arith.addf %212, %214 : vector<8x30xf32>
    %c13 = arith.constant 13 : index
    %c0_108 = arith.constant 0 : index
    %c0_109 = arith.constant 0 : index
    %216 = vector.load %arg1[%c13, %c0_108, %c0_109] : memref<18x90x30xbf16, #tpu.memory_space<vmem>>, vector<1x90x30xbf16>
    %217 = vector.shape_cast %216 : vector<1x90x30xbf16> to vector<90x30xbf16>
    %cst_110 = arith.constant dense<0.000000e+00> : vector<8x30xf32>
    %218 = tpu.matmul %175, %217, %cst_110 {dimension_numbers = #tpu.dot_dimension_numbers<[1], [0], [0], [1], [0, 0, 1, 1], [], []>} : vector<8x90xbf16>, vector<90x30xbf16>, vector<8x30xf32> -> vector<8x30xf32>
    %c13_111 = arith.constant 13 : index
    %c0_112 = arith.constant 0 : index
    %219 = vector.load %arg6[%c13_111, %c0_112] : memref<49x128xf32, #tpu.memory_space<vmem>>, vector<1x30xf32>
    %220 = vector.broadcast %219 : vector<1x30xf32> to vector<8x30xf32>
    %221 = arith.addf %218, %220 : vector<8x30xf32>
    %c4_113 = arith.constant 4 : index
    %c0_114 = arith.constant 0 : index
    %c0_115 = arith.constant 0 : index
    %222 = vector.load %arg2[%c4_113, %c0_114, %c0_115] : memref<9x90x90xbf16, #tpu.memory_space<vmem>>, vector<1x90x90xbf16>
    %223 = vector.shape_cast %222 : vector<1x90x90xbf16> to vector<90x90xbf16>
    %cst_116 = arith.constant dense<0.000000e+00> : vector<8x90xf32>
    %224 = tpu.matmul %175, %223, %cst_116 {dimension_numbers = #tpu.dot_dimension_numbers<[1], [0], [0], [1], [0, 0, 1, 1], [], []>} : vector<8x90xbf16>, vector<90x90xbf16>, vector<8x90xf32> -> vector<8x90xf32>
    %225 = arith.truncf %215 : vector<8x30xf32> to vector<8x30xbf16>
    %226 = arith.truncf %221 : vector<8x30xf32> to vector<8x30xbf16>
    %cst_117 = arith.constant dense<0.000000e+00> : vector<8x8xf32>
    %227 = tpu.matmul %225, %226, %cst_117 {dimension_numbers = #tpu.dot_dimension_numbers<[1], [1], [0], [0], [0, 0, 1, 0], [], []>} : vector<8x30xbf16>, vector<8x30xbf16>, vector<8x8xf32> -> vector<8x8xf32>
    %cst_118 = arith.constant dense<0xFF800000> : vector<8xf32>
    %228 = vector.multi_reduction <maximumf>, %227, %cst_118 [1] : vector<8x8xf32> to vector<8xf32>
    %229 = vector.shape_cast %228 : vector<8xf32> to vector<8x1xf32>
    %230 = vector.broadcast %229 : vector<8x1xf32> to vector<8x8xf32>
    %231 = arith.subf %227, %230 : vector<8x8xf32>
    %232 = math.exp %231 : vector<8x8xf32>
    %cst_119 = arith.constant dense<0.000000e+00> : vector<8xf32>
    %233 = vector.multi_reduction <add>, %232, %cst_119 [1] : vector<8x8xf32> to vector<8xf32>
    %234 = vector.shape_cast %233 : vector<8xf32> to vector<8x1xf32>
    %235 = tpu.reciprocal %234 {approx = true} : vector<8x1xf32> -> vector<8x1xf32>
    %236 = vector.broadcast %235 : vector<8x1xf32> to vector<8x8xf32>
    %237 = arith.mulf %232, %236 : vector<8x8xf32>
    %238 = arith.truncf %237 : vector<8x8xf32> to vector<8x8xbf16>
    %239 = arith.truncf %224 : vector<8x90xf32> to vector<8x90xbf16>
    %cst_120 = arith.constant dense<0.000000e+00> : vector<8x90xf32>
    %240 = tpu.matmul %238, %239, %cst_120 {dimension_numbers = #tpu.dot_dimension_numbers<[1], [0], [0], [1], [0, 0, 1, 1], [], []>} : vector<8x8xbf16>, vector<8x90xbf16>, vector<8x90xf32> -> vector<8x90xf32>
    %c22 = arith.constant 22 : index
    %c0_121 = arith.constant 0 : index
    %241 = vector.load %arg6[%c22, %c0_121] : memref<49x128xf32, #tpu.memory_space<vmem>>, vector<1x90xf32>
    %242 = vector.broadcast %241 : vector<1x90xf32> to vector<8x90xf32>
    %243 = arith.addf %240, %242 : vector<8x90xf32>
    %244 = arith.addf %209, %243 : vector<8x90xf32>
    %c5 = arith.constant 5 : index
    %c0_122 = arith.constant 0 : index
    %c0_123 = arith.constant 0 : index
    %245 = vector.load %arg1[%c5, %c0_122, %c0_123] : memref<18x90x30xbf16, #tpu.memory_space<vmem>>, vector<1x90x30xbf16>
    %246 = vector.shape_cast %245 : vector<1x90x30xbf16> to vector<90x30xbf16>
    %cst_124 = arith.constant dense<0.000000e+00> : vector<8x30xf32>
    %247 = tpu.matmul %175, %246, %cst_124 {dimension_numbers = #tpu.dot_dimension_numbers<[1], [0], [0], [1], [0, 0, 1, 1], [], []>} : vector<8x90xbf16>, vector<90x30xbf16>, vector<8x30xf32> -> vector<8x30xf32>
    %c5_125 = arith.constant 5 : index
    %c0_126 = arith.constant 0 : index
    %248 = vector.load %arg6[%c5_125, %c0_126] : memref<49x128xf32, #tpu.memory_space<vmem>>, vector<1x30xf32>
    %249 = vector.broadcast %248 : vector<1x30xf32> to vector<8x30xf32>
    %250 = arith.addf %247, %249 : vector<8x30xf32>
    %c14 = arith.constant 14 : index
    %c0_127 = arith.constant 0 : index
    %c0_128 = arith.constant 0 : index
    %251 = vector.load %arg1[%c14, %c0_127, %c0_128] : memref<18x90x30xbf16, #tpu.memory_space<vmem>>, vector<1x90x30xbf16>
    %252 = vector.shape_cast %251 : vector<1x90x30xbf16> to vector<90x30xbf16>
    %cst_129 = arith.constant dense<0.000000e+00> : vector<8x30xf32>
    %253 = tpu.matmul %175, %252, %cst_129 {dimension_numbers = #tpu.dot_dimension_numbers<[1], [0], [0], [1], [0, 0, 1, 1], [], []>} : vector<8x90xbf16>, vector<90x30xbf16>, vector<8x30xf32> -> vector<8x30xf32>
    %c14_130 = arith.constant 14 : index
    %c0_131 = arith.constant 0 : index
    %254 = vector.load %arg6[%c14_130, %c0_131] : memref<49x128xf32, #tpu.memory_space<vmem>>, vector<1x30xf32>
    %255 = vector.broadcast %254 : vector<1x30xf32> to vector<8x30xf32>
    %256 = arith.addf %253, %255 : vector<8x30xf32>
    %c5_132 = arith.constant 5 : index
    %c0_133 = arith.constant 0 : index
    %c0_134 = arith.constant 0 : index
    %257 = vector.load %arg2[%c5_132, %c0_133, %c0_134] : memref<9x90x90xbf16, #tpu.memory_space<vmem>>, vector<1x90x90xbf16>
    %258 = vector.shape_cast %257 : vector<1x90x90xbf16> to vector<90x90xbf16>
    %cst_135 = arith.constant dense<0.000000e+00> : vector<8x90xf32>
    %259 = tpu.matmul %175, %258, %cst_135 {dimension_numbers = #tpu.dot_dimension_numbers<[1], [0], [0], [1], [0, 0, 1, 1], [], []>} : vector<8x90xbf16>, vector<90x90xbf16>, vector<8x90xf32> -> vector<8x90xf32>
    %260 = arith.truncf %250 : vector<8x30xf32> to vector<8x30xbf16>
    %261 = arith.truncf %256 : vector<8x30xf32> to vector<8x30xbf16>
    %cst_136 = arith.constant dense<0.000000e+00> : vector<8x8xf32>
    %262 = tpu.matmul %260, %261, %cst_136 {dimension_numbers = #tpu.dot_dimension_numbers<[1], [1], [0], [0], [0, 0, 1, 0], [], []>} : vector<8x30xbf16>, vector<8x30xbf16>, vector<8x8xf32> -> vector<8x8xf32>
    %cst_137 = arith.constant dense<0xFF800000> : vector<8xf32>
    %263 = vector.multi_reduction <maximumf>, %262, %cst_137 [1] : vector<8x8xf32> to vector<8xf32>
    %264 = vector.shape_cast %263 : vector<8xf32> to vector<8x1xf32>
    %265 = vector.broadcast %264 : vector<8x1xf32> to vector<8x8xf32>
    %266 = arith.subf %262, %265 : vector<8x8xf32>
    %267 = math.exp %266 : vector<8x8xf32>
    %cst_138 = arith.constant dense<0.000000e+00> : vector<8xf32>
    %268 = vector.multi_reduction <add>, %267, %cst_138 [1] : vector<8x8xf32> to vector<8xf32>
    %269 = vector.shape_cast %268 : vector<8xf32> to vector<8x1xf32>
    %270 = tpu.reciprocal %269 {approx = true} : vector<8x1xf32> -> vector<8x1xf32>
    %271 = vector.broadcast %270 : vector<8x1xf32> to vector<8x8xf32>
    %272 = arith.mulf %267, %271 : vector<8x8xf32>
    %273 = arith.truncf %272 : vector<8x8xf32> to vector<8x8xbf16>
    %274 = arith.truncf %259 : vector<8x90xf32> to vector<8x90xbf16>
    %cst_139 = arith.constant dense<0.000000e+00> : vector<8x90xf32>
    %275 = tpu.matmul %273, %274, %cst_139 {dimension_numbers = #tpu.dot_dimension_numbers<[1], [0], [0], [1], [0, 0, 1, 1], [], []>} : vector<8x8xbf16>, vector<8x90xbf16>, vector<8x90xf32> -> vector<8x90xf32>
    %c23 = arith.constant 23 : index
    %c0_140 = arith.constant 0 : index
    %276 = vector.load %arg6[%c23, %c0_140] : memref<49x128xf32, #tpu.memory_space<vmem>>, vector<1x90xf32>
    %277 = vector.broadcast %276 : vector<1x90xf32> to vector<8x90xf32>
    %278 = arith.addf %275, %277 : vector<8x90xf32>
    %279 = arith.addf %244, %278 : vector<8x90xf32>
    %280 = arith.addf %174, %279 : vector<8x90xf32>
    %c28 = arith.constant 28 : index
    %c0_141 = arith.constant 0 : index
    %281 = vector.load %arg6[%c28, %c0_141] : memref<49x128xf32, #tpu.memory_space<vmem>>, vector<1x90xf32>
    %282 = vector.broadcast %281 : vector<1x90xf32> to vector<8x90xf32>
    %283 = arith.addf %280, %282 : vector<8x90xf32>
    %c31 = arith.constant 31 : index
    %c0_142 = arith.constant 0 : index
    %284 = vector.load %arg6[%c31, %c0_142] : memref<49x128xf32, #tpu.memory_space<vmem>>, vector<1x90xf32>
    %c34 = arith.constant 34 : index
    %c0_143 = arith.constant 0 : index
    %285 = vector.load %arg6[%c34, %c0_143] : memref<49x128xf32, #tpu.memory_space<vmem>>, vector<1x90xf32>
    %cst_144 = arith.constant dense<0.000000e+00> : vector<8xf32>
    %286 = vector.multi_reduction <add>, %283, %cst_144 [1] : vector<8x90xf32> to vector<8xf32>
    %287 = vector.shape_cast %286 : vector<8xf32> to vector<8x1xf32>
    %cst_145 = arith.constant 9.000000e+01 : f32
    %288 = vector.broadcast %cst_145 : f32 to vector<8x1xf32>
    %289 = arith.divf %287, %288 : vector<8x1xf32>
    %290 = vector.broadcast %289 : vector<8x1xf32> to vector<8x90xf32>
    %291 = arith.subf %283, %290 : vector<8x90xf32>
    %292 = arith.mulf %291, %291 : vector<8x90xf32>
    %cst_146 = arith.constant dense<0.000000e+00> : vector<8xf32>
    %293 = vector.multi_reduction <add>, %292, %cst_146 [1] : vector<8x90xf32> to vector<8xf32>
    %294 = vector.shape_cast %293 : vector<8xf32> to vector<8x1xf32>
    %cst_147 = arith.constant 9.000000e+01 : f32
    %295 = vector.broadcast %cst_147 : f32 to vector<8x1xf32>
    %296 = arith.divf %294, %295 : vector<8x1xf32>
    %297 = vector.broadcast %289 : vector<8x1xf32> to vector<8x90xf32>
    %298 = arith.subf %283, %297 : vector<8x90xf32>
    %cst_148 = arith.constant 9.99999974E-6 : f32
    %299 = vector.broadcast %cst_148 : f32 to vector<8x1xf32>
    %300 = arith.addf %296, %299 : vector<8x1xf32>
    %301 = math.rsqrt %300 : vector<8x1xf32>
    %302 = vector.broadcast %301 : vector<8x1xf32> to vector<8x90xf32>
    %303 = arith.mulf %298, %302 : vector<8x90xf32>
    %304 = vector.broadcast %284 : vector<1x90xf32> to vector<8x90xf32>
    %305 = arith.mulf %303, %304 : vector<8x90xf32>
    %306 = vector.broadcast %285 : vector<1x90xf32> to vector<8x90xf32>
    %307 = arith.addf %305, %306 : vector<8x90xf32>
    %308 = arith.truncf %307 : vector<8x90xf32> to vector<8x90xbf16>
    %c1_149 = arith.constant 1 : index
    %c0_150 = arith.constant 0 : index
    %c0_151 = arith.constant 0 : index
    %309 = vector.load %arg3[%c1_149, %c0_150, %c0_151] : memref<3x90x128xbf16, #tpu.memory_space<vmem>>, vector<1x90x128xbf16>
    %310 = vector.shape_cast %309 : vector<1x90x128xbf16> to vector<90x128xbf16>
    %cst_152 = arith.constant dense<0.000000e+00> : vector<8x128xf32>
    %311 = tpu.matmul %308, %310, %cst_152 {dimension_numbers = #tpu.dot_dimension_numbers<[1], [0], [0], [1], [0, 0, 1, 1], [], []>} : vector<8x90xbf16>, vector<90x128xbf16>, vector<8x128xf32> -> vector<8x128xf32>
    %c37 = arith.constant 37 : index
    %c0_153 = arith.constant 0 : index
    %312 = vector.load %arg6[%c37, %c0_153] : memref<49x128xf32, #tpu.memory_space<vmem>>, vector<1x128xf32>
    %313 = vector.broadcast %312 : vector<1x128xf32> to vector<8x128xf32>
    %314 = arith.addf %311, %313 : vector<8x128xf32>
    %cst_154 = arith.constant 0.000000e+00 : f32
    %315 = vector.broadcast %cst_154 : f32 to vector<8x128xf32>
    %316 = arith.maximumf %314, %315 : vector<8x128xf32>
    %317 = arith.truncf %316 : vector<8x128xf32> to vector<8x128xbf16>
    %c1_155 = arith.constant 1 : index
    %c0_156 = arith.constant 0 : index
    %c0_157 = arith.constant 0 : index
    %318 = vector.load %arg4[%c1_155, %c0_156, %c0_157] : memref<3x128x90xbf16, #tpu.memory_space<vmem>>, vector<1x128x90xbf16>
    %319 = vector.shape_cast %318 : vector<1x128x90xbf16> to vector<128x90xbf16>
    %cst_158 = arith.constant dense<0.000000e+00> : vector<8x90xf32>
    %320 = tpu.matmul %317, %319, %cst_158 {dimension_numbers = #tpu.dot_dimension_numbers<[1], [0], [0], [1], [0, 0, 1, 1], [], []>} : vector<8x128xbf16>, vector<128x90xbf16>, vector<8x90xf32> -> vector<8x90xf32>
    %c40 = arith.constant 40 : index
    %c0_159 = arith.constant 0 : index
    %321 = vector.load %arg6[%c40, %c0_159] : memref<49x128xf32, #tpu.memory_space<vmem>>, vector<1x90xf32>
    %322 = vector.broadcast %321 : vector<1x90xf32> to vector<8x90xf32>
    %323 = arith.addf %320, %322 : vector<8x90xf32>
    %324 = arith.addf %307, %323 : vector<8x90xf32>
    %c43 = arith.constant 43 : index
    %c0_160 = arith.constant 0 : index
    %325 = vector.load %arg6[%c43, %c0_160] : memref<49x128xf32, #tpu.memory_space<vmem>>, vector<1x90xf32>
    %c46 = arith.constant 46 : index
    %c0_161 = arith.constant 0 : index
    %326 = vector.load %arg6[%c46, %c0_161] : memref<49x128xf32, #tpu.memory_space<vmem>>, vector<1x90xf32>
    %cst_162 = arith.constant dense<0.000000e+00> : vector<8xf32>
    %327 = vector.multi_reduction <add>, %324, %cst_162 [1] : vector<8x90xf32> to vector<8xf32>
    %328 = vector.shape_cast %327 : vector<8xf32> to vector<8x1xf32>
    %cst_163 = arith.constant 9.000000e+01 : f32
    %329 = vector.broadcast %cst_163 : f32 to vector<8x1xf32>
    %330 = arith.divf %328, %329 : vector<8x1xf32>
    %331 = vector.broadcast %330 : vector<8x1xf32> to vector<8x90xf32>
    %332 = arith.subf %324, %331 : vector<8x90xf32>
    %333 = arith.mulf %332, %332 : vector<8x90xf32>
    %cst_164 = arith.constant dense<0.000000e+00> : vector<8xf32>
    %334 = vector.multi_reduction <add>, %333, %cst_164 [1] : vector<8x90xf32> to vector<8xf32>
    %335 = vector.shape_cast %334 : vector<8xf32> to vector<8x1xf32>
    %cst_165 = arith.constant 9.000000e+01 : f32
    %336 = vector.broadcast %cst_165 : f32 to vector<8x1xf32>
    %337 = arith.divf %335, %336 : vector<8x1xf32>
    %338 = vector.broadcast %330 : vector<8x1xf32> to vector<8x90xf32>
    %339 = arith.subf %324, %338 : vector<8x90xf32>
    %cst_166 = arith.constant 9.99999974E-6 : f32
    %340 = vector.broadcast %cst_166 : f32 to vector<8x1xf32>
    %341 = arith.addf %337, %340 : vector<8x1xf32>
    %342 = math.rsqrt %341 : vector<8x1xf32>
    %343 = vector.broadcast %342 : vector<8x1xf32> to vector<8x90xf32>
    %344 = arith.mulf %339, %343 : vector<8x90xf32>
    %345 = vector.broadcast %325 : vector<1x90xf32> to vector<8x90xf32>
    %346 = arith.mulf %344, %345 : vector<8x90xf32>
    %347 = vector.broadcast %326 : vector<1x90xf32> to vector<8x90xf32>
    %348 = arith.addf %346, %347 : vector<8x90xf32>
    %349 = arith.truncf %348 : vector<8x90xf32> to vector<8x90xbf16>
    %c6 = arith.constant 6 : index
    %c0_167 = arith.constant 0 : index
    %c0_168 = arith.constant 0 : index
    %350 = vector.load %arg1[%c6, %c0_167, %c0_168] : memref<18x90x30xbf16, #tpu.memory_space<vmem>>, vector<1x90x30xbf16>
    %351 = vector.shape_cast %350 : vector<1x90x30xbf16> to vector<90x30xbf16>
    %cst_169 = arith.constant dense<0.000000e+00> : vector<8x30xf32>
    %352 = tpu.matmul %349, %351, %cst_169 {dimension_numbers = #tpu.dot_dimension_numbers<[1], [0], [0], [1], [0, 0, 1, 1], [], []>} : vector<8x90xbf16>, vector<90x30xbf16>, vector<8x30xf32> -> vector<8x30xf32>
    %c6_170 = arith.constant 6 : index
    %c0_171 = arith.constant 0 : index
    %353 = vector.load %arg6[%c6_170, %c0_171] : memref<49x128xf32, #tpu.memory_space<vmem>>, vector<1x30xf32>
    %354 = vector.broadcast %353 : vector<1x30xf32> to vector<8x30xf32>
    %355 = arith.addf %352, %354 : vector<8x30xf32>
    %c15 = arith.constant 15 : index
    %c0_172 = arith.constant 0 : index
    %c0_173 = arith.constant 0 : index
    %356 = vector.load %arg1[%c15, %c0_172, %c0_173] : memref<18x90x30xbf16, #tpu.memory_space<vmem>>, vector<1x90x30xbf16>
    %357 = vector.shape_cast %356 : vector<1x90x30xbf16> to vector<90x30xbf16>
    %cst_174 = arith.constant dense<0.000000e+00> : vector<8x30xf32>
    %358 = tpu.matmul %349, %357, %cst_174 {dimension_numbers = #tpu.dot_dimension_numbers<[1], [0], [0], [1], [0, 0, 1, 1], [], []>} : vector<8x90xbf16>, vector<90x30xbf16>, vector<8x30xf32> -> vector<8x30xf32>
    %c15_175 = arith.constant 15 : index
    %c0_176 = arith.constant 0 : index
    %359 = vector.load %arg6[%c15_175, %c0_176] : memref<49x128xf32, #tpu.memory_space<vmem>>, vector<1x30xf32>
    %360 = vector.broadcast %359 : vector<1x30xf32> to vector<8x30xf32>
    %361 = arith.addf %358, %360 : vector<8x30xf32>
    %c6_177 = arith.constant 6 : index
    %c0_178 = arith.constant 0 : index
    %c0_179 = arith.constant 0 : index
    %362 = vector.load %arg2[%c6_177, %c0_178, %c0_179] : memref<9x90x90xbf16, #tpu.memory_space<vmem>>, vector<1x90x90xbf16>
    %363 = vector.shape_cast %362 : vector<1x90x90xbf16> to vector<90x90xbf16>
    %cst_180 = arith.constant dense<0.000000e+00> : vector<8x90xf32>
    %364 = tpu.matmul %349, %363, %cst_180 {dimension_numbers = #tpu.dot_dimension_numbers<[1], [0], [0], [1], [0, 0, 1, 1], [], []>} : vector<8x90xbf16>, vector<90x90xbf16>, vector<8x90xf32> -> vector<8x90xf32>
    %365 = arith.truncf %355 : vector<8x30xf32> to vector<8x30xbf16>
    %366 = arith.truncf %361 : vector<8x30xf32> to vector<8x30xbf16>
    %cst_181 = arith.constant dense<0.000000e+00> : vector<8x8xf32>
    %367 = tpu.matmul %365, %366, %cst_181 {dimension_numbers = #tpu.dot_dimension_numbers<[1], [1], [0], [0], [0, 0, 1, 0], [], []>} : vector<8x30xbf16>, vector<8x30xbf16>, vector<8x8xf32> -> vector<8x8xf32>
    %cst_182 = arith.constant dense<0xFF800000> : vector<8xf32>
    %368 = vector.multi_reduction <maximumf>, %367, %cst_182 [1] : vector<8x8xf32> to vector<8xf32>
    %369 = vector.shape_cast %368 : vector<8xf32> to vector<8x1xf32>
    %370 = vector.broadcast %369 : vector<8x1xf32> to vector<8x8xf32>
    %371 = arith.subf %367, %370 : vector<8x8xf32>
    %372 = math.exp %371 : vector<8x8xf32>
    %cst_183 = arith.constant dense<0.000000e+00> : vector<8xf32>
    %373 = vector.multi_reduction <add>, %372, %cst_183 [1] : vector<8x8xf32> to vector<8xf32>
    %374 = vector.shape_cast %373 : vector<8xf32> to vector<8x1xf32>
    %375 = tpu.reciprocal %374 {approx = true} : vector<8x1xf32> -> vector<8x1xf32>
    %376 = vector.broadcast %375 : vector<8x1xf32> to vector<8x8xf32>
    %377 = arith.mulf %372, %376 : vector<8x8xf32>
    %378 = arith.truncf %377 : vector<8x8xf32> to vector<8x8xbf16>
    %379 = arith.truncf %364 : vector<8x90xf32> to vector<8x90xbf16>
    %cst_184 = arith.constant dense<0.000000e+00> : vector<8x90xf32>
    %380 = tpu.matmul %378, %379, %cst_184 {dimension_numbers = #tpu.dot_dimension_numbers<[1], [0], [0], [1], [0, 0, 1, 1], [], []>} : vector<8x8xbf16>, vector<8x90xbf16>, vector<8x90xf32> -> vector<8x90xf32>
    %c24 = arith.constant 24 : index
    %c0_185 = arith.constant 0 : index
    %381 = vector.load %arg6[%c24, %c0_185] : memref<49x128xf32, #tpu.memory_space<vmem>>, vector<1x90xf32>
    %382 = vector.broadcast %381 : vector<1x90xf32> to vector<8x90xf32>
    %383 = arith.addf %380, %382 : vector<8x90xf32>
    %c7 = arith.constant 7 : index
    %c0_186 = arith.constant 0 : index
    %c0_187 = arith.constant 0 : index
    %384 = vector.load %arg1[%c7, %c0_186, %c0_187] : memref<18x90x30xbf16, #tpu.memory_space<vmem>>, vector<1x90x30xbf16>
    %385 = vector.shape_cast %384 : vector<1x90x30xbf16> to vector<90x30xbf16>
    %cst_188 = arith.constant dense<0.000000e+00> : vector<8x30xf32>
    %386 = tpu.matmul %349, %385, %cst_188 {dimension_numbers = #tpu.dot_dimension_numbers<[1], [0], [0], [1], [0, 0, 1, 1], [], []>} : vector<8x90xbf16>, vector<90x30xbf16>, vector<8x30xf32> -> vector<8x30xf32>
    %c7_189 = arith.constant 7 : index
    %c0_190 = arith.constant 0 : index
    %387 = vector.load %arg6[%c7_189, %c0_190] : memref<49x128xf32, #tpu.memory_space<vmem>>, vector<1x30xf32>
    %388 = vector.broadcast %387 : vector<1x30xf32> to vector<8x30xf32>
    %389 = arith.addf %386, %388 : vector<8x30xf32>
    %c16 = arith.constant 16 : index
    %c0_191 = arith.constant 0 : index
    %c0_192 = arith.constant 0 : index
    %390 = vector.load %arg1[%c16, %c0_191, %c0_192] : memref<18x90x30xbf16, #tpu.memory_space<vmem>>, vector<1x90x30xbf16>
    %391 = vector.shape_cast %390 : vector<1x90x30xbf16> to vector<90x30xbf16>
    %cst_193 = arith.constant dense<0.000000e+00> : vector<8x30xf32>
    %392 = tpu.matmul %349, %391, %cst_193 {dimension_numbers = #tpu.dot_dimension_numbers<[1], [0], [0], [1], [0, 0, 1, 1], [], []>} : vector<8x90xbf16>, vector<90x30xbf16>, vector<8x30xf32> -> vector<8x30xf32>
    %c16_194 = arith.constant 16 : index
    %c0_195 = arith.constant 0 : index
    %393 = vector.load %arg6[%c16_194, %c0_195] : memref<49x128xf32, #tpu.memory_space<vmem>>, vector<1x30xf32>
    %394 = vector.broadcast %393 : vector<1x30xf32> to vector<8x30xf32>
    %395 = arith.addf %392, %394 : vector<8x30xf32>
    %c7_196 = arith.constant 7 : index
    %c0_197 = arith.constant 0 : index
    %c0_198 = arith.constant 0 : index
    %396 = vector.load %arg2[%c7_196, %c0_197, %c0_198] : memref<9x90x90xbf16, #tpu.memory_space<vmem>>, vector<1x90x90xbf16>
    %397 = vector.shape_cast %396 : vector<1x90x90xbf16> to vector<90x90xbf16>
    %cst_199 = arith.constant dense<0.000000e+00> : vector<8x90xf32>
    %398 = tpu.matmul %349, %397, %cst_199 {dimension_numbers = #tpu.dot_dimension_numbers<[1], [0], [0], [1], [0, 0, 1, 1], [], []>} : vector<8x90xbf16>, vector<90x90xbf16>, vector<8x90xf32> -> vector<8x90xf32>
    %399 = arith.truncf %389 : vector<8x30xf32> to vector<8x30xbf16>
    %400 = arith.truncf %395 : vector<8x30xf32> to vector<8x30xbf16>
    %cst_200 = arith.constant dense<0.000000e+00> : vector<8x8xf32>
    %401 = tpu.matmul %399, %400, %cst_200 {dimension_numbers = #tpu.dot_dimension_numbers<[1], [1], [0], [0], [0, 0, 1, 0], [], []>} : vector<8x30xbf16>, vector<8x30xbf16>, vector<8x8xf32> -> vector<8x8xf32>
    %cst_201 = arith.constant dense<0xFF800000> : vector<8xf32>
    %402 = vector.multi_reduction <maximumf>, %401, %cst_201 [1] : vector<8x8xf32> to vector<8xf32>
    %403 = vector.shape_cast %402 : vector<8xf32> to vector<8x1xf32>
    %404 = vector.broadcast %403 : vector<8x1xf32> to vector<8x8xf32>
    %405 = arith.subf %401, %404 : vector<8x8xf32>
    %406 = math.exp %405 : vector<8x8xf32>
    %cst_202 = arith.constant dense<0.000000e+00> : vector<8xf32>
    %407 = vector.multi_reduction <add>, %406, %cst_202 [1] : vector<8x8xf32> to vector<8xf32>
    %408 = vector.shape_cast %407 : vector<8xf32> to vector<8x1xf32>
    %409 = tpu.reciprocal %408 {approx = true} : vector<8x1xf32> -> vector<8x1xf32>
    %410 = vector.broadcast %409 : vector<8x1xf32> to vector<8x8xf32>
    %411 = arith.mulf %406, %410 : vector<8x8xf32>
    %412 = arith.truncf %411 : vector<8x8xf32> to vector<8x8xbf16>
    %413 = arith.truncf %398 : vector<8x90xf32> to vector<8x90xbf16>
    %cst_203 = arith.constant dense<0.000000e+00> : vector<8x90xf32>
    %414 = tpu.matmul %412, %413, %cst_203 {dimension_numbers = #tpu.dot_dimension_numbers<[1], [0], [0], [1], [0, 0, 1, 1], [], []>} : vector<8x8xbf16>, vector<8x90xbf16>, vector<8x90xf32> -> vector<8x90xf32>
    %c25 = arith.constant 25 : index
    %c0_204 = arith.constant 0 : index
    %415 = vector.load %arg6[%c25, %c0_204] : memref<49x128xf32, #tpu.memory_space<vmem>>, vector<1x90xf32>
    %416 = vector.broadcast %415 : vector<1x90xf32> to vector<8x90xf32>
    %417 = arith.addf %414, %416 : vector<8x90xf32>
    %418 = arith.addf %383, %417 : vector<8x90xf32>
    %c8 = arith.constant 8 : index
    %c0_205 = arith.constant 0 : index
    %c0_206 = arith.constant 0 : index
    %419 = vector.load %arg1[%c8, %c0_205, %c0_206] : memref<18x90x30xbf16, #tpu.memory_space<vmem>>, vector<1x90x30xbf16>
    %420 = vector.shape_cast %419 : vector<1x90x30xbf16> to vector<90x30xbf16>
    %cst_207 = arith.constant dense<0.000000e+00> : vector<8x30xf32>
    %421 = tpu.matmul %349, %420, %cst_207 {dimension_numbers = #tpu.dot_dimension_numbers<[1], [0], [0], [1], [0, 0, 1, 1], [], []>} : vector<8x90xbf16>, vector<90x30xbf16>, vector<8x30xf32> -> vector<8x30xf32>
    %c8_208 = arith.constant 8 : index
    %c0_209 = arith.constant 0 : index
    %422 = vector.load %arg6[%c8_208, %c0_209] : memref<49x128xf32, #tpu.memory_space<vmem>>, vector<1x30xf32>
    %423 = vector.broadcast %422 : vector<1x30xf32> to vector<8x30xf32>
    %424 = arith.addf %421, %423 : vector<8x30xf32>
    %c17 = arith.constant 17 : index
    %c0_210 = arith.constant 0 : index
    %c0_211 = arith.constant 0 : index
    %425 = vector.load %arg1[%c17, %c0_210, %c0_211] : memref<18x90x30xbf16, #tpu.memory_space<vmem>>, vector<1x90x30xbf16>
    %426 = vector.shape_cast %425 : vector<1x90x30xbf16> to vector<90x30xbf16>
    %cst_212 = arith.constant dense<0.000000e+00> : vector<8x30xf32>
    %427 = tpu.matmul %349, %426, %cst_212 {dimension_numbers = #tpu.dot_dimension_numbers<[1], [0], [0], [1], [0, 0, 1, 1], [], []>} : vector<8x90xbf16>, vector<90x30xbf16>, vector<8x30xf32> -> vector<8x30xf32>
    %c17_213 = arith.constant 17 : index
    %c0_214 = arith.constant 0 : index
    %428 = vector.load %arg6[%c17_213, %c0_214] : memref<49x128xf32, #tpu.memory_space<vmem>>, vector<1x30xf32>
    %429 = vector.broadcast %428 : vector<1x30xf32> to vector<8x30xf32>
    %430 = arith.addf %427, %429 : vector<8x30xf32>
    %c8_215 = arith.constant 8 : index
    %c0_216 = arith.constant 0 : index
    %c0_217 = arith.constant 0 : index
    %431 = vector.load %arg2[%c8_215, %c0_216, %c0_217] : memref<9x90x90xbf16, #tpu.memory_space<vmem>>, vector<1x90x90xbf16>
    %432 = vector.shape_cast %431 : vector<1x90x90xbf16> to vector<90x90xbf16>
    %cst_218 = arith.constant dense<0.000000e+00> : vector<8x90xf32>
    %433 = tpu.matmul %349, %432, %cst_218 {dimension_numbers = #tpu.dot_dimension_numbers<[1], [0], [0], [1], [0, 0, 1, 1], [], []>} : vector<8x90xbf16>, vector<90x90xbf16>, vector<8x90xf32> -> vector<8x90xf32>
    %434 = arith.truncf %424 : vector<8x30xf32> to vector<8x30xbf16>
    %435 = arith.truncf %430 : vector<8x30xf32> to vector<8x30xbf16>
    %cst_219 = arith.constant dense<0.000000e+00> : vector<8x8xf32>
    %436 = tpu.matmul %434, %435, %cst_219 {dimension_numbers = #tpu.dot_dimension_numbers<[1], [1], [0], [0], [0, 0, 1, 0], [], []>} : vector<8x30xbf16>, vector<8x30xbf16>, vector<8x8xf32> -> vector<8x8xf32>
    %cst_220 = arith.constant dense<0xFF800000> : vector<8xf32>
    %437 = vector.multi_reduction <maximumf>, %436, %cst_220 [1] : vector<8x8xf32> to vector<8xf32>
    %438 = vector.shape_cast %437 : vector<8xf32> to vector<8x1xf32>
    %439 = vector.broadcast %438 : vector<8x1xf32> to vector<8x8xf32>
    %440 = arith.subf %436, %439 : vector<8x8xf32>
    %441 = math.exp %440 : vector<8x8xf32>
    %cst_221 = arith.constant dense<0.000000e+00> : vector<8xf32>
    %442 = vector.multi_reduction <add>, %441, %cst_221 [1] : vector<8x8xf32> to vector<8xf32>
    %443 = vector.shape_cast %442 : vector<8xf32> to vector<8x1xf32>
    %444 = tpu.reciprocal %443 {approx = true} : vector<8x1xf32> -> vector<8x1xf32>
    %445 = vector.broadcast %444 : vector<8x1xf32> to vector<8x8xf32>
    %446 = arith.mulf %441, %445 : vector<8x8xf32>
    %447 = arith.truncf %446 : vector<8x8xf32> to vector<8x8xbf16>
    %448 = arith.truncf %433 : vector<8x90xf32> to vector<8x90xbf16>
    %cst_222 = arith.constant dense<0.000000e+00> : vector<8x90xf32>
    %449 = tpu.matmul %447, %448, %cst_222 {dimension_numbers = #tpu.dot_dimension_numbers<[1], [0], [0], [1], [0, 0, 1, 1], [], []>} : vector<8x8xbf16>, vector<8x90xbf16>, vector<8x90xf32> -> vector<8x90xf32>
    %c26 = arith.constant 26 : index
    %c0_223 = arith.constant 0 : index
    %450 = vector.load %arg6[%c26, %c0_223] : memref<49x128xf32, #tpu.memory_space<vmem>>, vector<1x90xf32>
    %451 = vector.broadcast %450 : vector<1x90xf32> to vector<8x90xf32>
    %452 = arith.addf %449, %451 : vector<8x90xf32>
    %453 = arith.addf %418, %452 : vector<8x90xf32>
    %454 = arith.addf %348, %453 : vector<8x90xf32>
    %c29 = arith.constant 29 : index
    %c0_224 = arith.constant 0 : index
    %455 = vector.load %arg6[%c29, %c0_224] : memref<49x128xf32, #tpu.memory_space<vmem>>, vector<1x90xf32>
    %456 = vector.broadcast %455 : vector<1x90xf32> to vector<8x90xf32>
    %457 = arith.addf %454, %456 : vector<8x90xf32>
    %c32 = arith.constant 32 : index
    %c0_225 = arith.constant 0 : index
    %458 = vector.load %arg6[%c32, %c0_225] : memref<49x128xf32, #tpu.memory_space<vmem>>, vector<1x90xf32>
    %c35 = arith.constant 35 : index
    %c0_226 = arith.constant 0 : index
    %459 = vector.load %arg6[%c35, %c0_226] : memref<49x128xf32, #tpu.memory_space<vmem>>, vector<1x90xf32>
    %cst_227 = arith.constant dense<0.000000e+00> : vector<8xf32>
    %460 = vector.multi_reduction <add>, %457, %cst_227 [1] : vector<8x90xf32> to vector<8xf32>
    %461 = vector.shape_cast %460 : vector<8xf32> to vector<8x1xf32>
    %cst_228 = arith.constant 9.000000e+01 : f32
    %462 = vector.broadcast %cst_228 : f32 to vector<8x1xf32>
    %463 = arith.divf %461, %462 : vector<8x1xf32>
    %464 = vector.broadcast %463 : vector<8x1xf32> to vector<8x90xf32>
    %465 = arith.subf %457, %464 : vector<8x90xf32>
    %466 = arith.mulf %465, %465 : vector<8x90xf32>
    %cst_229 = arith.constant dense<0.000000e+00> : vector<8xf32>
    %467 = vector.multi_reduction <add>, %466, %cst_229 [1] : vector<8x90xf32> to vector<8xf32>
    %468 = vector.shape_cast %467 : vector<8xf32> to vector<8x1xf32>
    %cst_230 = arith.constant 9.000000e+01 : f32
    %469 = vector.broadcast %cst_230 : f32 to vector<8x1xf32>
    %470 = arith.divf %468, %469 : vector<8x1xf32>
    %471 = vector.broadcast %463 : vector<8x1xf32> to vector<8x90xf32>
    %472 = arith.subf %457, %471 : vector<8x90xf32>
    %cst_231 = arith.constant 9.99999974E-6 : f32
    %473 = vector.broadcast %cst_231 : f32 to vector<8x1xf32>
    %474 = arith.addf %470, %473 : vector<8x1xf32>
    %475 = math.rsqrt %474 : vector<8x1xf32>
    %476 = vector.broadcast %475 : vector<8x1xf32> to vector<8x90xf32>
    %477 = arith.mulf %472, %476 : vector<8x90xf32>
    %478 = vector.broadcast %458 : vector<1x90xf32> to vector<8x90xf32>
    %479 = arith.mulf %477, %478 : vector<8x90xf32>
    %480 = vector.broadcast %459 : vector<1x90xf32> to vector<8x90xf32>
    %481 = arith.addf %479, %480 : vector<8x90xf32>
    %482 = arith.truncf %481 : vector<8x90xf32> to vector<8x90xbf16>
    %c2_232 = arith.constant 2 : index
    %c0_233 = arith.constant 0 : index
    %c0_234 = arith.constant 0 : index
    %483 = vector.load %arg3[%c2_232, %c0_233, %c0_234] : memref<3x90x128xbf16, #tpu.memory_space<vmem>>, vector<1x90x128xbf16>
    %484 = vector.shape_cast %483 : vector<1x90x128xbf16> to vector<90x128xbf16>
    %cst_235 = arith.constant dense<0.000000e+00> : vector<8x128xf32>
    %485 = tpu.matmul %482, %484, %cst_235 {dimension_numbers = #tpu.dot_dimension_numbers<[1], [0], [0], [1], [0, 0, 1, 1], [], []>} : vector<8x90xbf16>, vector<90x128xbf16>, vector<8x128xf32> -> vector<8x128xf32>
    %c38 = arith.constant 38 : index
    %c0_236 = arith.constant 0 : index
    %486 = vector.load %arg6[%c38, %c0_236] : memref<49x128xf32, #tpu.memory_space<vmem>>, vector<1x128xf32>
    %487 = vector.broadcast %486 : vector<1x128xf32> to vector<8x128xf32>
    %488 = arith.addf %485, %487 : vector<8x128xf32>
    %cst_237 = arith.constant 0.000000e+00 : f32
    %489 = vector.broadcast %cst_237 : f32 to vector<8x128xf32>
    %490 = arith.maximumf %488, %489 : vector<8x128xf32>
    %491 = arith.truncf %490 : vector<8x128xf32> to vector<8x128xbf16>
    %c2_238 = arith.constant 2 : index
    %c0_239 = arith.constant 0 : index
    %c0_240 = arith.constant 0 : index
    %492 = vector.load %arg4[%c2_238, %c0_239, %c0_240] : memref<3x128x90xbf16, #tpu.memory_space<vmem>>, vector<1x128x90xbf16>
    %493 = vector.shape_cast %492 : vector<1x128x90xbf16> to vector<128x90xbf16>
    %cst_241 = arith.constant dense<0.000000e+00> : vector<8x90xf32>
    %494 = tpu.matmul %491, %493, %cst_241 {dimension_numbers = #tpu.dot_dimension_numbers<[1], [0], [0], [1], [0, 0, 1, 1], [], []>} : vector<8x128xbf16>, vector<128x90xbf16>, vector<8x90xf32> -> vector<8x90xf32>
    %c41 = arith.constant 41 : index
    %c0_242 = arith.constant 0 : index
    %495 = vector.load %arg6[%c41, %c0_242] : memref<49x128xf32, #tpu.memory_space<vmem>>, vector<1x90xf32>
    %496 = vector.broadcast %495 : vector<1x90xf32> to vector<8x90xf32>
    %497 = arith.addf %494, %496 : vector<8x90xf32>
    %498 = arith.addf %481, %497 : vector<8x90xf32>
    %c44 = arith.constant 44 : index
    %c0_243 = arith.constant 0 : index
    %499 = vector.load %arg6[%c44, %c0_243] : memref<49x128xf32, #tpu.memory_space<vmem>>, vector<1x90xf32>
    %c47 = arith.constant 47 : index
    %c0_244 = arith.constant 0 : index
    %500 = vector.load %arg6[%c47, %c0_244] : memref<49x128xf32, #tpu.memory_space<vmem>>, vector<1x90xf32>
    %cst_245 = arith.constant dense<0.000000e+00> : vector<8xf32>
    %501 = vector.multi_reduction <add>, %498, %cst_245 [1] : vector<8x90xf32> to vector<8xf32>
    %502 = vector.shape_cast %501 : vector<8xf32> to vector<8x1xf32>
    %cst_246 = arith.constant 9.000000e+01 : f32
    %503 = vector.broadcast %cst_246 : f32 to vector<8x1xf32>
    %504 = arith.divf %502, %503 : vector<8x1xf32>
    %505 = vector.broadcast %504 : vector<8x1xf32> to vector<8x90xf32>
    %506 = arith.subf %498, %505 : vector<8x90xf32>
    %507 = arith.mulf %506, %506 : vector<8x90xf32>
    %cst_247 = arith.constant dense<0.000000e+00> : vector<8xf32>
    %508 = vector.multi_reduction <add>, %507, %cst_247 [1] : vector<8x90xf32> to vector<8xf32>
    %509 = vector.shape_cast %508 : vector<8xf32> to vector<8x1xf32>
    %cst_248 = arith.constant 9.000000e+01 : f32
    %510 = vector.broadcast %cst_248 : f32 to vector<8x1xf32>
    %511 = arith.divf %509, %510 : vector<8x1xf32>
    %512 = vector.broadcast %504 : vector<8x1xf32> to vector<8x90xf32>
    %513 = arith.subf %498, %512 : vector<8x90xf32>
    %cst_249 = arith.constant 9.99999974E-6 : f32
    %514 = vector.broadcast %cst_249 : f32 to vector<8x1xf32>
    %515 = arith.addf %511, %514 : vector<8x1xf32>
    %516 = math.rsqrt %515 : vector<8x1xf32>
    %517 = vector.broadcast %516 : vector<8x1xf32> to vector<8x90xf32>
    %518 = arith.mulf %513, %517 : vector<8x90xf32>
    %519 = vector.broadcast %499 : vector<1x90xf32> to vector<8x90xf32>
    %520 = arith.mulf %518, %519 : vector<8x90xf32>
    %521 = vector.broadcast %500 : vector<1x90xf32> to vector<8x90xf32>
    %522 = arith.addf %520, %521 : vector<8x90xf32>
    %523 = arith.truncf %522 : vector<8x90xf32> to vector<8x90xbf16>
    %c0_250 = arith.constant 0 : index
    %c0_251 = arith.constant 0 : index
    %524 = vector.load %arg5[%c0_250, %c0_251] : memref<90x8xbf16, #tpu.memory_space<vmem>>, vector<90x8xbf16>
    %cst_252 = arith.constant dense<0.000000e+00> : vector<8x8xf32>
    %525 = tpu.matmul %523, %524, %cst_252 {dimension_numbers = #tpu.dot_dimension_numbers<[1], [0], [0], [1], [0, 0, 1, 1], [], []>} : vector<8x90xbf16>, vector<90x8xbf16>, vector<8x8xf32> -> vector<8x8xf32>
    %c48 = arith.constant 48 : index
    %c0_253 = arith.constant 0 : index
    %526 = vector.load %arg6[%c48, %c0_253] : memref<49x128xf32, #tpu.memory_space<vmem>>, vector<1x8xf32>
    %527 = vector.broadcast %526 : vector<1x8xf32> to vector<8x8xf32>
    %528 = arith.addf %525, %527 : vector<8x8xf32>
    %c0_254 = arith.constant 0 : index
    %c0_255 = arith.constant 0 : index
    %529 = vector.load %arg7[%c0_254, %c0_255] : memref<8x8xf32, #tpu.memory_space<vmem>>, vector<8x8xf32>
    tpu.vector_store %arg7[%c0_254, %c0_255], %528 {strides = array<i32>} : memref<8x8xf32, #tpu.memory_space<vmem>>, vector<8x8xf32>,
    return
  }
}

</mosaic_0001>

<bundles_post_ra>
// kernel: agent_dql_forward.1
= control target key start
LH: loop header
LB: loop body
LE: loop exit
PB: predicated region body
PF: predicated region fallthrough
CT: control target
= control target key end

     0   :  { %vm86_vm0 = vcmask 1044480   ;;  %v6420_v0 = vmov 0.0   ;;  %vm6421_vm1 = vmmov 0   ;;  %vm82_vm2 = vcmask 736256   ;;  %s7779_s0 = inlined_call_operand.vmem [shape: f32[8,90], index: 0, kind: input, shape index: {}]   ;;  %s7780_s1 = inlined_call_operand.vmem [shape: bf16[18,90,30], index: 1, kind: input, shape index: {}]   ;;  %s7781_s2 = inlined_call_operand.vmem [shape: bf16[9,90,90], index: 2, kind: input, shape index: {}]   ;;  %s7782_s3 = inlined_call_operand.vmem [shape: bf16[3,90,128], index: 3, kind: input, shape index: {}]   ;;  %s7783_s4 = inlined_call_operand.vmem [shape: bf16[3,128,90], index: 4, kind: input, shape index: {}]   ;;  %s7784_s5 = inlined_call_operand.vmem [shape: bf16[90,8], index: 5, kind: input, shape index: {}]   ;;  %s7785_s6 = inlined_call_operand.vmem [shape: f32[49,128], index: 6, kind: input, shape index: {}]   ;;  %s7786_s7 = inlined_call_operand.hbm [shape: f32[8,8], index: 7, kind: output, shape index: {}]  }
   0x1   :  { %5488 = vmatprep.subr.bf16.mxu1 %v6420_v0  ;;  %v6139_v1 = vld [vmem:[%s7780_s1 + $0x1d8] sm:$0x1f]   ;;  %5472 = vmatprep.subr.bf16.mxu0 %v6420_v0  ;;  %v6140_v2 = vld [vmem:[%s7780_s1 + $0x28] sm:$0x1f]   ;;  %v6141_v5 = vld [vmem:[%s7780_s1 + $0x1d0] sm:$0xff]  }
   0x2   :  { %v184_v3 = vsel %vm86_vm0, %v6139_v1, 0  ;;  %v88_v4 = vsel %vm86_vm0, %v6140_v2, 0  ;;  %v6142_v6 = vld [vmem:[%s7780_s1 + $0x20] sm:$0xff]   ;;  %5500 = vmatprep.mubr.msk.bf16.mxu1 %vm6421_vm1, %v6420_v0  ;;  %5484 = vmatprep.mubr.msk.bf16.mxu0 %vm6421_vm1, %v6420_v0  ;;  %v6143_v7 = vld [vmem:[%s7780_s1 + $0x1c8] sm:$0xff]   ;;  %v6144_v8 = vld [vmem:[%s7780_s1 + $0x18] sm:$0xff]  }
   0x3   :  { %5489 = vmatpush3.bf16.msra.mxu1 %v184_v3  ;;  %5473 = vmatpush3.bf16.msra.mxu0 %v88_v4  ;;  %v6145_v9 = vld [vmem:[%s7780_s1 + $0x1c0] sm:$0xff]   ;;  %v6146_v10 = vld [vmem:[%s7780_s1 + $0x10] sm:$0xff]   ;;  %v6147_v11 = vld [vmem:[%s7780_s1 + $0x1b8] sm:$0xff]  }
   0x4   :  { %5490 = vmatprep.subr.bf16.mxu1 %v6420_v0  ;;  %5474 = vmatprep.subr.bf16.mxu0 %v6420_v0  ;;  %v6148_v12 = vld [vmem:[%s7780_s1 + $0x8] sm:$0xff]   ;;  %v6149_v13 = vld [vmem:[%s7780_s1 + $0x1b0] sm:$0xff]   ;;  %v28_v14 = vld [vmem:[%s7779_s0] sm:$0xff] }
   0x5   :  { %v6150_v15 = vld [vmem:[%s7780_s1] sm:$0xff]   ;;  %v6520_v16 = vpack.c.bf16 %v28_v14, %v28_v14 }
   0x7   :  { %5491 = vmatpush3.bf16.msra.mxu1 %v6141_v5  ;;  %5475 = vmatpush3.bf16.msra.mxu0 %v6142_v6 }
   0x8   :  { %5492 = vmatprep.subr.bf16.mxu1 %v6420_v0  ;;  %5476 = vmatprep.subr.bf16.mxu0 %v6420_v0 }
   0xb   :  { %5493 = vmatpush3.bf16.msra.mxu1 %v6143_v7  ;;  %5477 = vmatpush3.bf16.msra.mxu0 %v6144_v8 }
   0xc   :  { %5494 = vmatprep.subr.bf16.mxu1 %v6420_v0  ;;  %5478 = vmatprep.subr.bf16.mxu0 %v6420_v0 }
   0xf   :  { %5495 = vmatpush3.bf16.msra.mxu1 %v6145_v9  ;;  %5479 = vmatpush3.bf16.msra.mxu0 %v6146_v10 }
  0x10   :  { %5496 = vmatprep.subr.bf16.mxu1 %v6420_v0  ;;  %5480 = vmatprep.subr.bf16.mxu0 %v6420_v0 }
  0x13   :  { %5497 = vmatpush3.bf16.msra.mxu1 %v6147_v11  ;;  %5481 = vmatpush3.bf16.msra.mxu0 %v6148_v12 }
  0x14   :  { %5498 = vmatprep.subr.bf16.mxu1 %v6420_v0  ;;  %5482 = vmatprep.subr.bf16.mxu0 %v6420_v0 }
  0x17   :  { %5499 = vmatpush3.bf16.msra.mxu1 %v6149_v13  ;;  %5483 = vmatpush3.bf16.msra.mxu0 %v6150_v15 }
  0x18   :  { %5520 = vmatprep.subr.bf16.mxu1 %v6420_v0  ;;  %5504 = vmatprep.subr.bf16.mxu0 %v6420_v0 }
  0x1a   :  { %5501 = vmatmul.mubr.msk.bf16.vlgmr.msra.gmra.mxu1 %vm82_vm2, %v6520_v16  ;;  %5485 = vmatmul.mubr.msk.bf16.vlgmr.msra.gmra.mxu0 %vm82_vm2, %v6520_v16 }
  0x1b   :  { %5522 = vmatprep.mubr.msk.bf16.mxu1 %vm6421_vm1, %v6420_v0  ;;  %5516 = vmatprep.mubr.msk.bf16.mxu0 %vm6421_vm1, %v6420_v0 }
  0x1c   :  { %12 = vsyncpa [#allocation3], 0  ;;  %v4548_v17 = vld [vmem:[%s7785_s6 + $0x9] ss:$0 sm:$0xff]  ;;  %vm318_vm3 = vcmask 244736   ;;  %v6152_v34 = vld [vmem:[%s7781_s2 + $0x20] sm:$0xff]  }
  0x1d   :  { %v4528_v21 = vld [vmem:[%s7785_s6] ss:$0 sm:$0xff]  ;;  %v6151_v32 = vld [vmem:[%s7781_s2 + $0x28] sm:$0x1f]   ;;  %v6153_v35 = vld [vmem:[%s7781_s2 + $0x18] sm:$0xff]   ;;  %vm365_vm4 = vcmask 64512  }
  0x1e   :  { %v274_v33 = vsel %vm86_vm0, %v6151_v32, 0  ;;  %v6154_v36 = vld [vmem:[%s7781_s2 + $0x10] sm:$0xff]   ;;  %v6155_v37 = vld [vmem:[%s7781_s2 + $0x8] sm:$0xff]   ;;  %v6156_v38 = vld [vmem:[%s7781_s2] sm:$0xff]   ;;  %vm387_vm5 = vcmask 1043456   ;;  %s6422_s14 = smov [#allocation2]  }
  0x1f   :  { %5505 = vmatpush3.bf16.msra.mxu0 %v274_v33  ;;  %v6157_v50 = vld [vmem:[%s7780_s1 + $0x208] sm:$0x1f]   ;;  %v6158_v55 = vld [vmem:[%s7780_s1 + $0x200] sm:$0xff]   ;;  %v6159_v58 = vld [vmem:[%s7780_s1 + $0x1f8] sm:$0xff]   ;;  %s4520_s15 = sshll.u32 %s6422_s14, 4  ;;  %s4521_s15 = int_to_ptr.vmem [resolvable:$true] %s4520_s15 }
  0x20   :  { %5506 = vmatprep.subr.bf16.mxu0 %v6420_v0  ;;  %v581_v53 = vsel %vm86_vm0, %v6157_v50, 0  ;;  %v6160_v59 = vld [vmem:[%s7780_s1 + $0x1f0] sm:$0xff]   ;;  %v6162_v60 = vld [vmem:[%s7780_s1 + $0x1e8] sm:$0xff]   ;;  %v6164_v61 = vld [vmem:[%s7780_s1 + $0x1e0] sm:$0xff]   ;;  %s6398_s16 = scalar_lea.vmem %s4521_s15, 128  ;;  %p6403_p1 = scmp.lt.s32.totalorder %s4521_s15, %s4521_s15 }
  0x21   :  { %v6161_v63 = vld [vmem:[%s7780_s1 + $0x58] sm:$0x1f]   ;;  %v6163_v5 = vld [vmem:[%s7780_s1 + $0x50] sm:$0xff]   ;;  %v6165_v6 = vld [vmem:[%s7780_s1 + $0x48] sm:$0xff]   ;;  %p6399_p0 = scmp.ne.s32.totalorder %s4521_s15, %s6398_s16  ;;  %p6404_p2 = scmp.lt.s32.totalorder %s6398_s16, %s6398_s16 }
  0x22   :  { %v485_v4 = vsel %vm86_vm0, %v6161_v63, 0  ;;  %v6166_v7 = vld [vmem:[%s7780_s1 + $0x40] sm:$0xff]   ;;  %v6167_v8 = vld [vmem:[%s7780_s1 + $0x38] sm:$0xff]   ;;  %v6168_v9 = vld [vmem:[%s7780_s1 + $0x30] sm:$0xff]  }
  0x23   :  { %5507 = vmatpush3.bf16.msra.mxu0 %v6152_v34  ;;  %v4598_v10 = vld [vmem:[%s7785_s6 + $0xa] ss:$0 sm:$0xff]  ;;  %v6170_v32 = vld [vmem:[%s7781_s2 + $0x50] sm:$0xff]   ;;  %v6172_v34 = vld [vmem:[%s7781_s2 + $0x40] sm:$0xff]   ;;  %p6405_p3 = por %p6404_p2, %p6403_p1 }
  0x24   :  { %5508 = vmatprep.subr.bf16.mxu0 %v6420_v0  ;;  %v6171_v33 = vld [vmem:[%s7781_s2 + $0x48] sm:$0xff]  }
  0x25   :  { %p6406_p4 = pnand %p6405_p3, %p6399_p0 }
  0x27   :  { %5509 = vmatpush3.bf16.msra.mxu0 %v6153_v35  ;;  %v6173_v35 = vld [vmem:[%s7781_s2 + $0x38] sm:$0xff]  }
  0x28   :  { %5510 = vmatprep.subr.bf16.mxu0 %v6420_v0 }
  0x2b   :  { %5511 = vmatpush3.bf16.msra.mxu0 %v6154_v36  ;;  %v6174_v36 = vld [vmem:[%s7781_s2 + $0x30] sm:$0xff]  }
  0x2c   :  { %5512 = vmatprep.subr.bf16.mxu0 %v6420_v0 }
  0x2f   :  { %5513 = vmatpush3.bf16.msra.mxu0 %v6155_v37 }
  0x30   :  { %5514 = vmatprep.subr.bf16.mxu0 %v6420_v0 }
  0x33   :  { %5515 = vmatpush3.bf16.msra.mxu0 %v6156_v38 }
  0x34   :  { %5548 = vmatprep.subr.bf16.mxu0 %v6420_v0 }
  0x36   :  { %5517 = vmatmul.mubr.msk.bf16.vlgmr.msra.gmra.mxu0 %vm82_vm2, %v6520_v16 }
  0x37   :  { %5560 = vmatprep.mubr.msk.bf16.mxu0 %vm6421_vm1, %v6420_v0  ;;  %5549 = vmatpush3.bf16.msra.mxu0 %v581_v53  ;;  %v6176_v53 = vld [vmem:[%s7780_s1 + $0x230] sm:$0xff]  }
  0x38   :  { %5550 = vmatprep.subr.bf16.mxu0 %v6420_v0 }
  0x3b   :  { %5551 = vmatpush3.bf16.msra.mxu0 %v6158_v55 }
  0x3c   :  { %5552 = vmatprep.subr.bf16.mxu0 %v6420_v0 }
  0x3f   :  { %5553 = vmatpush3.bf16.msra.mxu0 %v6159_v58  ;;  %v6180_v58 = vld [vmem:[%s7780_s1 + $0x218] sm:$0xff]  }
  0x40   :  { %5554 = vmatprep.subr.bf16.mxu0 %v6420_v0 }
  0x43   :  { %5555 = vmatpush3.bf16.msra.mxu0 %v6160_v59  ;;  %v6182_v59 = vld [vmem:[%s7780_s1 + $0x210] sm:$0xff]  }
  0x44   :  { %5556 = vmatprep.subr.bf16.mxu0 %v6420_v0 }
  0x47   :  { %5557 = vmatpush3.bf16.msra.mxu0 %v6162_v60 }
  0x48   :  { %5558 = vmatprep.subr.bf16.mxu0 %v6420_v0 }
  0x4b   :  { %5559 = vmatpush3.bf16.msra.mxu0 %v6164_v61  ;;  %v6179_v61 = vld [vmem:[%s7780_s1 + $0x88] sm:$0x1f]  }
  0x4c   :  { %5580 = vmatprep.subr.bf16.mxu0 %v6420_v0 }
  0x4e   :  { %5561 = vmatmul.mubr.msk.bf16.vlgmr.msra.gmra.mxu0 %vm82_vm2, %v6520_v16 }
  0x4f   :  { %5582 = vmatprep.mubr.msk.bf16.mxu0 %vm6421_vm1, %v6420_v0 }
  0xda   :  { %v220_v18 = vpop.f32.mrf.mxu1  ;;  %v124_v20 = vpop.f32.mrf.mxu0 }
  0xdb   :  { %v221_v19 = vadd.f32 %v4548_v17, %v220_v18  ;;  %v125_v27 = vadd.f32 %v4528_v21, %v124_v20 }
  0xdc   :  { %v5502_v22 = vpop.f32.mrf.mxu1  ;;  %v5486_v24 = vpop.f32.mrf.mxu0 }
  0xdd   :  { %v317_v23 = vpack.c.bf16 %v221_v19, %v221_v19  ;;  %v316_v31 = vpack.c.bf16 %v125_v27, %v125_v27 }
  0xde   :  { %v223_v25 = vpop.f32.mrf.mxu1  ;;  %v127_v28 = vpop.f32.mrf.mxu0 }
  0xdf   :  { %v323_v26 = vsel %vm318_vm3, %v317_v23, 0  ;;  %v4578_v23 = vld [vmem:[%s7785_s6 + $0x1] ss:$0 sm:$0xff] }
  0xe0   :  { %v5503_v29 = vpop.f32.mrf.mxu1  ;;  %5521 = vmatpush3.bf16.xpose.msra.mxu1 %v323_v26  ;;  %v5487_v30 = vpop.f32.mrf.mxu0 }
  0xe1   :  { %5526 = vmatprep.subr.bf16.mxu1 %v6420_v0  ;;  %v6169_v30 = vld [vmem:[%s7781_s2 + $0x58] sm:$0x1f]  }
  0xe7   :  { %5523 = vmatmul.mubr.msk.bf16.vlgmr.msra.gmra.mxu1 %vm318_vm3, %v316_v31  ;;  %v672_v31 = vsel %vm86_vm0, %v6169_v30, 0 }
  0xe8   :  { %5528 = vmatprep.mubr.msk.bf16.mxu1 %vm6421_vm1, %v6420_v0 }
  0xf6   :  { %v310_v49 = vpop.f32.mrf.mxu0 }
  0xf7   :  { %v378_v51 = vpack.c.bf16 %v310_v49, %v310_v49 }
  0xf8   :  { %v5518_v52 = vpop.f32.mrf.mxu0 }
  0xf9   :  { %v389_v54 = vsel %vm387_vm5, %v378_v51, 0 }
  0xfa   :  { %v313_v56 = vpop.f32.mrf.mxu0  ;;  %5527 = vmatpush3.bf16.msra.mxu1 %v389_v54 }
  0xfb   :  { %5532 = vmatprep.subr.bf16.mxu1 %v6420_v0  ;;  %v6177_v56 = vld [vmem:[%s7780_s1 + $0x228] sm:$0xff]  }
  0xfc   :  { %v5519_v57 = vpop.f32.mrf.mxu0 }
  0xfd   :  { %v6178_v57 = vld [vmem:[%s7780_s1 + $0x220] sm:$0xff]  }
 0x10e   :  { %v617_v11 = vpop.f32.mrf.mxu0 }
 0x10f   :  { %v618_v12 = vadd.f32 %v4598_v10, %v617_v11 }
 0x110   :  { %v5562_v13 = vpop.f32.mrf.mxu0 }
 0x111   :  { %v715_v14 = vpack.c.bf16 %v618_v12, %v618_v12 }
 0x112   :  { %v620_v15 = vpop.f32.mrf.mxu0 }
 0x113   :  { %v720_v17 = vsel %vm318_vm3, %v715_v14, 0 }
 0x114   :  { %v5563_v18 = vpop.f32.mrf.mxu0  ;;  %5581 = vmatpush3.bf16.xpose.msra.mxu0 %v720_v17  ;;  %v4564_v17 = vld [vmem:[%s7785_s6 + $0x12] ss:$0 sm:$0xff] }
 0x115   :  { %5586 = vmatprep.subr.bf16.mxu0 %v6420_v0  ;;  %v4626_v18 = vld [vmem:[%s7785_s6 + $0x13] ss:$0 sm:$0xff] }
 0x1a7   :  { %v359_v39 = vpop.f32.mrf.mxu1 }
 0x1a8   :  { %v366_v40 = vsel %vm365_vm4, %v359_v39, -inf }
 0x1a9   :  { %367 = vmax.xlane.f32.xlu0 %v366_v40  ;;  %v5524_v41 = vpop.f32.mrf.mxu1 }
 0x1ab   :  { %v362_v42 = vpop.f32.mrf.mxu1 }
 0x1ad   :  { %v5525_v43 = vpop.f32.mrf.mxu1 }
 0x232   :  { %v368_v44 = vpop.xlane.xlu0 %367 }
 0x233   :  { %v369_v45 = vsub.f32 %v359_v39, %v368_v44 }
 0x235   :  { %v370_v46 = vmul.f32 1.442695, %v369_v45 }
 0x237   :  { %6349 = vpow2.f32 %v370_v46 }
 0x244   :  { %v6350_v47 = vpop.eup %6349 }
 0x245   :  { %v372_v48 = vsel %vm365_vm4, %v6350_v47, 0.0 }
 0x246   :  { %373 = vadd.xlane.f32.xlu0 %v372_v48  ;;  %v6175_v48 = vld [vmem:[%s7780_s1 + $0x238] sm:$0x1f]  }
 0x247   :  { %v977_v51 = vsel %vm86_vm0, %v6175_v48, 0 }
 0x2cf   :  { %v374_v62 = vpop.xlane.xlu0 %373 }
 0x2d0   :  { %6351 = vrcp.f32 %v374_v62 }
 0x2dd   :  { %v6352_v1 = vpop.eup %6351 }
 0x2de   :  { %v376_v2 = vmul.f32 %v6352_v1, %v6350_v47 }
 0x2e0   :  { %v377_v3 = vpack.c.bf16 %v376_v2, %v376_v2  ;;  %v881_v2 = vsel %vm86_vm0, %v6179_v61, 0 }
 0x2e2   :  { %5529 = vmatmul.mubr.msk.bf16.vlgmr.msra.gmra.mxu1 %vm365_vm4, %v377_v3  ;;  %v6181_v3 = vld [vmem:[%s7780_s1 + $0x80] sm:$0xff]  }
 0x2e3   :  { %5533 = vmatpush3.bf16.msra.mxu1 %v485_v4  ;;  %5544 = vmatprep.mubr.msk.bf16.mxu1 %vm6421_vm1, %v6420_v0  ;;  %v6183_v4 = vld [vmem:[%s7780_s1 + $0x78] sm:$0xff]  }
 0x2e4   :  { %5534 = vmatprep.subr.bf16.mxu1 %v6420_v0 }
 0x2e7   :  { %5535 = vmatpush3.bf16.msra.mxu1 %v6163_v5  ;;  %v6184_v5 = vld [vmem:[%s7780_s1 + $0x70] sm:$0xff]  }
 0x2e8   :  { %5536 = vmatprep.subr.bf16.mxu1 %v6420_v0 }
 0x2eb   :  { %5537 = vmatpush3.bf16.msra.mxu1 %v6165_v6  ;;  %v6185_v6 = vld [vmem:[%s7780_s1 + $0x68] sm:$0xff]  }
 0x2ec   :  { %5538 = vmatprep.subr.bf16.mxu1 %v6420_v0 }
 0x2ef   :  { %5539 = vmatpush3.bf16.msra.mxu1 %v6166_v7  ;;  %v6186_v7 = vld [vmem:[%s7780_s1 + $0x60] sm:$0xff]  }
 0x2f0   :  { %5540 = vmatprep.subr.bf16.mxu1 %v6420_v0 }
 0x2f3   :  { %5541 = vmatpush3.bf16.msra.mxu1 %v6167_v8  ;;  %v4660_v8 = vld [vmem:[%s7785_s6 + $0xb] ss:$0 sm:$0xff] }
 0x2f4   :  { %5542 = vmatprep.subr.bf16.mxu1 %v6420_v0 }
 0x2f7   :  { %5543 = vmatpush3.bf16.msra.mxu1 %v6168_v9 }
 0x2f8   :  { %5564 = vmatprep.subr.bf16.mxu1 %v6420_v0 }
 0x2fa   :  { %5545 = vmatmul.mubr.msk.bf16.vlgmr.msra.gmra.mxu1 %vm82_vm2, %v6520_v16 }
 0x2fb   :  { %5576 = vmatprep.mubr.msk.bf16.mxu1 %vm6421_vm1, %v6420_v0  ;;  %5565 = vmatpush3.bf16.msra.mxu1 %v672_v31 }
 0x2fc   :  { %5566 = vmatprep.subr.bf16.mxu1 %v6420_v0 }
 0x2ff   :  { %5567 = vmatpush3.bf16.msra.mxu1 %v6170_v32 }
 0x300   :  { %5568 = vmatprep.subr.bf16.mxu1 %v6420_v0 }
 0x303   :  { %5569 = vmatpush3.bf16.msra.mxu1 %v6171_v33 }
 0x304   :  { %5570 = vmatprep.subr.bf16.mxu1 %v6420_v0 }
 0x307   :  { %5571 = vmatpush3.bf16.msra.mxu1 %v6172_v34 }
 0x308   :  { %5572 = vmatprep.subr.bf16.mxu1 %v6420_v0 }
 0x30b   :  { %5573 = vmatpush3.bf16.msra.mxu1 %v6173_v35  ;;  %v6188_v35 = vld [vmem:[%s7781_s2 + $0x80] sm:$0xff]  }
 0x30c   :  { %5574 = vmatprep.subr.bf16.mxu1 %v6420_v0 }
 0x30f   :  { %5575 = vmatpush3.bf16.msra.mxu1 %v6174_v36  ;;  %v6189_v36 = vld [vmem:[%s7781_s2 + $0x78] sm:$0xff]  }
 0x310   :  { %5608 = vmatprep.subr.bf16.mxu1 %v6420_v0 }
 0x312   :  { %5577 = vmatmul.mubr.msk.bf16.vlgmr.msra.gmra.mxu1 %vm82_vm2, %v6520_v16 }
 0x313   :  { %5620 = vmatprep.mubr.msk.bf16.mxu1 %vm6421_vm1, %v6420_v0  ;;  %5609 = vmatpush3.bf16.msra.mxu1 %v977_v51 }
 0x314   :  { %5610 = vmatprep.subr.bf16.mxu1 %v6420_v0 }
 0x317   :  { %5611 = vmatpush3.bf16.msra.mxu1 %v6176_v53 }
 0x318   :  { %5612 = vmatprep.subr.bf16.mxu1 %v6420_v0 }
 0x31b   :  { %5613 = vmatpush3.bf16.msra.mxu1 %v6177_v56 }
 0x31c   :  { %5614 = vmatprep.subr.bf16.mxu1 %v6420_v0 }
 0x31f   :  { %5615 = vmatpush3.bf16.msra.mxu1 %v6178_v57 }
 0x320   :  { %5616 = vmatprep.subr.bf16.mxu1 %v6420_v0 }
 0x323   :  { %5617 = vmatpush3.bf16.msra.mxu1 %v6180_v58 }
 0x324   :  { %5618 = vmatprep.subr.bf16.mxu1 %v6420_v0 }
 0x327   :  { %5619 = vmatpush3.bf16.msra.mxu1 %v6182_v59  ;;  %v4688_v59 = vld [vmem:[%s7785_s6 + $0x14] ss:$0 sm:$0xff] }
 0x328   :  { %5640 = vmatprep.subr.bf16.mxu1 %v6420_v0 }
 0x32a   :  { %5621 = vmatmul.mubr.msk.bf16.vlgmr.msra.gmra.mxu1 %vm82_vm2, %v6520_v16 }
 0x32b   :  { %5642 = vmatprep.mubr.msk.bf16.mxu1 %vm6421_vm1, %v6420_v0 }
 0x3a2   :  { %v6642_v19 = vpop.f32.mrf.mxu1 }
 0x3a4   :  { %v5530_v20 = vpop.f32.mrf.mxu1 }
 0x3a6   :  { %v428_v21 = vpop.f32.mrf.mxu1 }
 0x3a7   :  { %v426_v21 = vadd.f32 %v4564_v17, %v6642_v19  ;;  %v6187_v19 = vld [vmem:[%s7781_s2 + $0x88] sm:$0x1f]   ;;  %v6195_v17 = vld [vmem:[%s7782_s3 + $0x18] sm:$0xff]  }
 0x3a8   :  { %v5531_v22 = vpop.f32.mrf.mxu1  ;;  %v1068_v34 = vsel %vm86_vm0, %v6187_v19, 0  ;;  %v4692_v19 = vld [vmem:[%s7785_s6 + $0x21] ss:$0 sm:$0xff] }
 0x3ba   :  { %v521_v24 = vpop.f32.mrf.mxu1 }
 0x3bb   :  { %v522_v25 = vadd.f32 %v4578_v23, %v521_v24 }
 0x3bc   :  { %v5546_v26 = vpop.f32.mrf.mxu1 }
 0x3bd   :  { %v714_v27 = vpack.c.bf16 %v522_v25, %v522_v25 }
 0x3be   :  { %v524_v28 = vpop.f32.mrf.mxu1 }
 0x3bf   :  { %5583 = vmatmul.mubr.msk.bf16.vlgmr.msra.gmra.mxu0 %vm318_vm3, %v714_v27  ;;  %v4640_v27 = vld [vmem:[%s7785_s6 + $0x2] ss:$0 sm:$0xff] }
 0x3c0   :  { %v5547_v29 = vpop.f32.mrf.mxu1  ;;  %5588 = vmatprep.mubr.msk.bf16.mxu0 %vm6421_vm1, %v6420_v0 }
 0x3d2   :  { %v708_v47 = vpop.f32.mrf.mxu1 }
 0x3d3   :  { %v774_v49 = vpack.c.bf16 %v708_v47, %v708_v47 }
 0x3d4   :  { %v5578_v50 = vpop.f32.mrf.mxu1 }
 0x3d5   :  { %v784_v52 = vsel %vm387_vm5, %v774_v49, 0 }
 0x3d6   :  { %v711_v54 = vpop.f32.mrf.mxu1  ;;  %5587 = vmatpush3.bf16.msra.mxu0 %v784_v52 }
 0x3d7   :  { %5592 = vmatprep.subr.bf16.mxu0 %v6420_v0 }
 0x3d8   :  { %v5579_v55 = vpop.f32.mrf.mxu1 }
 0x3ea   :  { %v1013_v9 = vpop.f32.mrf.mxu1 }
 0x3eb   :  { %v1014_v10 = vadd.f32 %v4660_v8, %v1013_v9 }
 0x3ec   :  { %v5622_v11 = vpop.f32.mrf.mxu1 }
 0x3ed   :  { %v1111_v12 = vpack.c.bf16 %v1014_v10, %v1014_v10 }
 0x3ee   :  { %v1016_v13 = vpop.f32.mrf.mxu1 }
 0x3ef   :  { %v1116_v14 = vsel %vm318_vm3, %v1111_v12, 0  ;;  %v6193_v13 = vld [vmem:[%s7782_s3 + $0x28] sm:$0x1f]  }
 0x3f0   :  { %v5623_v15 = vpop.f32.mrf.mxu1  ;;  %5641 = vmatpush3.bf16.xpose.msra.mxu1 %v1116_v14  ;;  %v1313_v14 = vsel %vm86_vm0, %v6193_v13, 0 }
 0x3f1   :  { %5646 = vmatprep.subr.bf16.mxu1 %v6420_v0  ;;  %v6194_v15 = vld [vmem:[%s7782_s3 + $0x20] sm:$0xff]  }
 0x47f   :  { %v756_v37 = vpop.f32.mrf.mxu0 }
 0x480   :  { %v762_v38 = vsel %vm365_vm4, %v756_v37, -inf }
 0x481   :  { %763 = vmax.xlane.f32.xlu1 %v762_v38  ;;  %v5584_v39 = vpop.f32.mrf.mxu0  ;;  %v6191_v38 = vld [vmem:[%s7781_s2 + $0x68] sm:$0xff]  }
 0x482   :  { %v6192_v39 = vld [vmem:[%s7781_s2 + $0x60] sm:$0xff]  }
 0x483   :  { %v759_v40 = vpop.f32.mrf.mxu0 }
 0x485   :  { %v5585_v41 = vpop.f32.mrf.mxu0 }
 0x50a   :  { %v764_v42 = vpop.xlane.xlu1 %763 }
 0x50b   :  { %v765_v43 = vsub.f32 %v756_v37, %v764_v42  ;;  %v6190_v37 = vld [vmem:[%s7781_s2 + $0x70] sm:$0xff]  }
 0x50d   :  { %v766_v44 = vmul.f32 1.442695, %v765_v43 }
 0x50f   :  { %6353 = vpow2.f32 %v766_v44 }
 0x51c   :  { %v6354_v45 = vpop.eup %6353 }
 0x51d   :  { %v768_v46 = vsel %vm365_vm4, %v6354_v45, 0.0 }
 0x51e   :  { %769 = vadd.xlane.f32.xlu1 %v768_v46 }
 0x5a7   :  { %v770_v60 = vpop.xlane.xlu1 %769 }
 0x5a8   :  { %6355 = vrcp.f32 %v770_v60 }
 0x5b5   :  { %v6356_v62 = vpop.eup %6355 }
 0x5b6   :  { %v772_v63 = vmul.f32 %v6356_v62, %v6354_v45 }
 0x5b8   :  { %v773_v1 = vpack.c.bf16 %v772_v63, %v772_v63 }
 0x5ba   :  { %5589 = vmatmul.mubr.msk.bf16.vlgmr.msra.gmra.mxu0 %vm365_vm4, %v773_v1 }
 0x5bb   :  { %5593 = vmatpush3.bf16.msra.mxu0 %v881_v2  ;;  %5604 = vmatprep.mubr.msk.bf16.mxu0 %vm6421_vm1, %v6420_v0  ;;  %v4690_v2 = vld [vmem:[%s7785_s6 + $0x1b] ss:$0 sm:$0xff] }
 0x5bc   :  { %5594 = vmatprep.subr.bf16.mxu0 %v6420_v0 }
 0x5bf   :  { %5595 = vmatpush3.bf16.msra.mxu0 %v6181_v3  ;;  %v6397_v3 = vld [vmem:[%s7779_s0] sm:$0xff] }
 0x5c0   :  { %5596 = vmatprep.subr.bf16.mxu0 %v6420_v0 }
 0x5c3   :  { %5597 = vmatpush3.bf16.msra.mxu0 %v6183_v4 }
 0x5c4   :  { %5598 = vmatprep.subr.bf16.mxu0 %v6420_v0 }
 0x5c7   :  { %5599 = vmatpush3.bf16.msra.mxu0 %v6184_v5 }
 0x5c8   :  { %5600 = vmatprep.subr.bf16.mxu0 %v6420_v0 }
 0x5cb   :  { %5601 = vmatpush3.bf16.msra.mxu0 %v6185_v6 }
 0x5cc   :  { %5602 = vmatprep.subr.bf16.mxu0 %v6420_v0 }
 0x5cf   :  { %5603 = vmatpush3.bf16.msra.mxu0 %v6186_v7 }
 0x5d0   :  { %5624 = vmatprep.subr.bf16.mxu0 %v6420_v0 }
 0x5d2   :  { %5605 = vmatmul.mubr.msk.bf16.vlgmr.msra.gmra.mxu0 %vm82_vm2, %v6520_v16 }
 0x5d3   :  { %5636 = vmatprep.mubr.msk.bf16.mxu0 %vm6421_vm1, %v6420_v0  ;;  %5625 = vmatpush3.bf16.msra.mxu0 %v1068_v34 }
 0x5d4   :  { %5626 = vmatprep.subr.bf16.mxu0 %v6420_v0 }
 0x5d7   :  { %5627 = vmatpush3.bf16.msra.mxu0 %v6188_v35 }
 0x5d8   :  { %5628 = vmatprep.subr.bf16.mxu0 %v6420_v0 }
 0x5db   :  { %5629 = vmatpush3.bf16.msra.mxu0 %v6189_v36 }
 0x5dc   :  { %5630 = vmatprep.subr.bf16.mxu0 %v6420_v0 }
 0x5df   :  { %5631 = vmatpush3.bf16.msra.mxu0 %v6190_v37  ;;  %v6205_v37 = vld [vmem:[%s7783_s4 + $0x8] sm:$0xff]  }
 0x5e0   :  { %5632 = vmatprep.subr.bf16.mxu0 %v6420_v0 }
 0x5e3   :  { %5633 = vmatpush3.bf16.msra.mxu0 %v6191_v38  ;;  %v6206_v38 = vld [vmem:[%s7783_s4] sm:$0xff]  }
 0x5e4   :  { %5634 = vmatprep.subr.bf16.mxu0 %v6420_v0 }
 0x5e7   :  { %5635 = vmatpush3.bf16.msra.mxu0 %v6192_v39  ;;  %v4693_v39 = vld [vmem:[%s7785_s6 + $0x24] ss:$0 sm:$0xff] }
 0x5e8   :  { %5668 = vmatprep.subr.bf16.mxu0 %v6420_v0 }
 0x5ea   :  { %5637 = vmatmul.mubr.msk.bf16.vlgmr.msra.gmra.mxu0 %vm82_vm2, %v6520_v16 }
 0x5eb   :  { %5684 = vmatprep.mubr.msk.bf16.mxu0 %vm6421_vm1, %v6420_v0 }
 0x67a   :  { %v820_v20 = vpop.f32.mrf.mxu0 }
 0x67b   :  { %v821_v22 = vadd.f32 %v4626_v18, %v820_v20  ;;  %v6196_v18 = vld [vmem:[%s7782_s3 + $0x10] sm:$0xff]   ;;  %v6197_v20 = vld [vmem:[%s7782_s3 + $0x8] sm:$0xff]  }
 0x67c   :  { %v5590_v23 = vpop.f32.mrf.mxu0 }
 0x67d   :  { %v6756_v24 = vadd.f32 %v821_v22, %v426_v21  ;;  %v6198_v21 = vld [vmem:[%s7782_s3] sm:$0xff]   ;;  %v6199_v22 = vld [vmem:[%s7783_s4 + $0x38] sm:$0xff]   ;;  %v6200_v23 = vld [vmem:[%s7783_s4 + $0x30] sm:$0xff]  }
 0x67e   :  { %v823_v25 = vpop.f32.mrf.mxu0  ;;  %5669 = vmatpush3.bf16.msra.mxu0 %v6199_v22 }
 0x67f   :  { %5670 = vmatprep.subr.bf16.mxu0 %v6420_v0  ;;  %v6202_v25 = vld [vmem:[%s7783_s4 + $0x20] sm:$0xff]  }
 0x680   :  { %v5591_v26 = vpop.f32.mrf.mxu0 }
 0x681   :  { %v6203_v26 = vld [vmem:[%s7783_s4 + $0x18] sm:$0xff]  }
 0x682   :  { %5671 = vmatpush3.bf16.msra.mxu0 %v6200_v23 }
 0x683   :  { %5672 = vmatprep.subr.bf16.mxu0 %v6420_v0 }
 0x692   :  { %v917_v28 = vpop.f32.mrf.mxu0 }
 0x693   :  { %v918_v29 = vadd.f32 %v4640_v27, %v917_v28  ;;  %v6204_v27 = vld [vmem:[%s7783_s4 + $0x10] sm:$0xff]  }
 0x694   :  { %v5606_v30 = vpop.f32.mrf.mxu0 }
 0x695   :  { %v1110_v31 = vpack.c.bf16 %v918_v29, %v918_v29 }
 0x696   :  { %v920_v32 = vpop.f32.mrf.mxu0 }
 0x697   :  { %5643 = vmatmul.mubr.msk.bf16.vlgmr.msra.gmra.mxu1 %vm318_vm3, %v1110_v31  ;;  %v4691_v32 = vld [vmem:[%s7785_s6 + $0x1e] ss:$0 sm:$0xff] }
 0x698   :  { %v5607_v33 = vpop.f32.mrf.mxu0  ;;  %5648 = vmatprep.mubr.msk.bf16.mxu1 %vm6421_vm1, %v6420_v0 }
 0x6aa   :  { %v1104_v50 = vpop.f32.mrf.mxu0 }
 0x6ab   :  { %v1170_v16 = vpack.c.bf16 %v1104_v50, %v1104_v50 }
 0x6ac   :  { %v5638_v51 = vpop.f32.mrf.mxu0 }
 0x6ad   :  { %v1180_v52 = vsel %vm387_vm5, %v1170_v16, 0 }
 0x6ae   :  { %v1107_v53 = vpop.f32.mrf.mxu0  ;;  %5647 = vmatpush3.bf16.msra.mxu1 %v1180_v52 }
 0x6af   :  { %5652 = vmatprep.subr.bf16.mxu1 %v6420_v0 }
 0x6b0   :  { %v5639_v54 = vpop.f32.mrf.mxu0 }
 0x757   :  { %v1152_v40 = vpop.f32.mrf.mxu1 }
 0x758   :  { %v1158_v41 = vsel %vm365_vm4, %v1152_v40, -inf }
 0x759   :  { %1159 = vmax.xlane.f32.xlu0 %v1158_v41  ;;  %v5644_v42 = vpop.f32.mrf.mxu1 }
 0x75b   :  { %v1155_v43 = vpop.f32.mrf.mxu1 }
 0x75d   :  { %v5645_v44 = vpop.f32.mrf.mxu1 }
 0x7e2   :  { %v1160_v45 = vpop.xlane.xlu0 %1159 }
 0x7e3   :  { %v1161_v46 = vsub.f32 %v1152_v40, %v1160_v45 }
 0x7e5   :  { %v1162_v47 = vmul.f32 1.442695, %v1161_v46 }
 0x7e7   :  { %6357 = vpow2.f32 %v1162_v47  ;;  %v4701_v47 = vld [vmem:[%s7785_s6 + $0x27] ss:$0 sm:$0xff] }
 0x7f4   :  { %v6358_v48 = vpop.eup %6357 }
 0x7f5   :  { %v1164_v49 = vsel %vm365_vm4, %v6358_v48, 0.0 }
 0x7f6   :  { %1165 = vadd.xlane.f32.xlu1 %v1164_v49 }
 0x87f   :  { %v1166_v55 = vpop.xlane.xlu1 %1165 }
 0x880   :  { %6359 = vrcp.f32 %v1166_v55 }
 0x88d   :  { %v6360_v56 = vpop.eup %6359 }
 0x88e   :  { %v1168_v57 = vmul.f32 %v6360_v56, %v6358_v48 }
 0x890   :  { %v1169_v58 = vpack.c.bf16 %v1168_v57, %v1168_v57 }
 0x892   :  { %5649 = vmatmul.mubr.msk.bf16.vlgmr.msra.gmra.mxu1 %vm365_vm4, %v1169_v58 }
 0x893   :  { %5664 = vmatprep.mubr.msk.bf16.mxu1 %vm6421_vm1, %v6420_v0  ;;  %5653 = vmatpush3.bf16.msra.mxu1 %v1313_v14  ;;  %v4710_v14 = vld [vmem:[%s7785_s6 + $0x2a] ss:$0 sm:$0xff] }
 0x894   :  { %5654 = vmatprep.subr.bf16.mxu1 %v6420_v0 }
 0x897   :  { %5655 = vmatpush3.bf16.msra.mxu1 %v6194_v15 }
 0x898   :  { %5656 = vmatprep.subr.bf16.mxu1 %v6420_v0 }
 0x89b   :  { %5657 = vmatpush3.bf16.msra.mxu1 %v6195_v17  ;;  %v4711_v17 = vld [vmem:[%s7785_s6 + $0x2d] ss:$0 sm:$0xff] }
 0x89c   :  { %5658 = vmatprep.subr.bf16.mxu1 %v6420_v0 }
 0x89f   :  { %5659 = vmatpush3.bf16.msra.mxu1 %v6196_v18 }
 0x8a0   :  { %5660 = vmatprep.subr.bf16.mxu1 %v6420_v0 }
 0x8a3   :  { %5661 = vmatpush3.bf16.msra.mxu1 %v6197_v20  ;;  %v6219_v20 = vld [vmem:[%s7781_s2 + $0xb8] sm:$0x1f]  }
 0x8a4   :  { %5662 = vmatprep.subr.bf16.mxu1 %v6420_v0  ;;  %v1737_v23 = vsel %vm86_vm0, %v6219_v20, 0 }
 0x8a7   :  { %5663 = vmatpush3.bf16.msra.mxu1 %v6198_v21 }
 0x8a8   :  { %5688 = vmatprep.subr.bf16.mxu1 %v6420_v0 }
 0x952   :  { %v1216_v60 = vpop.f32.mrf.mxu1 }
 0x953   :  { %v1217_v61 = vadd.f32 %v4688_v59, %v1216_v60  ;;  %v6207_v59 = vld [vmem:[%s7780_s1 + $0xb8] sm:$0x1f]   ;;  %v6208_v60 = vld [vmem:[%s7780_s1 + $0x268] sm:$0x1f]  }
 0x954   :  { %v5650_v62 = vpop.f32.mrf.mxu1 }
 0x955   :  { %v1222_v63 = vadd.f32 %v1217_v61, %v6756_v24  ;;  %v6201_v24 = vld [vmem:[%s7783_s4 + $0x28] sm:$0xff]   ;;  %v1550_v61 = vsel %vm86_vm0, %v6207_v59, 0  ;;  %v1646_v62 = vsel %vm86_vm0, %v6208_v60, 0 }
 0x956   :  { %v1219_v1 = vpop.f32.mrf.mxu1  ;;  %5673 = vmatpush3.bf16.msra.mxu0 %v6201_v24  ;;  %v6220_v24 = vld [vmem:[%s7781_s2 + $0xb0] sm:$0xff]  }
 0x957   :  { %v1223_v4 = vadd.f32 %v6397_v3, %v1222_v63  ;;  %5674 = vmatprep.subr.bf16.mxu0 %v6420_v0  ;;  %v6209_v63 = vld [vmem:[%s7780_s1 + $0xb0] sm:$0xff]   ;;  %v6210_v1 = vld [vmem:[%s7780_s1 + $0x260] sm:$0xff]   ;;  %v6212_v3 = vld [vmem:[%s7780_s1 + $0x258] sm:$0xff]  }
 0x958   :  { %v5651_v5 = vpop.f32.mrf.mxu1 }
 0x959   :  { %v1229_v6 = vadd.f32 %v4690_v2, %v1223_v4  ;;  %v6211_v2 = vld [vmem:[%s7780_s1 + $0xa8] sm:$0xff]   ;;  %v6213_v4 = vld [vmem:[%s7780_s1 + $0xa0] sm:$0xff]   ;;  %v6214_v5 = vld [vmem:[%s7780_s1 + $0x250] sm:$0xff]  }
 0x95a   :  { %5675 = vmatpush3.bf16.msra.mxu0 %v6202_v25  ;;  %v6221_v25 = vld [vmem:[%s7781_s2 + $0xa8] sm:$0xff]  }
 0x95b   :  { %v1232_v7 = vsel %vm82_vm2, %v1229_v6, 0.0  ;;  %5676 = vmatprep.subr.bf16.mxu0 %v6420_v0 }
 0x95c   :  { %1233 = vadd.xlane.f32.xlu0 %v1232_v7  ;;  %v6216_v7 = vld [vmem:[%s7780_s1 + $0x248] sm:$0xff]  }
 0x95e   :  { %5677 = vmatpush3.bf16.msra.mxu0 %v6203_v26  ;;  %v6222_v26 = vld [vmem:[%s7781_s2 + $0xa0] sm:$0xff]  }
 0x95f   :  { %5678 = vmatprep.subr.bf16.mxu0 %v6420_v0 }
 0x962   :  { %5679 = vmatpush3.bf16.msra.mxu0 %v6204_v27  ;;  %v6223_v27 = vld [vmem:[%s7781_s2 + $0x98] sm:$0xff]  }
 0x963   :  { %5680 = vmatprep.subr.bf16.mxu0 %v6420_v0 }
 0x966   :  { %5681 = vmatpush3.bf16.msra.mxu0 %v6205_v37  ;;  %v6232_v37 = vld [vmem:[%s7781_s2 + $0xe0] sm:$0xff]  }
 0x967   :  { %5682 = vmatprep.subr.bf16.mxu0 %v6420_v0 }
 0x96a   :  { %5683 = vmatpush3.bf16.msra.mxu0 %v6206_v38  ;;  %v6233_v38 = vld [vmem:[%s7781_s2 + $0xd8] sm:$0xff]  }
 0x96b   :  { %5704 = vmatprep.subr.bf16.mxu0 %v6420_v0 }
 0x9e5   :  { %v1234_v8 = vpop.xlane.xlu0 %1233 }
 0x9e6   :  { %v1236_v9 = vmul.f32 0.011111111, %v1234_v8  ;;  %v6217_v8 = vld [vmem:[%s7780_s1 + $0x90] sm:$0xff]  }
 0x9e8   :  { %v1237_v10 = vsub.f32 %v1229_v6, %v1236_v9  ;;  %v6215_v6 = vld [vmem:[%s7780_s1 + $0x98] sm:$0xff]   ;;  %v6218_v9 = vld [vmem:[%s7780_s1 + $0x240] sm:$0xff]  }
 0x9ea   :  { %v1238_v11 = vmul.f32 %v1237_v10, %v1237_v10 }
 0x9ec   :  { %v1239_v12 = vsel %vm82_vm2, %v1238_v11, 0.0 }
 0x9ed   :  { %1240 = vadd.xlane.f32.xlu1 %v1239_v12 }
 0xa76   :  { %v1241_v28 = vpop.xlane.xlu1 %1240 }
 0xa77   :  { %v1242_v29 = vmul.f32 0.011111111, %v1241_v28  ;;  %v6224_v28 = vld [vmem:[%s7781_s2 + $0x90] sm:$0xff]  }
 0xa79   :  { %v1243_v30 = vadd.f32 1e-05, %v1242_v29  ;;  %v6225_v29 = vld [vmem:[%s7780_s1 + $0xe8] sm:$0x1f]  }
 0xa7b   :  { %6361 = vrsqrt.f32 %v1243_v30  ;;  %v1945_v30 = vsel %vm86_vm0, %v6225_v29, 0 }
 0xa88   :  { %v6362_v31 = vpop.eup %6361 }
 0xa89   :  { %v1245_v33 = vmul.f32 %v6362_v31, %v1237_v10  ;;  %v6226_v31 = vld [vmem:[%s7780_s1 + $0xe0] sm:$0xff]  }
 0xa8b   :  { %v1250_v34 = vmul.f32 %v4691_v32, %v1245_v33  ;;  %v6227_v32 = vld [vmem:[%s7780_s1 + $0xd8] sm:$0xff]   ;;  %v6228_v33 = vld [vmem:[%s7780_s1 + $0xd0] sm:$0xff]  }
 0xa8d   :  { %v1255_v35 = vadd.f32 %v4692_v19, %v1250_v34  ;;  %v6229_v19 = vld [vmem:[%s7780_s1 + $0xc8] sm:$0xff]   ;;  %v6230_v34 = vld [vmem:[%s7780_s1 + $0xc0] sm:$0xff]  }
 0xa8f   :  { %v1256_v36 = vpack.c.bf16 %v1255_v35, %v1255_v35 }
 0xa91   :  { %5665 = vmatmul.mubr.msk.bf16.vlgmr.msra.gmra.mxu1 %vm82_vm2, %v1256_v36 }
 0xa92   :  { %5700 = vmatprep.mubr.msk.bf16.mxu1 %vm6421_vm1, %v6420_v0  ;;  %5689 = vmatpush3.bf16.msra.mxu1 %v1550_v61 }
 0xa93   :  { %5690 = vmatprep.subr.bf16.mxu1 %v6420_v0 }
 0xa96   :  { %5691 = vmatpush3.bf16.msra.mxu1 %v6209_v63 }
 0xa97   :  { %5692 = vmatprep.subr.bf16.mxu1 %v6420_v0 }
 0xa9a   :  { %5693 = vmatpush3.bf16.msra.mxu1 %v6211_v2 }
 0xa9b   :  { %5694 = vmatprep.subr.bf16.mxu1 %v6420_v0 }
 0xa9e   :  { %5695 = vmatpush3.bf16.msra.mxu1 %v6213_v4 }
 0xa9f   :  { %5696 = vmatprep.subr.bf16.mxu1 %v6420_v0 }
 0xaa2   :  { %5697 = vmatpush3.bf16.msra.mxu1 %v6215_v6 }
 0xaa3   :  { %5698 = vmatprep.subr.bf16.mxu1 %v6420_v0 }
 0xaa6   :  { %5699 = vmatpush3.bf16.msra.mxu1 %v6217_v8 }
 0xaa7   :  { %5720 = vmatprep.subr.bf16.mxu1 %v6420_v0 }
 0xb51   :  { %v1349_v40 = vpop.f32.mrf.mxu1 }
 0xb52   :  { %v1350_v41 = vadd.f32 %v4693_v39, %v1349_v40  ;;  %v6234_v39 = vld [vmem:[%s7781_s2 + $0xd0] sm:$0xff]   ;;  %v6235_v40 = vld [vmem:[%s7781_s2 + $0xc8] sm:$0xff]  }
 0xb53   :  { %v5666_v42 = vpop.f32.mrf.mxu1 }
 0xb54   :  { %v1355_v43 = vmax.f32 %v1350_v41, 0.0  ;;  %v6236_v41 = vld [vmem:[%s7781_s2 + $0xc0] sm:$0xff]   ;;  %v6237_v42 = vld [vmem:[%s7780_s1 + $0x2c8] sm:$0x1f]  }
 0xb55   :  { %v1352_v44 = vpop.f32.mrf.mxu1 }
 0xb56   :  { %v1356_v45 = vpack.c.bf16 %v1355_v43, %v1355_v43  ;;  %v2437_v43 = vsel %vm86_vm0, %v6237_v42, 0  ;;  %v6238_v44 = vld [vmem:[%s7780_s1 + $0x2c0] sm:$0xff]   ;;  %v6245_v42 = vld [vmem:[%s7780_s1 + $0x288] sm:$0xff]  }
 0xb57   :  { %v5667_v46 = vpop.f32.mrf.mxu1 }
 0xb58   :  { %5685 = vmatmul.mubr.bf16.vlgmr.msra.gmra.mxu0 %v1356_v45  ;;  %v6239_v45 = vld [vmem:[%s7780_s1 + $0x2b8] sm:$0xff]   ;;  %v6240_v46 = vld [vmem:[%s7780_s1 + $0x2b0] sm:$0xff]  }
 0xb59   :  { %5716 = vmatprep.mubr.msk.bf16.mxu0 %vm6421_vm1, %v6420_v0  ;;  %5705 = vmatpush3.bf16.msra.mxu0 %v1646_v62 }
 0xb5a   :  { %5706 = vmatprep.subr.bf16.mxu0 %v6420_v0 }
 0xb5d   :  { %5707 = vmatpush3.bf16.msra.mxu0 %v6210_v1 }
 0xb5e   :  { %5708 = vmatprep.subr.bf16.mxu0 %v6420_v0 }
 0xb61   :  { %5709 = vmatpush3.bf16.msra.mxu0 %v6212_v3 }
 0xb62   :  { %5710 = vmatprep.subr.bf16.mxu0 %v6420_v0 }
 0xb65   :  { %5711 = vmatpush3.bf16.msra.mxu0 %v6214_v5 }
 0xb66   :  { %5712 = vmatprep.subr.bf16.mxu0 %v6420_v0 }
 0xb69   :  { %5713 = vmatpush3.bf16.msra.mxu0 %v6216_v7 }
 0xb6a   :  { %5714 = vmatprep.subr.bf16.mxu0 %v6420_v0 }
 0xb6d   :  { %5715 = vmatpush3.bf16.msra.mxu0 %v6218_v9 }
 0xb6e   :  { %5736 = vmatprep.subr.bf16.mxu0 %v6420_v0 }
 0xc18   :  { %v1460_v48 = vpop.f32.mrf.mxu0 }
 0xc19   :  { %v1461_v49 = vadd.f32 %v4701_v47, %v1460_v48  ;;  %v6241_v47 = vld [vmem:[%s7780_s1 + $0x2a8] sm:$0xff]   ;;  %v6242_v48 = vld [vmem:[%s7780_s1 + $0x2a0] sm:$0xff]  }
 0xc1a   :  { %v5686_v50 = vpop.f32.mrf.mxu0 }
 0xc1b   :  { %v1466_v16 = vadd.f32 %v1461_v49, %v1255_v35  ;;  %v6231_v35 = vld [vmem:[%s7781_s2 + $0xe8] sm:$0x1f]  }
 0xc1c   :  { %v1463_v51 = vpop.f32.mrf.mxu0  ;;  %v2132_v36 = vsel %vm86_vm0, %v6231_v35, 0  ;;  %v4744_v49 = vld [vmem:[%s7785_s6 + $0xc] ss:$0 sm:$0xff] }
 0xc1d   :  { %v1469_v52 = vsel %vm82_vm2, %v1466_v16, 0.0 }
 0xc1e   :  { %1470 = vadd.xlane.f32.xlu0 %v1469_v52  ;;  %v5687_v53 = vpop.f32.mrf.mxu0 }
 0xca7   :  { %v1471_v54 = vpop.xlane.xlu0 %1470 }
 0xca8   :  { %v1472_v55 = vmul.f32 0.011111111, %v1471_v54 }
 0xcaa   :  { %v1473_v56 = vsub.f32 %v1466_v16, %v1472_v55  ;;  %v4724_v55 = vld [vmem:[%s7785_s6 + $0x3] ss:$0 sm:$0xff] }
 0xcac   :  { %v1474_v57 = vmul.f32 %v1473_v56, %v1473_v56 }
 0xcae   :  { %v1475_v58 = vsel %vm82_vm2, %v1474_v57, 0.0 }
 0xcaf   :  { %1476 = vadd.xlane.f32.xlu1 %v1475_v58 }
 0xd38   :  { %v1477_v10 = vpop.xlane.xlu1 %1476 }
 0xd39   :  { %v1478_v11 = vmul.f32 0.011111111, %v1477_v10 }
 0xd3b   :  { %v1479_v12 = vadd.f32 1e-05, %v1478_v11 }
 0xd3d   :  { %6363 = vrsqrt.f32 %v1479_v12 }
 0xd4a   :  { %v6364_v13 = vpop.eup %6363 }
 0xd4b   :  { %v1481_v15 = vmul.f32 %v6364_v13, %v1473_v56 }
 0xd4d   :  { %v1486_v18 = vmul.f32 %v4710_v14, %v1481_v15  ;;  %v4868_v14 = vld [vmem:[%s7785_s6 + $0xe] ss:$0 sm:$0xff] }
 0xd4f   :  { %v6947_v21 = vadd.f32 %v4711_v17, %v1486_v18 }
 0xd51   :  { %v6951_v22 = vpack.c.bf16 %v6947_v21, %v6947_v21 }
 0xd53   :  { %5701 = vmatmul.mubr.msk.bf16.vlgmr.msra.gmra.mxu1 %vm82_vm2, %v6951_v22  ;;  %5717 = vmatmul.mubr.msk.bf16.vlgmr.msra.gmra.mxu0 %vm82_vm2, %v6951_v22 }
 0xd54   :  { %5721 = vmatpush3.bf16.msra.mxu1 %v1737_v23  ;;  %5732 = vmatprep.mubr.msk.bf16.mxu1 %vm6421_vm1, %v6420_v0 }
 0xd55   :  { %5722 = vmatprep.subr.bf16.mxu1 %v6420_v0  ;;  %5738 = vmatprep.mubr.msk.bf16.mxu0 %vm6421_vm1, %v6420_v0 }
 0xd58   :  { %5723 = vmatpush3.bf16.msra.mxu1 %v6220_v24 }
 0xd59   :  { %5724 = vmatprep.subr.bf16.mxu1 %v6420_v0 }
 0xd5c   :  { %5725 = vmatpush3.bf16.msra.mxu1 %v6221_v25 }
 0xd5d   :  { %5726 = vmatprep.subr.bf16.mxu1 %v6420_v0 }
 0xd60   :  { %5727 = vmatpush3.bf16.msra.mxu1 %v6222_v26 }
 0xd61   :  { %5728 = vmatprep.subr.bf16.mxu1 %v6420_v0 }
 0xd64   :  { %5729 = vmatpush3.bf16.msra.mxu1 %v6223_v27 }
 0xd65   :  { %5730 = vmatprep.subr.bf16.mxu1 %v6420_v0 }
 0xd68   :  { %5731 = vmatpush3.bf16.msra.mxu1 %v6224_v28 }
 0xd69   :  { %5748 = vmatprep.subr.bf16.mxu1 %v6420_v0 }
 0xd6b   :  { %5733 = vmatmul.mubr.msk.bf16.vlgmr.msra.gmra.mxu1 %vm82_vm2, %v6951_v22 }
 0xd6c   :  { %5749 = vmatpush3.bf16.msra.mxu1 %v1945_v30  ;;  %5760 = vmatprep.mubr.msk.bf16.mxu1 %vm6421_vm1, %v6420_v0 }
 0xd6d   :  { %5750 = vmatprep.subr.bf16.mxu1 %v6420_v0 }
 0xd70   :  { %5751 = vmatpush3.bf16.msra.mxu1 %v6226_v31 }
 0xd71   :  { %5752 = vmatprep.subr.bf16.mxu1 %v6420_v0 }
 0xd74   :  { %5753 = vmatpush3.bf16.msra.mxu1 %v6227_v32 }
 0xd75   :  { %5754 = vmatprep.subr.bf16.mxu1 %v6420_v0 }
 0xd78   :  { %5755 = vmatpush3.bf16.msra.mxu1 %v6228_v33 }
 0xd79   :  { %5756 = vmatprep.subr.bf16.mxu1 %v6420_v0 }
 0xd7c   :  { %5757 = vmatpush3.bf16.msra.mxu1 %v6229_v19 }
 0xd7d   :  { %5758 = vmatprep.subr.bf16.mxu1 %v6420_v0 }
 0xd80   :  { %5759 = vmatpush3.bf16.msra.mxu1 %v6230_v34 }
 0xd81   :  { %5780 = vmatprep.subr.bf16.mxu1 %v6420_v0 }
 0xd83   :  { %5761 = vmatmul.mubr.msk.bf16.vlgmr.msra.gmra.mxu1 %vm82_vm2, %v6951_v22 }
 0xd84   :  { %5781 = vmatpush3.bf16.msra.mxu1 %v2132_v36  ;;  %5792 = vmatprep.mubr.msk.bf16.mxu1 %vm6421_vm1, %v6420_v0  ;;  %v6243_v36 = vld [vmem:[%s7780_s1 + $0x298] sm:$0x1f]  }
 0xd85   :  { %5782 = vmatprep.subr.bf16.mxu1 %v6420_v0 }
 0xd88   :  { %5783 = vmatpush3.bf16.msra.mxu1 %v6232_v37 }
 0xd89   :  { %5784 = vmatprep.subr.bf16.mxu1 %v6420_v0 }
 0xd8c   :  { %5785 = vmatpush3.bf16.msra.mxu1 %v6233_v38 }
 0xd8d   :  { %5786 = vmatprep.subr.bf16.mxu1 %v6420_v0 }
 0xd90   :  { %5787 = vmatpush3.bf16.msra.mxu1 %v6234_v39 }
 0xd91   :  { %5788 = vmatprep.subr.bf16.mxu1 %v6420_v0 }
 0xd94   :  { %5789 = vmatpush3.bf16.msra.mxu1 %v6235_v40  ;;  %v2041_v40 = vsel %vm86_vm0, %v6243_v36, 0 }
 0xd95   :  { %5790 = vmatprep.subr.bf16.mxu1 %v6420_v0 }
 0xd98   :  { %5791 = vmatpush3.bf16.msra.mxu1 %v6236_v41  ;;  %v6244_v41 = vld [vmem:[%s7780_s1 + $0x290] sm:$0xff]  }
 0xd99   :  { %5824 = vmatprep.subr.bf16.mxu1 %v6420_v0 }
 0xd9b   :  { %5793 = vmatmul.mubr.msk.bf16.vlgmr.msra.gmra.mxu1 %vm82_vm2, %v6951_v22 }
 0xd9c   :  { %5825 = vmatpush3.bf16.msra.mxu1 %v2437_v43  ;;  %5836 = vmatprep.mubr.msk.bf16.mxu1 %vm6421_vm1, %v6420_v0  ;;  %v6246_v43 = vld [vmem:[%s7780_s1 + $0x280] sm:$0xff]  }
 0xd9d   :  { %5826 = vmatprep.subr.bf16.mxu1 %v6420_v0 }
 0xda0   :  { %5827 = vmatpush3.bf16.msra.mxu1 %v6238_v44  ;;  %v6247_v44 = vld [vmem:[%s7780_s1 + $0x278] sm:$0xff]  }
 0xda1   :  { %5828 = vmatprep.subr.bf16.mxu1 %v6420_v0 }
 0xda4   :  { %5829 = vmatpush3.bf16.msra.mxu1 %v6239_v45  ;;  %v6248_v45 = vld [vmem:[%s7780_s1 + $0x270] sm:$0xff]  }
 0xda5   :  { %5830 = vmatprep.subr.bf16.mxu1 %v6420_v0 }
 0xda8   :  { %5831 = vmatpush3.bf16.msra.mxu1 %v6240_v46 }
 0xda9   :  { %5832 = vmatprep.subr.bf16.mxu1 %v6420_v0 }
 0xdac   :  { %5833 = vmatpush3.bf16.msra.mxu1 %v6241_v47 }
 0xdad   :  { %5834 = vmatprep.subr.bf16.mxu1 %v6420_v0 }
 0xdb0   :  { %5835 = vmatpush3.bf16.msra.mxu1 %v6242_v48 }
 0xdb1   :  { %5856 = vmatprep.subr.bf16.mxu1 %v6420_v0 }
 0xdb3   :  { %5837 = vmatmul.mubr.msk.bf16.vlgmr.msra.gmra.mxu1 %vm82_vm2, %v6951_v22 }
 0xdb4   :  { %5858 = vmatprep.mubr.msk.bf16.mxu1 %vm6421_vm1, %v6420_v0 }
 0xe13   :  { %v1586_v50 = vpop.f32.mrf.mxu1  ;;  %v1682_v16 = vpop.f32.mrf.mxu0 }
 0xe14   :  { %v1683_v51 = vadd.f32 %v4744_v49, %v1682_v16  ;;  %v1587_v61 = vadd.f32 %v4724_v55, %v1586_v50  ;;  %v4806_v50 = vld [vmem:[%s7785_s6 + $0xd] ss:$0 sm:$0xff] }
 0xe15   :  { %v5702_v52 = vpop.f32.mrf.mxu1  ;;  %v5718_v53 = vpop.f32.mrf.mxu0 }
 0xe16   :  { %v1780_v54 = vpack.c.bf16 %v1683_v51, %v1683_v51  ;;  %v1779_v62 = vpack.c.bf16 %v1587_v61, %v1587_v61 }
 0xe17   :  { %v1589_v56 = vpop.f32.mrf.mxu1  ;;  %v1685_v57 = vpop.f32.mrf.mxu0 }
 0xe18   :  { %v1785_v58 = vsel %vm318_vm3, %v1780_v54, 0  ;;  %v4786_v54 = vld [vmem:[%s7785_s6 + $0x4] ss:$0 sm:$0xff] }
 0xe19   :  { %v5703_v59 = vpop.f32.mrf.mxu1  ;;  %v5719_v60 = vpop.f32.mrf.mxu0  ;;  %5737 = vmatpush3.bf16.xpose.msra.mxu0 %v1785_v58 }
 0xe1a   :  { %5742 = vmatprep.subr.bf16.mxu0 %v6420_v0 }
 0xe20   :  { %5739 = vmatmul.mubr.msk.bf16.vlgmr.msra.gmra.mxu0 %vm318_vm3, %v1779_v62 }
 0xe21   :  { %5744 = vmatprep.mubr.msk.bf16.mxu0 %vm6421_vm1, %v6420_v0 }
 0xe2b   :  { %v1773_v63 = vpop.f32.mrf.mxu1 }
 0xe2c   :  { %v1839_v1 = vpack.c.bf16 %v1773_v63, %v1773_v63 }
 0xe2d   :  { %v5734_v2 = vpop.f32.mrf.mxu1 }
 0xe2e   :  { %v1849_v3 = vsel %vm387_vm5, %v1839_v1, 0 }
 0xe2f   :  { %v1776_v4 = vpop.f32.mrf.mxu1  ;;  %5743 = vmatpush3.bf16.msra.mxu0 %v1849_v3 }
 0xe30   :  { %5764 = vmatprep.subr.bf16.mxu0 %v6420_v0 }
 0xe31   :  { %v5735_v5 = vpop.f32.mrf.mxu1 }
 0xe43   :  { %v7087_v6 = vpop.f32.mrf.mxu1 }
 0xe44   :  { %v1982_v58 = vadd.f32 %v4786_v54, %v7087_v6 }
 0xe45   :  { %v5762_v7 = vpop.f32.mrf.mxu1 }
 0xe46   :  { %v2174_v60 = vpack.c.bf16 %v1982_v58, %v1982_v58 }
 0xe47   :  { %v1984_v8 = vpop.f32.mrf.mxu1 }
 0xe49   :  { %v5763_v9 = vpop.f32.mrf.mxu1 }
 0xe5b   :  { %v7089_v10 = vpop.f32.mrf.mxu1 }
 0xe5c   :  { %v2234_v59 = vpack.c.bf16 %v7089_v10, %v7089_v10  ;;  %v6249_v10 = vld [vmem:[%s7780_s1 + $0x118] sm:$0x1f]  }
 0xe5d   :  { %v5794_v11 = vpop.f32.mrf.mxu1 }
 0xe5e   :  { %v2244_v61 = vsel %vm387_vm5, %v2234_v59, 0 }
 0xe5f   :  { %v2171_v12 = vpop.f32.mrf.mxu1 }
 0xe61   :  { %v5795_v13 = vpop.f32.mrf.mxu1 }
 0xe73   :  { %v2473_v15 = vpop.f32.mrf.mxu1 }
 0xe74   :  { %v2474_v17 = vadd.f32 %v4868_v14, %v2473_v15  ;;  %v2341_v14 = vsel %vm86_vm0, %v6249_v10, 0  ;;  %v6250_v15 = vld [vmem:[%s7780_s1 + $0x110] sm:$0xff]  }
 0xe75   :  { %v5838_v18 = vpop.f32.mrf.mxu1 }
 0xe76   :  { %v2571_v20 = vpack.c.bf16 %v2474_v17, %v2474_v17  ;;  %v6251_v17 = vld [vmem:[%s7780_s1 + $0x108] sm:$0xff]   ;;  %v6252_v18 = vld [vmem:[%s7780_s1 + $0x100] sm:$0xff]  }
 0xe77   :  { %v2476_v23 = vpop.f32.mrf.mxu1 }
 0xe78   :  { %v2576_v24 = vsel %vm318_vm3, %v2571_v20, 0  ;;  %v6253_v20 = vld [vmem:[%s7780_s1 + $0xf8] sm:$0xff]   ;;  %v6254_v23 = vld [vmem:[%s7780_s1 + $0xf0] sm:$0xff]  }
 0xe79   :  { %v5839_v25 = vpop.f32.mrf.mxu1  ;;  %5857 = vmatpush3.bf16.xpose.msra.mxu1 %v2576_v24  ;;  %v6255_v24 = vld [vmem:[%s7781_s2 + $0x118] sm:$0x1f]  }
 0xe7a   :  { %5862 = vmatprep.subr.bf16.mxu1 %v6420_v0  ;;  %v2528_v25 = vsel %vm86_vm0, %v6255_v24, 0  ;;  %v6264_v24 = vld [vmem:[%s7782_s3 + $0x40] sm:$0xff]  }
 0xee0   :  { %v1821_v26 = vpop.f32.mrf.mxu0 }
 0xee1   :  { %v1827_v27 = vsel %vm365_vm4, %v1821_v26, -inf }
 0xee2   :  { %1828 = vmax.xlane.f32.xlu0 %v1827_v27  ;;  %v5740_v28 = vpop.f32.mrf.mxu0  ;;  %v6257_v27 = vld [vmem:[%s7781_s2 + $0x108] sm:$0xff]  }
 0xee3   :  { %v6258_v28 = vld [vmem:[%s7781_s2 + $0x100] sm:$0xff]  }
 0xee4   :  { %v1824_v29 = vpop.f32.mrf.mxu0 }
 0xee5   :  { %v6259_v29 = vld [vmem:[%s7781_s2 + $0xf8] sm:$0xff]  }
 0xee6   :  { %v5741_v30 = vpop.f32.mrf.mxu0 }
 0xee7   :  { %v6260_v30 = vld [vmem:[%s7781_s2 + $0xf0] sm:$0xff]  }
 0xf6b   :  { %v1829_v31 = vpop.xlane.xlu0 %1828 }
 0xf6c   :  { %v1830_v32 = vsub.f32 %v1821_v26, %v1829_v31  ;;  %v6256_v26 = vld [vmem:[%s7781_s2 + $0x110] sm:$0xff]  }
 0xf6d   :  { %v4772_v31 = vld [vmem:[%s7785_s6 + $0x15] ss:$0 sm:$0xff] }
 0xf6e   :  { %v1831_v33 = vmul.f32 1.442695, %v1830_v32  ;;  %v4834_v32 = vld [vmem:[%s7785_s6 + $0x16] ss:$0 sm:$0xff] }
 0xf70   :  { %6365 = vpow2.f32 %v1831_v33 }
 0xf7d   :  { %v6366_v19 = vpop.eup %6365 }
 0xf7e   :  { %v1833_v34 = vsel %vm365_vm4, %v6366_v19, 0.0 }
 0xf7f   :  { %1834 = vadd.xlane.f32.xlu1 %v1833_v34 }
0x1008   :  { %v1835_v35 = vpop.xlane.xlu1 %1834 }
0x1009   :  { %6367 = vrcp.f32 %v1835_v35 }
0x1016   :  { %v6368_v37 = vpop.eup %6367 }
0x1017   :  { %v1837_v38 = vmul.f32 %v6368_v37, %v6366_v19 }
0x1019   :  { %v1838_v39 = vpack.c.bf16 %v1837_v38, %v1837_v38 }
0x101b   :  { %5745 = vmatmul.mubr.msk.bf16.vlgmr.msra.gmra.mxu0 %vm365_vm4, %v1838_v39 }
0x101c   :  { %5765 = vmatpush3.bf16.msra.mxu0 %v2041_v40  ;;  %5776 = vmatprep.mubr.msk.bf16.mxu0 %vm6421_vm1, %v6420_v0 }
0x101d   :  { %5766 = vmatprep.subr.bf16.mxu0 %v6420_v0 }
0x1020   :  { %5767 = vmatpush3.bf16.msra.mxu0 %v6244_v41 }
0x1021   :  { %5768 = vmatprep.subr.bf16.mxu0 %v6420_v0 }
0x1024   :  { %5769 = vmatpush3.bf16.msra.mxu0 %v6245_v42 }
0x1025   :  { %5770 = vmatprep.subr.bf16.mxu0 %v6420_v0 }
0x1028   :  { %5771 = vmatpush3.bf16.msra.mxu0 %v6246_v43 }
0x1029   :  { %5772 = vmatprep.subr.bf16.mxu0 %v6420_v0 }
0x102c   :  { %5773 = vmatpush3.bf16.msra.mxu0 %v6247_v44 }
0x102d   :  { %5774 = vmatprep.subr.bf16.mxu0 %v6420_v0 }
0x1030   :  { %5775 = vmatpush3.bf16.msra.mxu0 %v6248_v45 }
0x1031   :  { %5796 = vmatprep.subr.bf16.mxu0 %v6420_v0 }
0x1033   :  { %5777 = vmatmul.mubr.msk.bf16.vlgmr.msra.gmra.mxu0 %vm82_vm2, %v6951_v22 }
0x1034   :  { %5798 = vmatprep.mubr.msk.bf16.mxu0 %vm6421_vm1, %v6420_v0 }
0x10db   :  { %v7130_v46 = vpop.f32.mrf.mxu0 }
0x10dc   :  { %v1886_v19 = vadd.f32 %v4772_v31, %v7130_v46  ;;  %v6271_v31 = vld [vmem:[%s7783_s4 + $0x58] sm:$0xff]  }
0x10dd   :  { %v5746_v47 = vpop.f32.mrf.mxu0 }
0x10df   :  { %v1888_v48 = vpop.f32.mrf.mxu0 }
0x10e1   :  { %v5747_v49 = vpop.f32.mrf.mxu0 }
0x10f3   :  { %v2077_v16 = vpop.f32.mrf.mxu0 }
0x10f4   :  { %v2078_v51 = vadd.f32 %v4806_v50, %v2077_v16 }
0x10f5   :  { %v5778_v52 = vpop.f32.mrf.mxu0 }
0x10f6   :  { %v2175_v53 = vpack.c.bf16 %v2078_v51, %v2078_v51 }
0x10f7   :  { %v2080_v55 = vpop.f32.mrf.mxu0 }
0x10f8   :  { %v2180_v56 = vsel %vm318_vm3, %v2175_v53, 0 }
0x10f9   :  { %v5779_v57 = vpop.f32.mrf.mxu0  ;;  %5797 = vmatpush3.bf16.xpose.msra.mxu0 %v2180_v56 }
0x10fa   :  { %5802 = vmatprep.subr.bf16.mxu0 %v6420_v0 }
0x1100   :  { %5799 = vmatmul.mubr.msk.bf16.vlgmr.msra.gmra.mxu0 %vm318_vm3, %v2174_v60 }
0x1101   :  { %5803 = vmatpush3.bf16.msra.mxu0 %v2244_v61  ;;  %5804 = vmatprep.mubr.msk.bf16.mxu0 %vm6421_vm1, %v6420_v0 }
0x1102   :  { %5808 = vmatprep.subr.bf16.mxu0 %v6420_v0 }
0x11c0   :  { %v2216_v62 = vpop.f32.mrf.mxu0 }
0x11c1   :  { %v2222_v63 = vsel %vm365_vm4, %v2216_v62, -inf }
0x11c2   :  { %2223 = vmax.xlane.f32.xlu0 %v2222_v63  ;;  %v5800_v1 = vpop.f32.mrf.mxu0 }
0x11c3   :  { %v4896_v1 = vld [vmem:[%s7785_s6 + $0x17] ss:$0 sm:$0xff] }
0x11c4   :  { %v2219_v2 = vpop.f32.mrf.mxu0 }
0x11c6   :  { %v5801_v3 = vpop.f32.mrf.mxu0 }
0x124b   :  { %v2224_v4 = vpop.xlane.xlu0 %2223 }
0x124c   :  { %v2225_v5 = vsub.f32 %v2216_v62, %v2224_v4 }
0x124e   :  { %v2226_v6 = vmul.f32 1.442695, %v2225_v5 }
0x1250   :  { %6369 = vpow2.f32 %v2226_v6 }
0x125d   :  { %v6370_v7 = vpop.eup %6369 }
0x125e   :  { %v2228_v8 = vsel %vm365_vm4, %v6370_v7, 0.0 }
0x125f   :  { %2229 = vadd.xlane.f32.xlu1 %v2228_v8 }
0x12e8   :  { %v2230_v9 = vpop.xlane.xlu1 %2229 }
0x12e9   :  { %6371 = vrcp.f32 %v2230_v9 }
0x12f6   :  { %v6372_v11 = vpop.eup %6371 }
0x12f7   :  { %v2232_v12 = vmul.f32 %v6372_v11, %v6370_v7  ;;  %v4898_v7 = vld [vmem:[%s7785_s6 + $0x1c] ss:$0 sm:$0xff] }
0x12f9   :  { %v2233_v13 = vpack.c.bf16 %v2232_v12, %v2232_v12 }
0x12fb   :  { %5805 = vmatmul.mubr.msk.bf16.vlgmr.msra.gmra.mxu0 %vm365_vm4, %v2233_v13 }
0x12fc   :  { %5809 = vmatpush3.bf16.msra.mxu0 %v2341_v14  ;;  %5820 = vmatprep.mubr.msk.bf16.mxu0 %vm6421_vm1, %v6420_v0 }
0x12fd   :  { %5810 = vmatprep.subr.bf16.mxu0 %v6420_v0 }
0x1300   :  { %5811 = vmatpush3.bf16.msra.mxu0 %v6250_v15 }
0x1301   :  { %5812 = vmatprep.subr.bf16.mxu0 %v6420_v0 }
0x1304   :  { %5813 = vmatpush3.bf16.msra.mxu0 %v6251_v17 }
0x1305   :  { %5814 = vmatprep.subr.bf16.mxu0 %v6420_v0 }
0x1308   :  { %5815 = vmatpush3.bf16.msra.mxu0 %v6252_v18  ;;  %v6261_v18 = vld [vmem:[%s7782_s3 + $0x58] sm:$0x1f]  }
0x1309   :  { %5816 = vmatprep.subr.bf16.mxu0 %v6420_v0 }
0x130c   :  { %5817 = vmatpush3.bf16.msra.mxu0 %v6253_v20  ;;  %v2773_v20 = vsel %vm86_vm0, %v6261_v18, 0 }
0x130d   :  { %5818 = vmatprep.subr.bf16.mxu0 %v6420_v0 }
0x1310   :  { %5819 = vmatpush3.bf16.msra.mxu0 %v6254_v23  ;;  %v6263_v23 = vld [vmem:[%s7782_s3 + $0x48] sm:$0xff]  }
0x1311   :  { %5840 = vmatprep.subr.bf16.mxu0 %v6420_v0 }
0x1313   :  { %5821 = vmatmul.mubr.msk.bf16.vlgmr.msra.gmra.mxu0 %vm82_vm2, %v6951_v22 }
0x1314   :  { %5841 = vmatpush3.bf16.msra.mxu0 %v2528_v25  ;;  %5852 = vmatprep.mubr.msk.bf16.mxu0 %vm6421_vm1, %v6420_v0  ;;  %v6265_v25 = vld [vmem:[%s7782_s3 + $0x38] sm:$0xff]  }
0x1315   :  { %5842 = vmatprep.subr.bf16.mxu0 %v6420_v0 }
0x1318   :  { %5843 = vmatpush3.bf16.msra.mxu0 %v6256_v26  ;;  %v6266_v26 = vld [vmem:[%s7782_s3 + $0x30] sm:$0xff]  }
0x1319   :  { %5844 = vmatprep.subr.bf16.mxu0 %v6420_v0 }
0x131c   :  { %5845 = vmatpush3.bf16.msra.mxu0 %v6257_v27  ;;  %v6267_v27 = vld [vmem:[%s7783_s4 + $0x78] sm:$0xff]  }
0x131d   :  { %5846 = vmatprep.subr.bf16.mxu0 %v6420_v0 }
0x1320   :  { %5847 = vmatpush3.bf16.msra.mxu0 %v6258_v28  ;;  %v6268_v28 = vld [vmem:[%s7783_s4 + $0x70] sm:$0xff]  }
0x1321   :  { %5848 = vmatprep.subr.bf16.mxu0 %v6420_v0 }
0x1324   :  { %5849 = vmatpush3.bf16.msra.mxu0 %v6259_v29  ;;  %v6269_v29 = vld [vmem:[%s7783_s4 + $0x68] sm:$0xff]  }
0x1325   :  { %5850 = vmatprep.subr.bf16.mxu0 %v6420_v0 }
0x1328   :  { %5851 = vmatpush3.bf16.msra.mxu0 %v6260_v30  ;;  %v6270_v30 = vld [vmem:[%s7783_s4 + $0x60] sm:$0xff]  }
0x1329   :  { %5884 = vmatprep.subr.bf16.mxu0 %v6420_v0 }
0x132b   :  { %5853 = vmatmul.mubr.msk.bf16.vlgmr.msra.gmra.mxu0 %vm82_vm2, %v6951_v22  ;;  %v4848_v22 = vld [vmem:[%s7785_s6 + $0x5] ss:$0 sm:$0xff] }
0x132c   :  { %5900 = vmatprep.mubr.msk.bf16.mxu0 %vm6421_vm1, %v6420_v0  ;;  %5885 = vmatpush3.bf16.msra.mxu0 %v6267_v27 }
0x132d   :  { %5886 = vmatprep.subr.bf16.mxu0 %v6420_v0 }
0x1330   :  { %5887 = vmatpush3.bf16.msra.mxu0 %v6268_v28 }
0x1331   :  { %5888 = vmatprep.subr.bf16.mxu0 %v6420_v0 }
0x1334   :  { %5889 = vmatpush3.bf16.msra.mxu0 %v6269_v29  ;;  %v6288_v29 = vld [vmem:[%s7781_s2 + $0x140] sm:$0xff]  }
0x1335   :  { %5890 = vmatprep.subr.bf16.mxu0 %v6420_v0 }
0x1338   :  { %5891 = vmatpush3.bf16.msra.mxu0 %v6270_v30  ;;  %v6289_v30 = vld [vmem:[%s7781_s2 + $0x138] sm:$0xff]  }
0x1339   :  { %5892 = vmatprep.subr.bf16.mxu0 %v6420_v0 }
0x133c   :  { %5893 = vmatpush3.bf16.msra.mxu0 %v6271_v31  ;;  %v6290_v31 = vld [vmem:[%s7781_s2 + $0x130] sm:$0xff]  }
0x133d   :  { %5894 = vmatprep.subr.bf16.mxu0 %v6420_v0 }
0x13bb   :  { %v2280_v33 = vpop.f32.mrf.mxu0 }
0x13bc   :  { %v2281_v34 = vadd.f32 %v4834_v32, %v2280_v33  ;;  %v6272_v32 = vld [vmem:[%s7783_s4 + $0x50] sm:$0xff]  }
0x13bd   :  { %v5806_v35 = vpop.f32.mrf.mxu0  ;;  %5895 = vmatpush3.bf16.msra.mxu0 %v6272_v32  ;;  %v6291_v32 = vld [vmem:[%s7781_s2 + $0x128] sm:$0xff]  }
0x13be   :  { %v2286_v36 = vadd.f32 %v2281_v34, %v1886_v19  ;;  %5896 = vmatprep.subr.bf16.mxu0 %v6420_v0 }
0x13bf   :  { %v2283_v37 = vpop.f32.mrf.mxu0 }
0x13c1   :  { %v5807_v38 = vpop.f32.mrf.mxu0 }
0x13c2   :  { %v4900_v38 = vld [vmem:[%s7785_s6 + $0x22] ss:$0 sm:$0xff] }
0x13d3   :  { %v2377_v39 = vpop.f32.mrf.mxu0 }
0x13d4   :  { %v2378_v40 = vadd.f32 %v4848_v22, %v2377_v39 }
0x13d5   :  { %v5822_v41 = vpop.f32.mrf.mxu0 }
0x13d6   :  { %v2570_v42 = vpack.c.bf16 %v2378_v40, %v2378_v40  ;;  %v6273_v41 = vld [vmem:[%s7783_s4 + $0x48] sm:$0xff]  }
0x13d7   :  { %v2380_v43 = vpop.f32.mrf.mxu0  ;;  %5897 = vmatpush3.bf16.msra.mxu0 %v6273_v41  ;;  %v6300_v41 = vld [vmem:[%s7781_s2 + $0x170] sm:$0xff]  }
0x13d8   :  { %5859 = vmatmul.mubr.msk.bf16.vlgmr.msra.gmra.mxu1 %vm318_vm3, %v2570_v42  ;;  %5898 = vmatprep.subr.bf16.mxu0 %v6420_v0  ;;  %v6274_v42 = vld [vmem:[%s7783_s4 + $0x40] sm:$0xff]  }
0x13d9   :  { %v5823_v44 = vpop.f32.mrf.mxu0  ;;  %5864 = vmatprep.mubr.msk.bf16.mxu1 %vm6421_vm1, %v6420_v0  ;;  %v4913_v43 = vld [vmem:[%s7785_s6 + $0x25] ss:$0 sm:$0xff] }
0x13db   :  { %5899 = vmatpush3.bf16.msra.mxu0 %v6274_v42  ;;  %v6301_v42 = vld [vmem:[%s7781_s2 + $0x168] sm:$0xff]  }
0x13dc   :  { %5920 = vmatprep.subr.bf16.mxu0 %v6420_v0 }
0x13eb   :  { %v2564_v45 = vpop.f32.mrf.mxu0 }
0x13ec   :  { %v2630_v46 = vpack.c.bf16 %v2564_v45, %v2564_v45 }
0x13ed   :  { %v5854_v47 = vpop.f32.mrf.mxu0 }
0x13ee   :  { %v2640_v48 = vsel %vm387_vm5, %v2630_v46, 0 }
0x13ef   :  { %v2567_v49 = vpop.f32.mrf.mxu0  ;;  %5863 = vmatpush3.bf16.msra.mxu1 %v2640_v48 }
0x13f0   :  { %5868 = vmatprep.subr.bf16.mxu1 %v6420_v0 }
0x13f1   :  { %v5855_v50 = vpop.f32.mrf.mxu0 }
0x1498   :  { %v2612_v16 = vpop.f32.mrf.mxu1 }
0x1499   :  { %v2618_v51 = vsel %vm365_vm4, %v2612_v16, -inf }
0x149a   :  { %2619 = vmax.xlane.f32.xlu0 %v2618_v51  ;;  %v5860_v52 = vpop.f32.mrf.mxu1 }
0x149c   :  { %v2615_v53 = vpop.f32.mrf.mxu1 }
0x149e   :  { %v5861_v54 = vpop.f32.mrf.mxu1 }
0x1523   :  { %v2620_v55 = vpop.xlane.xlu0 %2619 }
0x1524   :  { %v2621_v56 = vsub.f32 %v2612_v16, %v2620_v55  ;;  %v4937_v16 = vld [vmem:[%s7785_s6 + $0x28] ss:$0 sm:$0xff] }
0x1526   :  { %v2622_v57 = vmul.f32 1.442695, %v2621_v56 }
0x1528   :  { %6373 = vpow2.f32 %v2622_v57 }
0x1535   :  { %v6374_v58 = vpop.eup %6373 }
0x1536   :  { %v2624_v59 = vsel %vm365_vm4, %v6374_v58, 0.0 }
0x1537   :  { %2625 = vadd.xlane.f32.xlu1 %v2624_v59 }
0x15c0   :  { %v2626_v60 = vpop.xlane.xlu1 %2625 }
0x15c1   :  { %6375 = vrcp.f32 %v2626_v60 }
0x15ce   :  { %v6376_v61 = vpop.eup %6375 }
0x15cf   :  { %v2628_v62 = vmul.f32 %v6376_v61, %v6374_v58 }
0x15d1   :  { %v2629_v63 = vpack.c.bf16 %v2628_v62, %v2628_v62 }
0x15d3   :  { %5865 = vmatmul.mubr.msk.bf16.vlgmr.msra.gmra.mxu1 %vm365_vm4, %v2629_v63  ;;  %v6275_v63 = vld [vmem:[%s7780_s1 + $0x148] sm:$0x1f]  }
0x15d4   :  { %5880 = vmatprep.mubr.msk.bf16.mxu1 %vm6421_vm1, %v6420_v0  ;;  %5869 = vmatpush3.bf16.msra.mxu1 %v2773_v20  ;;  %v4946_v20 = vld [vmem:[%s7785_s6 + $0x2b] ss:$0 sm:$0xff] }
0x15d5   :  { %5870 = vmatprep.subr.bf16.mxu1 %v6420_v0 }
0x1693   :  { %v2676_v2 = vpop.f32.mrf.mxu1 }
0x1694   :  { %v2677_v3 = vadd.f32 %v4896_v1, %v2676_v2  ;;  %v6276_v1 = vld [vmem:[%s7780_s1 + $0x2f8] sm:$0x1f]   ;;  %v3011_v2 = vsel %vm86_vm0, %v6275_v63, 0 }
0x1695   :  { %v5866_v4 = vpop.f32.mrf.mxu1 }
0x1696   :  { %v2682_v5 = vadd.f32 %v2677_v3, %v2286_v36  ;;  %v4899_v36 = vld [vmem:[%s7785_s6 + $0x1f] ss:$0 sm:$0xff]  ;;  %v3107_v3 = vsel %vm86_vm0, %v6276_v1, 0  ;;  %v6277_v4 = vld [vmem:[%s7780_s1 + $0x140] sm:$0xff]  }
0x1697   :  { %v2679_v6 = vpop.f32.mrf.mxu1 }
0x1698   :  { %v2683_v8 = vadd.f32 %v2682_v5, %v6947_v21  ;;  %v6262_v21 = vld [vmem:[%s7782_s3 + $0x50] sm:$0xff]   ;;  %v6279_v6 = vld [vmem:[%s7780_s1 + $0x138] sm:$0xff]  }
0x1699   :  { %v5867_v9 = vpop.f32.mrf.mxu1  ;;  %5871 = vmatpush3.bf16.msra.mxu1 %v6262_v21  ;;  %v6278_v5 = vld [vmem:[%s7780_s1 + $0x2f0] sm:$0xff]  }
0x169a   :  { %v2689_v10 = vadd.f32 %v4898_v7, %v2683_v8  ;;  %5872 = vmatprep.subr.bf16.mxu1 %v6420_v0  ;;  %v6280_v7 = vld [vmem:[%s7780_s1 + $0x2e8] sm:$0xff]   ;;  %v6281_v8 = vld [vmem:[%s7780_s1 + $0x130] sm:$0xff]   ;;  %v6282_v9 = vld [vmem:[%s7780_s1 + $0x2e0] sm:$0xff]  }
0x169c   :  { %v2692_v11 = vsel %vm82_vm2, %v2689_v10, 0.0 }
0x169d   :  { %2693 = vadd.xlane.f32.xlu0 %v2692_v11  ;;  %5873 = vmatpush3.bf16.msra.mxu1 %v6263_v23  ;;  %v6284_v11 = vld [vmem:[%s7780_s1 + $0x2d8] sm:$0xff]   ;;  %v4947_v23 = vld [vmem:[%s7785_s6 + $0x2e] ss:$0 sm:$0xff] }
0x169e   :  { %5874 = vmatprep.subr.bf16.mxu1 %v6420_v0 }
0x16a1   :  { %5875 = vmatpush3.bf16.msra.mxu1 %v6264_v24 }
0x16a2   :  { %5876 = vmatprep.subr.bf16.mxu1 %v6420_v0 }
0x16a5   :  { %5877 = vmatpush3.bf16.msra.mxu1 %v6265_v25  ;;  %v6287_v25 = vld [vmem:[%s7781_s2 + $0x148] sm:$0x1f]  }
0x16a6   :  { %5878 = vmatprep.subr.bf16.mxu1 %v6420_v0  ;;  %v3198_v28 = vsel %vm86_vm0, %v6287_v25, 0 }
0x16a9   :  { %5879 = vmatpush3.bf16.msra.mxu1 %v6266_v26 }
0x16aa   :  { %5904 = vmatprep.subr.bf16.mxu1 %v6420_v0 }
0x1726   :  { %v2694_v12 = vpop.xlane.xlu0 %2693 }
0x1727   :  { %v2695_v13 = vmul.f32 0.011111111, %v2694_v12  ;;  %v6285_v12 = vld [vmem:[%s7780_s1 + $0x120] sm:$0xff]  }
0x1729   :  { %v2696_v14 = vsub.f32 %v2689_v10, %v2695_v13  ;;  %v6283_v10 = vld [vmem:[%s7780_s1 + $0x128] sm:$0xff]   ;;  %v6286_v13 = vld [vmem:[%s7780_s1 + $0x2d0] sm:$0xff]  }
0x172b   :  { %v2697_v15 = vmul.f32 %v2696_v14, %v2696_v14 }
0x172d   :  { %v2698_v17 = vsel %vm82_vm2, %v2697_v15, 0.0 }
0x172e   :  { %2699 = vadd.xlane.f32.xlu1 %v2698_v17 }
0x17b7   :  { %v2700_v33 = vpop.xlane.xlu1 %2699 }
0x17b8   :  { %v2701_v19 = vmul.f32 0.011111111, %v2700_v33  ;;  %v6292_v33 = vld [vmem:[%s7781_s2 + $0x120] sm:$0xff]  }
0x17ba   :  { %v2702_v34 = vadd.f32 1e-05, %v2701_v19  ;;  %v6293_v19 = vld [vmem:[%s7780_s1 + $0x178] sm:$0x1f]  }
0x17bc   :  { %6377 = vrsqrt.f32 %v2702_v34  ;;  %v3406_v34 = vsel %vm86_vm0, %v6293_v19, 0 }
0x17c9   :  { %v6378_v35 = vpop.eup %6377 }
0x17ca   :  { %v2704_v37 = vmul.f32 %v6378_v35, %v2696_v14  ;;  %v6294_v35 = vld [vmem:[%s7780_s1 + $0x170] sm:$0xff]  }
0x17cc   :  { %v2709_v22 = vmul.f32 %v4899_v36, %v2704_v37  ;;  %v6295_v36 = vld [vmem:[%s7780_s1 + $0x168] sm:$0xff]   ;;  %v6296_v37 = vld [vmem:[%s7780_s1 + $0x160] sm:$0xff]  }
0x17ce   :  { %v2714_v39 = vadd.f32 %v4900_v38, %v2709_v22  ;;  %v6297_v38 = vld [vmem:[%s7780_s1 + $0x158] sm:$0xff]   ;;  %v6298_v22 = vld [vmem:[%s7780_s1 + $0x150] sm:$0xff]  }
0x17d0   :  { %v2715_v40 = vpack.c.bf16 %v2714_v39, %v2714_v39 }
0x17d2   :  { %5881 = vmatmul.mubr.msk.bf16.vlgmr.msra.gmra.mxu1 %vm82_vm2, %v2715_v40 }
0x17d3   :  { %5916 = vmatprep.mubr.msk.bf16.mxu1 %vm6421_vm1, %v6420_v0  ;;  %5905 = vmatpush3.bf16.msra.mxu1 %v3011_v2 }
0x17d4   :  { %5906 = vmatprep.subr.bf16.mxu1 %v6420_v0 }
0x17d7   :  { %5907 = vmatpush3.bf16.msra.mxu1 %v6277_v4 }
0x17d8   :  { %5908 = vmatprep.subr.bf16.mxu1 %v6420_v0 }
0x17db   :  { %5909 = vmatpush3.bf16.msra.mxu1 %v6279_v6 }
0x17dc   :  { %5910 = vmatprep.subr.bf16.mxu1 %v6420_v0 }
0x17df   :  { %5911 = vmatpush3.bf16.msra.mxu1 %v6281_v8 }
0x17e0   :  { %5912 = vmatprep.subr.bf16.mxu1 %v6420_v0 }
0x17e3   :  { %5913 = vmatpush3.bf16.msra.mxu1 %v6283_v10 }
0x17e4   :  { %5914 = vmatprep.subr.bf16.mxu1 %v6420_v0 }
0x17e7   :  { %5915 = vmatpush3.bf16.msra.mxu1 %v6285_v12 }
0x17e8   :  { %5936 = vmatprep.subr.bf16.mxu1 %v6420_v0 }
0x1892   :  { %v2809_v44 = vpop.f32.mrf.mxu1 }
0x1893   :  { %v2810_v45 = vadd.f32 %v4913_v43, %v2809_v44  ;;  %v6302_v43 = vld [vmem:[%s7781_s2 + $0x160] sm:$0xff]   ;;  %v6303_v44 = vld [vmem:[%s7781_s2 + $0x158] sm:$0xff]  }
0x1894   :  { %v5882_v46 = vpop.f32.mrf.mxu1 }
0x1895   :  { %v2815_v47 = vmax.f32 %v2810_v45, 0.0  ;;  %v6304_v45 = vld [vmem:[%s7781_s2 + $0x150] sm:$0xff]   ;;  %v6305_v46 = vld [vmem:[%s7780_s1 + $0x358] sm:$0x1f]  }
0x1896   :  { %v2812_v48 = vpop.f32.mrf.mxu1 }
0x1897   :  { %v2816_v49 = vpack.c.bf16 %v2815_v47, %v2815_v47  ;;  %v3898_v47 = vsel %vm86_vm0, %v6305_v46, 0  ;;  %v6306_v48 = vld [vmem:[%s7780_s1 + $0x350] sm:$0xff]   ;;  %v6313_v46 = vld [vmem:[%s7780_s1 + $0x318] sm:$0xff]  }
0x1898   :  { %v5883_v50 = vpop.f32.mrf.mxu1 }
0x1899   :  { %5901 = vmatmul.mubr.bf16.vlgmr.msra.gmra.mxu0 %v2816_v49  ;;  %v6307_v49 = vld [vmem:[%s7780_s1 + $0x348] sm:$0xff]   ;;  %v6308_v50 = vld [vmem:[%s7780_s1 + $0x340] sm:$0xff]  }
0x189a   :  { %5932 = vmatprep.mubr.msk.bf16.mxu0 %vm6421_vm1, %v6420_v0  ;;  %5921 = vmatpush3.bf16.msra.mxu0 %v3107_v3 }
0x189b   :  { %5922 = vmatprep.subr.bf16.mxu0 %v6420_v0 }
0x189e   :  { %5923 = vmatpush3.bf16.msra.mxu0 %v6278_v5 }
0x189f   :  { %5924 = vmatprep.subr.bf16.mxu0 %v6420_v0 }
0x18a2   :  { %5925 = vmatpush3.bf16.msra.mxu0 %v6280_v7 }
0x18a3   :  { %5926 = vmatprep.subr.bf16.mxu0 %v6420_v0 }
0x18a6   :  { %5927 = vmatpush3.bf16.msra.mxu0 %v6282_v9 }
0x18a7   :  { %5928 = vmatprep.subr.bf16.mxu0 %v6420_v0 }
0x18aa   :  { %5929 = vmatpush3.bf16.msra.mxu0 %v6284_v11 }
0x18ab   :  { %5930 = vmatprep.subr.bf16.mxu0 %v6420_v0 }
0x18ae   :  { %5931 = vmatpush3.bf16.msra.mxu0 %v6286_v13 }
0x18af   :  { %5952 = vmatprep.subr.bf16.mxu0 %v6420_v0 }
0x1959   :  { %v2921_v51 = vpop.f32.mrf.mxu0 }
0x195a   :  { %v2922_v52 = vadd.f32 %v4937_v16, %v2921_v51  ;;  %v6309_v16 = vld [vmem:[%s7780_s1 + $0x338] sm:$0xff]   ;;  %v6310_v51 = vld [vmem:[%s7780_s1 + $0x330] sm:$0xff]  }
0x195b   :  { %v5902_v53 = vpop.f32.mrf.mxu0 }
0x195c   :  { %v2927_v54 = vadd.f32 %v2922_v52, %v2714_v39  ;;  %v6299_v39 = vld [vmem:[%s7781_s2 + $0x178] sm:$0x1f]   ;;  %v4980_v52 = vld [vmem:[%s7785_s6 + $0xf] ss:$0 sm:$0xff] }
0x195d   :  { %v2924_v55 = vpop.f32.mrf.mxu0  ;;  %v3593_v40 = vsel %vm86_vm0, %v6299_v39, 0 }
0x195e   :  { %v2930_v56 = vsel %vm82_vm2, %v2927_v54, 0.0 }
0x195f   :  { %2931 = vadd.xlane.f32.xlu0 %v2930_v56  ;;  %v5903_v57 = vpop.f32.mrf.mxu0 }
0x19e8   :  { %v2932_v58 = vpop.xlane.xlu0 %2931 }
0x19e9   :  { %v2933_v59 = vmul.f32 0.011111111, %v2932_v58 }
0x19eb   :  { %v2934_v60 = vsub.f32 %v2927_v54, %v2933_v59  ;;  %v4960_v59 = vld [vmem:[%s7785_s6 + $0x6] ss:$0 sm:$0xff] }
0x19ed   :  { %v2935_v61 = vmul.f32 %v2934_v60, %v2934_v60 }
0x19ef   :  { %v2936_v62 = vsel %vm82_vm2, %v2935_v61, 0.0 }
0x19f0   :  { %2937 = vadd.xlane.f32.xlu1 %v2936_v62 }
0x1a79   :  { %v2938_v14 = vpop.xlane.xlu1 %2937 }
0x1a7a   :  { %v2939_v15 = vmul.f32 0.011111111, %v2938_v14 }
0x1a7c   :  { %v2940_v17 = vadd.f32 1e-05, %v2939_v15 }
0x1a7e   :  { %6379 = vrsqrt.f32 %v2940_v17 }
0x1a8b   :  { %v6380_v18 = vpop.eup %6379 }
0x1a8c   :  { %v2942_v21 = vmul.f32 %v6380_v18, %v2934_v60 }
0x1a8e   :  { %v2947_v24 = vmul.f32 %v4946_v20, %v2942_v21  ;;  %v5104_v20 = vld [vmem:[%s7785_s6 + $0x11] ss:$0 sm:$0xff] }
0x1a90   :  { %v7375_v26 = vadd.f32 %v4947_v23, %v2947_v24 }
0x1a92   :  { %v7379_v27 = vpack.c.bf16 %v7375_v26, %v7375_v26 }
0x1a94   :  { %5917 = vmatmul.mubr.msk.bf16.vlgmr.msra.gmra.mxu1 %vm82_vm2, %v7379_v27  ;;  %5933 = vmatmul.mubr.msk.bf16.vlgmr.msra.gmra.mxu0 %vm82_vm2, %v7379_v27 }
0x1a95   :  { %5937 = vmatpush3.bf16.msra.mxu1 %v3198_v28  ;;  %5948 = vmatprep.mubr.msk.bf16.mxu1 %vm6421_vm1, %v6420_v0 }
0x1a96   :  { %5938 = vmatprep.subr.bf16.mxu1 %v6420_v0  ;;  %5954 = vmatprep.mubr.msk.bf16.mxu0 %vm6421_vm1, %v6420_v0 }
0x1a99   :  { %5939 = vmatpush3.bf16.msra.mxu1 %v6288_v29 }
0x1a9a   :  { %5940 = vmatprep.subr.bf16.mxu1 %v6420_v0 }
0x1a9d   :  { %5941 = vmatpush3.bf16.msra.mxu1 %v6289_v30 }
0x1a9e   :  { %5942 = vmatprep.subr.bf16.mxu1 %v6420_v0 }
0x1aa1   :  { %5943 = vmatpush3.bf16.msra.mxu1 %v6290_v31 }
0x1aa2   :  { %5944 = vmatprep.subr.bf16.mxu1 %v6420_v0 }
0x1aa5   :  { %5945 = vmatpush3.bf16.msra.mxu1 %v6291_v32 }
0x1aa6   :  { %5946 = vmatprep.subr.bf16.mxu1 %v6420_v0 }
0x1aa9   :  { %5947 = vmatpush3.bf16.msra.mxu1 %v6292_v33 }
0x1aaa   :  { %5964 = vmatprep.subr.bf16.mxu1 %v6420_v0 }
0x1aac   :  { %5949 = vmatmul.mubr.msk.bf16.vlgmr.msra.gmra.mxu1 %vm82_vm2, %v7379_v27 }
0x1aad   :  { %5965 = vmatpush3.bf16.msra.mxu1 %v3406_v34  ;;  %5976 = vmatprep.mubr.msk.bf16.mxu1 %vm6421_vm1, %v6420_v0 }
0x1aae   :  { %5966 = vmatprep.subr.bf16.mxu1 %v6420_v0 }
0x1ab1   :  { %5967 = vmatpush3.bf16.msra.mxu1 %v6294_v35 }
0x1ab2   :  { %5968 = vmatprep.subr.bf16.mxu1 %v6420_v0 }
0x1ab5   :  { %5969 = vmatpush3.bf16.msra.mxu1 %v6295_v36 }
0x1ab6   :  { %5970 = vmatprep.subr.bf16.mxu1 %v6420_v0 }
0x1ab9   :  { %5971 = vmatpush3.bf16.msra.mxu1 %v6296_v37 }
0x1aba   :  { %5972 = vmatprep.subr.bf16.mxu1 %v6420_v0 }
0x1abd   :  { %5973 = vmatpush3.bf16.msra.mxu1 %v6297_v38 }
0x1abe   :  { %5974 = vmatprep.subr.bf16.mxu1 %v6420_v0 }
0x1ac1   :  { %5975 = vmatpush3.bf16.msra.mxu1 %v6298_v22 }
0x1ac2   :  { %5996 = vmatprep.subr.bf16.mxu1 %v6420_v0 }
0x1ac4   :  { %5977 = vmatmul.mubr.msk.bf16.vlgmr.msra.gmra.mxu1 %vm82_vm2, %v7379_v27 }
0x1ac5   :  { %5997 = vmatpush3.bf16.msra.mxu1 %v3593_v40  ;;  %6008 = vmatprep.mubr.msk.bf16.mxu1 %vm6421_vm1, %v6420_v0  ;;  %v6311_v40 = vld [vmem:[%s7780_s1 + $0x328] sm:$0x1f]  }
0x1ac6   :  { %5998 = vmatprep.subr.bf16.mxu1 %v6420_v0 }
0x1ac9   :  { %5999 = vmatpush3.bf16.msra.mxu1 %v6300_v41 }
0x1aca   :  { %6000 = vmatprep.subr.bf16.mxu1 %v6420_v0 }
0x1acd   :  { %6001 = vmatpush3.bf16.msra.mxu1 %v6301_v42 }
0x1ace   :  { %6002 = vmatprep.subr.bf16.mxu1 %v6420_v0 }
0x1ad1   :  { %6003 = vmatpush3.bf16.msra.mxu1 %v6302_v43 }
0x1ad2   :  { %6004 = vmatprep.subr.bf16.mxu1 %v6420_v0 }
0x1ad5   :  { %6005 = vmatpush3.bf16.msra.mxu1 %v6303_v44  ;;  %v3502_v44 = vsel %vm86_vm0, %v6311_v40, 0 }
0x1ad6   :  { %6006 = vmatprep.subr.bf16.mxu1 %v6420_v0 }
0x1ad9   :  { %6007 = vmatpush3.bf16.msra.mxu1 %v6304_v45  ;;  %v6312_v45 = vld [vmem:[%s7780_s1 + $0x320] sm:$0xff]  }
0x1ada   :  { %6040 = vmatprep.subr.bf16.mxu1 %v6420_v0 }
0x1adc   :  { %6009 = vmatmul.mubr.msk.bf16.vlgmr.msra.gmra.mxu1 %vm82_vm2, %v7379_v27 }
0x1add   :  { %6041 = vmatpush3.bf16.msra.mxu1 %v3898_v47  ;;  %6052 = vmatprep.mubr.msk.bf16.mxu1 %vm6421_vm1, %v6420_v0  ;;  %v6314_v47 = vld [vmem:[%s7780_s1 + $0x310] sm:$0xff]  }
0x1ade   :  { %6042 = vmatprep.subr.bf16.mxu1 %v6420_v0 }
0x1ae1   :  { %6043 = vmatpush3.bf16.msra.mxu1 %v6306_v48  ;;  %v6315_v48 = vld [vmem:[%s7780_s1 + $0x308] sm:$0xff]  }
0x1ae2   :  { %6044 = vmatprep.subr.bf16.mxu1 %v6420_v0 }
0x1ae5   :  { %6045 = vmatpush3.bf16.msra.mxu1 %v6307_v49  ;;  %v6316_v49 = vld [vmem:[%s7780_s1 + $0x300] sm:$0xff]  }
0x1ae6   :  { %6046 = vmatprep.subr.bf16.mxu1 %v6420_v0 }
0x1ae9   :  { %6047 = vmatpush3.bf16.msra.mxu1 %v6308_v50 }
0x1aea   :  { %6048 = vmatprep.subr.bf16.mxu1 %v6420_v0 }
0x1aed   :  { %6049 = vmatpush3.bf16.msra.mxu1 %v6309_v16 }
0x1aee   :  { %6050 = vmatprep.subr.bf16.mxu1 %v6420_v0 }
0x1af1   :  { %6051 = vmatpush3.bf16.msra.mxu1 %v6310_v51 }
0x1af2   :  { %6072 = vmatprep.subr.bf16.mxu1 %v6420_v0 }
0x1af4   :  { %6053 = vmatmul.mubr.msk.bf16.vlgmr.msra.gmra.mxu1 %vm82_vm2, %v7379_v27 }
0x1af5   :  { %6074 = vmatprep.mubr.msk.bf16.mxu1 %vm6421_vm1, %v6420_v0 }
0x1b54   :  { %v3047_v53 = vpop.f32.mrf.mxu1  ;;  %v3143_v54 = vpop.f32.mrf.mxu0 }
0x1b55   :  { %v3144_v55 = vadd.f32 %v4980_v52, %v3143_v54  ;;  %v3048_v2 = vadd.f32 %v4960_v59, %v3047_v53  ;;  %v5042_v53 = vld [vmem:[%s7785_s6 + $0x10] ss:$0 sm:$0xff] }
0x1b56   :  { %v5918_v56 = vpop.f32.mrf.mxu1  ;;  %v5934_v57 = vpop.f32.mrf.mxu0 }
0x1b57   :  { %v3241_v58 = vpack.c.bf16 %v3144_v55, %v3144_v55  ;;  %v3240_v3 = vpack.c.bf16 %v3048_v2, %v3048_v2 }
0x1b58   :  { %v3050_v60 = vpop.f32.mrf.mxu1  ;;  %v3146_v61 = vpop.f32.mrf.mxu0 }
0x1b59   :  { %v3246_v62 = vsel %vm318_vm3, %v3241_v58, 0  ;;  %v5022_v58 = vld [vmem:[%s7785_s6 + $0x7] ss:$0 sm:$0xff] }
0x1b5a   :  { %v5919_v63 = vpop.f32.mrf.mxu1  ;;  %v5935_v1 = vpop.f32.mrf.mxu0  ;;  %5953 = vmatpush3.bf16.xpose.msra.mxu0 %v3246_v62 }
0x1b5b   :  { %5958 = vmatprep.subr.bf16.mxu0 %v6420_v0 }
0x1b61   :  { %5955 = vmatmul.mubr.msk.bf16.vlgmr.msra.gmra.mxu0 %vm318_vm3, %v3240_v3 }
0x1b62   :  { %5960 = vmatprep.mubr.msk.bf16.mxu0 %vm6421_vm1, %v6420_v0 }
0x1b6c   :  { %v3234_v4 = vpop.f32.mrf.mxu1 }
0x1b6d   :  { %v3300_v5 = vpack.c.bf16 %v3234_v4, %v3234_v4 }
0x1b6e   :  { %v5950_v6 = vpop.f32.mrf.mxu1 }
0x1b6f   :  { %v3310_v7 = vsel %vm387_vm5, %v3300_v5, 0 }
0x1b70   :  { %v3237_v8 = vpop.f32.mrf.mxu1  ;;  %5959 = vmatpush3.bf16.msra.mxu0 %v3310_v7 }
0x1b71   :  { %5980 = vmatprep.subr.bf16.mxu0 %v6420_v0 }
0x1b72   :  { %v5951_v9 = vpop.f32.mrf.mxu1 }
0x1b84   :  { %v7515_v10 = vpop.f32.mrf.mxu1 }
0x1b85   :  { %v3443_v62 = vadd.f32 %v5022_v58, %v7515_v10 }
0x1b86   :  { %v5978_v11 = vpop.f32.mrf.mxu1 }
0x1b87   :  { %v3635_v1 = vpack.c.bf16 %v3443_v62, %v3443_v62 }
0x1b88   :  { %v3445_v12 = vpop.f32.mrf.mxu1 }
0x1b8a   :  { %v5979_v13 = vpop.f32.mrf.mxu1 }
0x1b9c   :  { %v7517_v14 = vpop.f32.mrf.mxu1 }
0x1b9d   :  { %v3695_v63 = vpack.c.bf16 %v7517_v14, %v7517_v14  ;;  %v6317_v14 = vld [vmem:[%s7780_s1 + $0x1a8] sm:$0x1f]  }
0x1b9e   :  { %v6010_v15 = vpop.f32.mrf.mxu1 }
0x1b9f   :  { %v3705_v2 = vsel %vm387_vm5, %v3695_v63, 0 }
0x1ba0   :  { %v3632_v17 = vpop.f32.mrf.mxu1 }
0x1ba2   :  { %v6011_v18 = vpop.f32.mrf.mxu1 }
0x1bb4   :  { %v3934_v21 = vpop.f32.mrf.mxu1 }
0x1bb5   :  { %v3935_v23 = vadd.f32 %v5104_v20, %v3934_v21  ;;  %v3802_v20 = vsel %vm86_vm0, %v6317_v14, 0  ;;  %v6318_v21 = vld [vmem:[%s7780_s1 + $0x1a0] sm:$0xff]  }
0x1bb6   :  { %v6054_v24 = vpop.f32.mrf.mxu1 }
0x1bb7   :  { %v4032_v25 = vpack.c.bf16 %v3935_v23, %v3935_v23  ;;  %v6319_v23 = vld [vmem:[%s7780_s1 + $0x198] sm:$0xff]   ;;  %v6320_v24 = vld [vmem:[%s7780_s1 + $0x190] sm:$0xff]  }
0x1bb8   :  { %v3937_v28 = vpop.f32.mrf.mxu1 }
0x1bb9   :  { %v4037_v29 = vsel %vm318_vm3, %v4032_v25, 0  ;;  %v6321_v25 = vld [vmem:[%s7780_s1 + $0x188] sm:$0xff]   ;;  %v6322_v28 = vld [vmem:[%s7780_s1 + $0x180] sm:$0xff]  }
0x1bba   :  { %v6055_v30 = vpop.f32.mrf.mxu1  ;;  %6073 = vmatpush3.bf16.xpose.msra.mxu1 %v4037_v29  ;;  %v6323_v29 = vld [vmem:[%s7781_s2 + $0x1a8] sm:$0x1f]  }
0x1bbb   :  { %6078 = vmatprep.subr.bf16.mxu1 %v6420_v0  ;;  %v3989_v30 = vsel %vm86_vm0, %v6323_v29, 0  ;;  %v6332_v29 = vld [vmem:[%s7782_s3 + $0x70] sm:$0xff]  }
0x1c21   :  { %v3282_v31 = vpop.f32.mrf.mxu0 }
0x1c22   :  { %v3288_v32 = vsel %vm365_vm4, %v3282_v31, -inf }
0x1c23   :  { %3289 = vmax.xlane.f32.xlu0 %v3288_v32  ;;  %v5956_v33 = vpop.f32.mrf.mxu0  ;;  %v6325_v32 = vld [vmem:[%s7781_s2 + $0x198] sm:$0xff]  }
0x1c24   :  { %v6326_v33 = vld [vmem:[%s7781_s2 + $0x190] sm:$0xff]  }
0x1c25   :  { %v3285_v19 = vpop.f32.mrf.mxu0 }
0x1c26   :  { %v6327_v19 = vld [vmem:[%s7781_s2 + $0x188] sm:$0xff]  }
0x1c27   :  { %v5957_v34 = vpop.f32.mrf.mxu0 }
0x1c28   :  { %v6328_v34 = vld [vmem:[%s7781_s2 + $0x180] sm:$0xff]  }
0x1cac   :  { %v3290_v35 = vpop.xlane.xlu0 %3289 }
0x1cad   :  { %v3291_v36 = vsub.f32 %v3282_v31, %v3290_v35  ;;  %v6324_v31 = vld [vmem:[%s7781_s2 + $0x1a0] sm:$0xff]   ;;  %v5008_v35 = vld [vmem:[%s7785_s6 + $0x18] ss:$0 sm:$0xff] }
0x1caf   :  { %v3292_v37 = vmul.f32 1.442695, %v3291_v36  ;;  %v5070_v36 = vld [vmem:[%s7785_s6 + $0x19] ss:$0 sm:$0xff] }
0x1cb1   :  { %6381 = vpow2.f32 %v3292_v37 }
0x1cbe   :  { %v6382_v38 = vpop.eup %6381 }
0x1cbf   :  { %v3294_v22 = vsel %vm365_vm4, %v6382_v38, 0.0 }
0x1cc0   :  { %3295 = vadd.xlane.f32.xlu1 %v3294_v22 }
0x1d49   :  { %v3296_v39 = vpop.xlane.xlu1 %3295 }
0x1d4a   :  { %6383 = vrcp.f32 %v3296_v39 }
0x1d57   :  { %v6384_v41 = vpop.eup %6383 }
0x1d58   :  { %v3298_v42 = vmul.f32 %v6384_v41, %v6382_v38 }
0x1d5a   :  { %v3299_v43 = vpack.c.bf16 %v3298_v42, %v3298_v42 }
0x1d5c   :  { %5961 = vmatmul.mubr.msk.bf16.vlgmr.msra.gmra.mxu0 %vm365_vm4, %v3299_v43 }
0x1d5d   :  { %5981 = vmatpush3.bf16.msra.mxu0 %v3502_v44  ;;  %5992 = vmatprep.mubr.msk.bf16.mxu0 %vm6421_vm1, %v6420_v0 }
0x1d5e   :  { %5982 = vmatprep.subr.bf16.mxu0 %v6420_v0 }
0x1d61   :  { %5983 = vmatpush3.bf16.msra.mxu0 %v6312_v45 }
0x1d62   :  { %5984 = vmatprep.subr.bf16.mxu0 %v6420_v0 }
0x1d65   :  { %5985 = vmatpush3.bf16.msra.mxu0 %v6313_v46 }
0x1d66   :  { %5986 = vmatprep.subr.bf16.mxu0 %v6420_v0 }
0x1d69   :  { %5987 = vmatpush3.bf16.msra.mxu0 %v6314_v47 }
0x1d6a   :  { %5988 = vmatprep.subr.bf16.mxu0 %v6420_v0 }
0x1d6d   :  { %5989 = vmatpush3.bf16.msra.mxu0 %v6315_v48 }
0x1d6e   :  { %5990 = vmatprep.subr.bf16.mxu0 %v6420_v0 }
0x1d71   :  { %5991 = vmatpush3.bf16.msra.mxu0 %v6316_v49 }
0x1d72   :  { %6012 = vmatprep.subr.bf16.mxu0 %v6420_v0 }
0x1d74   :  { %5993 = vmatmul.mubr.msk.bf16.vlgmr.msra.gmra.mxu0 %vm82_vm2, %v7379_v27 }
0x1d75   :  { %6014 = vmatprep.mubr.msk.bf16.mxu0 %vm6421_vm1, %v6420_v0 }
0x1e1c   :  { %v7558_v50 = vpop.f32.mrf.mxu0 }
0x1e1d   :  { %v3347_v38 = vadd.f32 %v5008_v35, %v7558_v50  ;;  %v6339_v35 = vld [vmem:[%s7783_s4 + $0x98] sm:$0xff]  }
0x1e1e   :  { %v5962_v16 = vpop.f32.mrf.mxu0 }
0x1e20   :  { %v3349_v51 = vpop.f32.mrf.mxu0 }
0x1e22   :  { %v5963_v52 = vpop.f32.mrf.mxu0 }
0x1e34   :  { %v3538_v54 = vpop.f32.mrf.mxu0 }
0x1e35   :  { %v3539_v55 = vadd.f32 %v5042_v53, %v3538_v54 }
0x1e36   :  { %v5994_v56 = vpop.f32.mrf.mxu0 }
0x1e37   :  { %v3636_v57 = vpack.c.bf16 %v3539_v55, %v3539_v55 }
0x1e38   :  { %v3541_v59 = vpop.f32.mrf.mxu0 }
0x1e39   :  { %v3641_v60 = vsel %vm318_vm3, %v3636_v57, 0 }
0x1e3a   :  { %v5995_v61 = vpop.f32.mrf.mxu0  ;;  %6013 = vmatpush3.bf16.xpose.msra.mxu0 %v3641_v60 }
0x1e3b   :  { %6018 = vmatprep.subr.bf16.mxu0 %v6420_v0 }
0x1e41   :  { %6015 = vmatmul.mubr.msk.bf16.vlgmr.msra.gmra.mxu0 %vm318_vm3, %v3635_v1 }
0x1e42   :  { %6019 = vmatpush3.bf16.msra.mxu0 %v3705_v2  ;;  %6020 = vmatprep.mubr.msk.bf16.mxu0 %vm6421_vm1, %v6420_v0 }
0x1e43   :  { %6024 = vmatprep.subr.bf16.mxu0 %v6420_v0 }
0x1f01   :  { %v3677_v3 = vpop.f32.mrf.mxu0 }
0x1f02   :  { %v3683_v4 = vsel %vm365_vm4, %v3677_v3, -inf }
0x1f03   :  { %3684 = vmax.xlane.f32.xlu0 %v3683_v4  ;;  %v6016_v5 = vpop.f32.mrf.mxu0 }
0x1f04   :  { %v5132_v5 = vld [vmem:[%s7785_s6 + $0x1a] ss:$0 sm:$0xff] }
0x1f05   :  { %v3680_v6 = vpop.f32.mrf.mxu0 }
0x1f07   :  { %v6017_v7 = vpop.f32.mrf.mxu0 }
0x1f8c   :  { %v3685_v8 = vpop.xlane.xlu0 %3684 }
0x1f8d   :  { %v3686_v9 = vsub.f32 %v3677_v3, %v3685_v8 }
0x1f8f   :  { %v3687_v10 = vmul.f32 1.442695, %v3686_v9 }
0x1f91   :  { %6385 = vpow2.f32 %v3687_v10 }
0x1f9e   :  { %v6386_v11 = vpop.eup %6385 }
0x1f9f   :  { %v3689_v12 = vsel %vm365_vm4, %v6386_v11, 0.0 }
0x1fa0   :  { %3690 = vadd.xlane.f32.xlu1 %v3689_v12 }
0x2029   :  { %v3691_v13 = vpop.xlane.xlu1 %3690 }
0x202a   :  { %6387 = vrcp.f32 %v3691_v13 }
0x2037   :  { %v6388_v15 = vpop.eup %6387 }
0x2038   :  { %v3693_v17 = vmul.f32 %v6388_v15, %v6386_v11  ;;  %v5134_v11 = vld [vmem:[%s7785_s6 + $0x1d] ss:$0 sm:$0xff] }
0x203a   :  { %v3694_v18 = vpack.c.bf16 %v3693_v17, %v3693_v17 }
0x203c   :  { %6021 = vmatmul.mubr.msk.bf16.vlgmr.msra.gmra.mxu0 %vm365_vm4, %v3694_v18 }
0x203d   :  { %6025 = vmatpush3.bf16.msra.mxu0 %v3802_v20  ;;  %6036 = vmatprep.mubr.msk.bf16.mxu0 %vm6421_vm1, %v6420_v0 }
0x203e   :  { %6026 = vmatprep.subr.bf16.mxu0 %v6420_v0 }
0x2041   :  { %6027 = vmatpush3.bf16.msra.mxu0 %v6318_v21 }
0x2042   :  { %6028 = vmatprep.subr.bf16.mxu0 %v6420_v0 }
0x2045   :  { %6029 = vmatpush3.bf16.msra.mxu0 %v6319_v23 }
0x2046   :  { %6030 = vmatprep.subr.bf16.mxu0 %v6420_v0 }
0x2049   :  { %6031 = vmatpush3.bf16.msra.mxu0 %v6320_v24  ;;  %v6329_v24 = vld [vmem:[%s7782_s3 + $0x88] sm:$0x1f]  }
0x204a   :  { %6032 = vmatprep.subr.bf16.mxu0 %v6420_v0 }
0x204d   :  { %6033 = vmatpush3.bf16.msra.mxu0 %v6321_v25  ;;  %v4234_v25 = vsel %vm86_vm0, %v6329_v24, 0 }
0x204e   :  { %6034 = vmatprep.subr.bf16.mxu0 %v6420_v0 }
0x2051   :  { %6035 = vmatpush3.bf16.msra.mxu0 %v6322_v28  ;;  %v6331_v28 = vld [vmem:[%s7782_s3 + $0x78] sm:$0xff]  }
0x2052   :  { %6056 = vmatprep.subr.bf16.mxu0 %v6420_v0 }
0x2054   :  { %6037 = vmatmul.mubr.msk.bf16.vlgmr.msra.gmra.mxu0 %vm82_vm2, %v7379_v27 }
0x2055   :  { %6057 = vmatpush3.bf16.msra.mxu0 %v3989_v30  ;;  %6068 = vmatprep.mubr.msk.bf16.mxu0 %vm6421_vm1, %v6420_v0  ;;  %v6333_v30 = vld [vmem:[%s7782_s3 + $0x68] sm:$0xff]  }
0x2056   :  { %6058 = vmatprep.subr.bf16.mxu0 %v6420_v0 }
0x2059   :  { %6059 = vmatpush3.bf16.msra.mxu0 %v6324_v31  ;;  %v6334_v31 = vld [vmem:[%s7782_s3 + $0x60] sm:$0xff]  }
0x205a   :  { %6060 = vmatprep.subr.bf16.mxu0 %v6420_v0 }
0x205d   :  { %6061 = vmatpush3.bf16.msra.mxu0 %v6325_v32  ;;  %v6335_v32 = vld [vmem:[%s7783_s4 + $0xb8] sm:$0xff]  }
0x205e   :  { %6062 = vmatprep.subr.bf16.mxu0 %v6420_v0 }
0x2061   :  { %6063 = vmatpush3.bf16.msra.mxu0 %v6326_v33  ;;  %v6336_v33 = vld [vmem:[%s7783_s4 + $0xb0] sm:$0xff]  }
0x2062   :  { %6064 = vmatprep.subr.bf16.mxu0 %v6420_v0 }
0x2065   :  { %6065 = vmatpush3.bf16.msra.mxu0 %v6327_v19  ;;  %v6337_v19 = vld [vmem:[%s7783_s4 + $0xa8] sm:$0xff]  }
0x2066   :  { %6066 = vmatprep.subr.bf16.mxu0 %v6420_v0 }
0x2069   :  { %6067 = vmatpush3.bf16.msra.mxu0 %v6328_v34  ;;  %v6338_v34 = vld [vmem:[%s7783_s4 + $0xa0] sm:$0xff]  }
0x206a   :  { %6100 = vmatprep.subr.bf16.mxu0 %v6420_v0 }
0x206c   :  { %6069 = vmatmul.mubr.msk.bf16.vlgmr.msra.gmra.mxu0 %vm82_vm2, %v7379_v27  ;;  %v5084_v27 = vld [vmem:[%s7785_s6 + $0x8] ss:$0 sm:$0xff] }
0x206d   :  { %6116 = vmatprep.mubr.msk.bf16.mxu0 %vm6421_vm1, %v6420_v0  ;;  %6101 = vmatpush3.bf16.msra.mxu0 %v6335_v32 }
0x206e   :  { %6102 = vmatprep.subr.bf16.mxu0 %v6420_v0 }
0x2071   :  { %6103 = vmatpush3.bf16.msra.mxu0 %v6336_v33 }
0x2072   :  { %6104 = vmatprep.subr.bf16.mxu0 %v6420_v0 }
0x2075   :  { %6105 = vmatpush3.bf16.msra.mxu0 %v6337_v19 }
0x2076   :  { %6106 = vmatprep.subr.bf16.mxu0 %v6420_v0 }
0x2079   :  { %6107 = vmatpush3.bf16.msra.mxu0 %v6338_v34 }
0x207a   :  { %6108 = vmatprep.subr.bf16.mxu0 %v6420_v0 }
0x207d   :  { %6109 = vmatpush3.bf16.msra.mxu0 %v6339_v35 }
0x207e   :  { %6110 = vmatprep.subr.bf16.mxu0 %v6420_v0 }
0x20fc   :  { %v3741_v37 = vpop.f32.mrf.mxu0 }
0x20fd   :  { %v3742_v22 = vadd.f32 %v5070_v36, %v3741_v37  ;;  %v6340_v36 = vld [vmem:[%s7783_s4 + $0x90] sm:$0xff]  }
0x20fe   :  { %v6022_v39 = vpop.f32.mrf.mxu0  ;;  %6111 = vmatpush3.bf16.msra.mxu0 %v6340_v36 }
0x20ff   :  { %v3747_v40 = vadd.f32 %v3742_v22, %v3347_v38  ;;  %6112 = vmatprep.subr.bf16.mxu0 %v6420_v0 }
0x2100   :  { %v3744_v41 = vpop.f32.mrf.mxu0 }
0x2102   :  { %v6023_v42 = vpop.f32.mrf.mxu0 }
0x2103   :  { %v5136_v42 = vld [vmem:[%s7785_s6 + $0x23] ss:$0 sm:$0xff] }
0x2114   :  { %v3838_v43 = vpop.f32.mrf.mxu0 }
0x2115   :  { %v3839_v44 = vadd.f32 %v5084_v27, %v3838_v43 }
0x2116   :  { %v6038_v45 = vpop.f32.mrf.mxu0 }
0x2117   :  { %v4031_v46 = vpack.c.bf16 %v3839_v44, %v3839_v44  ;;  %v6341_v45 = vld [vmem:[%s7783_s4 + $0x88] sm:$0xff]  }
0x2118   :  { %v3841_v47 = vpop.f32.mrf.mxu0  ;;  %6113 = vmatpush3.bf16.msra.mxu0 %v6341_v45 }
0x2119   :  { %6075 = vmatmul.mubr.msk.bf16.vlgmr.msra.gmra.mxu1 %vm318_vm3, %v4031_v46  ;;  %6114 = vmatprep.subr.bf16.mxu0 %v6420_v0  ;;  %v6342_v46 = vld [vmem:[%s7783_s4 + $0x80] sm:$0xff]  }
0x211a   :  { %v6039_v48 = vpop.f32.mrf.mxu0  ;;  %6080 = vmatprep.mubr.msk.bf16.mxu1 %vm6421_vm1, %v6420_v0  ;;  %v5149_v47 = vld [vmem:[%s7785_s6 + $0x26] ss:$0 sm:$0xff] }
0x211c   :  { %6115 = vmatpush3.bf16.msra.mxu0 %v6342_v46 }
0x212c   :  { %v4025_v49 = vpop.f32.mrf.mxu0 }
0x212d   :  { %v4091_v50 = vpack.c.bf16 %v4025_v49, %v4025_v49 }
0x212e   :  { %v6070_v16 = vpop.f32.mrf.mxu0 }
0x212f   :  { %v4101_v51 = vsel %vm387_vm5, %v4091_v50, 0 }
0x2130   :  { %v4028_v52 = vpop.f32.mrf.mxu0  ;;  %6079 = vmatpush3.bf16.msra.mxu1 %v4101_v51 }
0x2131   :  { %6084 = vmatprep.subr.bf16.mxu1 %v6420_v0 }
0x2132   :  { %v6071_v53 = vpop.f32.mrf.mxu0 }
0x21d9   :  { %v4073_v54 = vpop.f32.mrf.mxu1 }
0x21da   :  { %v4079_v55 = vsel %vm365_vm4, %v4073_v54, -inf }
0x21db   :  { %4080 = vmax.xlane.f32.xlu0 %v4079_v55  ;;  %v6076_v56 = vpop.f32.mrf.mxu1 }
0x21dd   :  { %v4076_v57 = vpop.f32.mrf.mxu1 }
0x21df   :  { %v6077_v58 = vpop.f32.mrf.mxu1 }
0x2264   :  { %v4081_v59 = vpop.xlane.xlu0 %4080 }
0x2265   :  { %v4082_v60 = vsub.f32 %v4073_v54, %v4081_v59  ;;  %v5173_v54 = vld [vmem:[%s7785_s6 + $0x29] ss:$0 sm:$0xff] }
0x2267   :  { %v4083_v61 = vmul.f32 1.442695, %v4082_v60 }
0x2269   :  { %6389 = vpow2.f32 %v4083_v61 }
0x2276   :  { %v6390_v62 = vpop.eup %6389 }
0x2277   :  { %v4085_v63 = vsel %vm365_vm4, %v6390_v62, 0.0 }
0x2278   :  { %4086 = vadd.xlane.f32.xlu1 %v4085_v63 }
0x2301   :  { %v4087_v1 = vpop.xlane.xlu1 %4086 }
0x2302   :  { %6391 = vrcp.f32 %v4087_v1 }
0x230f   :  { %v6392_v2 = vpop.eup %6391 }
0x2310   :  { %v4089_v3 = vmul.f32 %v6392_v2, %v6390_v62 }
0x2312   :  { %v4090_v4 = vpack.c.bf16 %v4089_v3, %v4089_v3 }
0x2314   :  { %6081 = vmatmul.mubr.msk.bf16.vlgmr.msra.gmra.mxu1 %vm365_vm4, %v4090_v4  ;;  %v6343_v4 = vld [vmem:[%s7784_s5 + $0x28] sm:$0x1f]  }
0x2315   :  { %6096 = vmatprep.mubr.msk.bf16.mxu1 %vm6421_vm1, %v6420_v0  ;;  %6085 = vmatpush3.bf16.msra.mxu1 %v4234_v25 }
0x2316   :  { %6086 = vmatprep.subr.bf16.mxu1 %v6420_v0 }
0x23d4   :  { %v4137_v6 = vpop.f32.mrf.mxu1 }
0x23d5   :  { %v4138_v7 = vadd.f32 %v5132_v5, %v4137_v6  ;;  %v4471_v5 = vsel %vm86_vm0, %v6343_v4, 0  ;;  %v6344_v6 = vld [vmem:[%s7784_s5 + $0x20] sm:$0xff]  }
0x23d6   :  { %v6082_v8 = vpop.f32.mrf.mxu1 }
0x23d7   :  { %v4143_v9 = vadd.f32 %v4138_v7, %v3747_v40  ;;  %v5135_v40 = vld [vmem:[%s7785_s6 + $0x20] ss:$0 sm:$0xff]  ;;  %v6345_v7 = vld [vmem:[%s7784_s5 + $0x18] sm:$0xff]   ;;  %v6346_v8 = vld [vmem:[%s7784_s5 + $0x10] sm:$0xff]  }
0x23d8   :  { %v4140_v10 = vpop.f32.mrf.mxu1 }
0x23d9   :  { %v4144_v12 = vadd.f32 %v4143_v9, %v7375_v26  ;;  %v6330_v26 = vld [vmem:[%s7782_s3 + $0x80] sm:$0xff]   ;;  %v6347_v9 = vld [vmem:[%s7784_s5 + $0x8] sm:$0xff]  }
0x23da   :  { %v6083_v13 = vpop.f32.mrf.mxu1  ;;  %6087 = vmatpush3.bf16.msra.mxu1 %v6330_v26  ;;  %v6348_v10 = vld [vmem:[%s7784_s5] sm:$0xff]  }
0x23db   :  { %v4150_v14 = vadd.f32 %v5134_v11, %v4144_v12  ;;  %6088 = vmatprep.subr.bf16.mxu1 %v6420_v0 }
0x23dd   :  { %v4153_v15 = vsel %vm82_vm2, %v4150_v14, 0.0 }
0x23de   :  { %4154 = vadd.xlane.f32.xlu0 %v4153_v15  ;;  %6089 = vmatpush3.bf16.msra.mxu1 %v6331_v28  ;;  %v5182_v15 = vld [vmem:[%s7785_s6 + $0x2c] ss:$0 sm:$0xff] }
0x23df   :  { %6090 = vmatprep.subr.bf16.mxu1 %v6420_v0 }
0x23e2   :  { %6091 = vmatpush3.bf16.msra.mxu1 %v6332_v29 }
0x23e3   :  { %6092 = vmatprep.subr.bf16.mxu1 %v6420_v0 }
0x23e6   :  { %6093 = vmatpush3.bf16.msra.mxu1 %v6333_v30 }
0x23e7   :  { %6094 = vmatprep.subr.bf16.mxu1 %v6420_v0 }
0x23ea   :  { %6095 = vmatpush3.bf16.msra.mxu1 %v6334_v31 }
0x23eb   :  { %6120 = vmatprep.subr.bf16.mxu1 %v6420_v0 }
0x2467   :  { %v4155_v17 = vpop.xlane.xlu0 %4154 }
0x2468   :  { %v4156_v18 = vmul.f32 0.011111111, %v4155_v17 }
0x246a   :  { %v4157_v20 = vsub.f32 %v4150_v14, %v4156_v18  ;;  %v5183_v18 = vld [vmem:[%s7785_s6 + $0x2f] ss:$0 sm:$0xff] }
0x246c   :  { %v4158_v21 = vmul.f32 %v4157_v20, %v4157_v20 }
0x246e   :  { %v4159_v23 = vsel %vm82_vm2, %v4158_v21, 0.0 }
0x246f   :  { %4160 = vadd.xlane.f32.xlu1 %v4159_v23 }
0x24f8   :  { %v4161_v37 = vpop.xlane.xlu1 %4160 }
0x24f9   :  { %v4162_v38 = vmul.f32 0.011111111, %v4161_v37 }
0x24fb   :  { %v4163_v22 = vadd.f32 1e-05, %v4162_v38 }
0x24fd   :  { %6393 = vrsqrt.f32 %v4163_v22 }
0x250a   :  { %v6394_v39 = vpop.eup %6393 }
0x250b   :  { %v4165_v41 = vmul.f32 %v6394_v39, %v4157_v20 }
0x250d   :  { %v4170_v27 = vmul.f32 %v5135_v40, %v4165_v41 }
0x250f   :  { %v4175_v43 = vadd.f32 %v5136_v42, %v4170_v27 }
0x2511   :  { %v4176_v44 = vpack.c.bf16 %v4175_v43, %v4175_v43 }
0x2513   :  { %6097 = vmatmul.mubr.msk.bf16.vlgmr.msra.gmra.mxu1 %vm82_vm2, %v4176_v44 }
0x2514   :  { %6132 = vmatprep.mubr.msk.bf16.mxu1 %vm6421_vm1, %v6420_v0  ;;  %6121 = vmatpush3.bf16.msra.mxu1 %v4471_v5 }
0x2515   :  { %6122 = vmatprep.subr.bf16.mxu1 %v6420_v0 }
0x2518   :  { %6123 = vmatpush3.bf16.msra.mxu1 %v6344_v6 }
0x2519   :  { %6124 = vmatprep.subr.bf16.mxu1 %v6420_v0 }
0x251c   :  { %6125 = vmatpush3.bf16.msra.mxu1 %v6345_v7 }
0x251d   :  { %6126 = vmatprep.subr.bf16.mxu1 %v6420_v0 }
0x2520   :  { %6127 = vmatpush3.bf16.msra.mxu1 %v6346_v8 }
0x2521   :  { %6128 = vmatprep.subr.bf16.mxu1 %v6420_v0 }
0x2524   :  { %6129 = vmatpush3.bf16.msra.mxu1 %v6347_v9 }
0x2525   :  { %6130 = vmatprep.subr.bf16.mxu1 %v6420_v0  ;;  %v5184_v0 = vld [vmem:[%s7785_s6 + $0x30] ss:$0 sm:$0xff] }
0x2528   :  { %6131 = vmatpush3.bf16.msra.mxu1 %v6348_v10 }
0x25d3   :  { %v4270_v48 = vpop.f32.mrf.mxu1 }
0x25d4   :  { %v4271_v49 = vadd.f32 %v5149_v47, %v4270_v48 }
0x25d5   :  { %v6098_v50 = vpop.f32.mrf.mxu1 }
0x25d6   :  { %v4276_v16 = vmax.f32 %v4271_v49, 0.0 }
0x25d7   :  { %v4273_v51 = vpop.f32.mrf.mxu1 }
0x25d8   :  { %v4277_v52 = vpack.c.bf16 %v4276_v16, %v4276_v16 }
0x25d9   :  { %v6099_v53 = vpop.f32.mrf.mxu1 }
0x25da   :  { %6117 = vmatmul.mubr.bf16.vlgmr.msra.gmra.mxu0 %v4277_v52 }
0x269a   :  { %v4382_v55 = vpop.f32.mrf.mxu0 }
0x269b   :  { %v4383_v56 = vadd.f32 %v5173_v54, %v4382_v55 }
0x269c   :  { %v6118_v57 = vpop.f32.mrf.mxu0 }
0x269d   :  { %v4388_v58 = vadd.f32 %v4383_v56, %v4175_v43 }
0x269e   :  { %v4385_v59 = vpop.f32.mrf.mxu0 }
0x269f   :  { %v4391_v60 = vsel %vm82_vm2, %v4388_v58, 0.0 }
0x26a0   :  { %4392 = vadd.xlane.f32.xlu0 %v4391_v60  ;;  %v6119_v61 = vpop.f32.mrf.mxu0 }
0x2729   :  { %v4393_v62 = vpop.xlane.xlu0 %4392 }
0x272a   :  { %v4394_v63 = vmul.f32 0.011111111, %v4393_v62 }
0x272c   :  { %v4395_v1 = vsub.f32 %v4388_v58, %v4394_v63 }
0x272e   :  { %v4396_v2 = vmul.f32 %v4395_v1, %v4395_v1 }
0x2730   :  { %v4397_v3 = vsel %vm82_vm2, %v4396_v2, 0.0 }
0x2731   :  { %4398 = vadd.xlane.f32.xlu1 %v4397_v3 }
0x27ba   :  { %v4399_v11 = vpop.xlane.xlu1 %4398 }
0x27bb   :  { %v4400_v12 = vmul.f32 0.011111111, %v4399_v11 }
0x27bd   :  { %v4401_v13 = vadd.f32 1e-05, %v4400_v12 }
0x27bf   :  { %6395 = vrsqrt.f32 %v4401_v13 }
0x27cc   :  { %v6396_v14 = vpop.eup %6395 }
0x27cd   :  { %v4403_v17 = vmul.f32 %v6396_v14, %v4395_v1 }
0x27cf   :  { %v4408_v20 = vmul.f32 %v5182_v15, %v4403_v17 }
0x27d1   :  { %v4413_v21 = vadd.f32 %v5183_v18, %v4408_v20 }
0x27d3   :  { %v4414_v23 = vpack.c.bf16 %v4413_v21, %v4413_v21 }
0x27d5   :  { %6133 = vmatmul.mubr.msk.bf16.vlgmr.msra.gmra.mxu1 %vm82_vm2, %v4414_v23 }
0x2895   :  { %v4507_v24 = vpop.f32.mrf.mxu1 }
0x2896   :  { %v4508_v25 = vadd.f32 %v5184_v0, %v4507_v24 }
0x2897   :  { %v6134_v26 = vpop.f32.mrf.mxu1 }
0x2898   :  { %4513 = vst.msk [vmem:[#allocation2] sm:$0xff] %vm365_vm4, %v4508_v25 }
0x2899   :  { %v4510_v28 = vpop.f32.mrf.mxu1 }
0x289a   :  { %6409 = shalt.err (!%p6406_p4)
}
0x289b   :  { %4523 = dma.vmem_to_hbm [thread:$0]  %s4521_s15, 128, %s7786_s7, [#allocation3]   ;;  %v6135_v29 = vpop.f32.mrf.mxu1 }
0x289c   :  { %6418 = dma.done.wait [#allocation3], 128  }
0x289d   :  { %6419 = vsyncadd [#allocation3], 4294967168 }
0x289e   :  { %4527 = vsyncpa [#allocation3], 1 }

</bundles_post_ra>
